<compile_context>
chip_gen: v7x
topology: tpu7x:2x2x1
jax: 0.10.0
libtpu: 0.0.40
codegen_flags: <defaults>
</compile_context>

<pallas_src>
import numpy as np

import jax
import jax.numpy as jnp
from jax import lax
from jax.experimental import pallas as pl
from jax.experimental.pallas import tpu as pltpu


def _round_up(x, m):
    return -(-x // m) * m


# ----------------------------- Pallas kernel -------------------------------

def _conv2dsame_kernel(x_ref, m_ref, b_ref, o_ref):
    """One batch tile of the lowered Conv2dSame.

    x_ref : (Bt, K)   bf16  flattened NCHW images (K = Cin*H*W)
    m_ref : (K, Pp)   bf16  lowered conv matrix (padding + flatten order folded in)
    b_ref : (1, Pp)   f32   per-output-position bias (Cout broadcast over Hout*Wout)
    o_ref : (Bt, Pp)  f32   flattened NCHW conv output (lane-padded to Pp)
    """
    acc = jnp.dot(x_ref[...], m_ref[...], preferred_element_type=jnp.float32)
    o_ref[...] = acc + b_ref[...]


def _conv2dsame_pallas(x_flat, m, b_row, *, b_tile):
    n_pad, k_in = x_flat.shape
    p_pad = m.shape[1]
    assert n_pad % b_tile == 0

    row_map = lambda i: (i, 0)      # batch-tiled arrays
    const_map = lambda i: (0, 0)    # weights / bias: DMA'd once, stay VMEM-resident

    flops = 2 * int(n_pad) * int(k_in) * int(p_pad)
    bytes_accessed = int(x_flat.size) * 2 + int(m.size) * 2 \
        + int(b_row.size) * 4 + int(n_pad) * int(p_pad) * 4

    return pl.pallas_call(
        _conv2dsame_kernel,
        out_shape=jax.ShapeDtypeStruct((n_pad, p_pad), jnp.float32),
        grid_spec=pltpu.PrefetchScalarGridSpec(
            num_scalar_prefetch=0,
            grid=(n_pad // b_tile,),
            in_specs=[
                pl.BlockSpec((b_tile, k_in), row_map),
                pl.BlockSpec((k_in, p_pad), const_map),
                pl.BlockSpec((1, p_pad), const_map),
            ],
            out_specs=pl.BlockSpec((b_tile, p_pad), row_map),
        ),
        compiler_params=pltpu.CompilerParams(
            dimension_semantics=("parallel",),       # shard batch tiles across TCs
            vmem_limit_bytes=32 * 1024 * 1024,       # explicit: v5e default is 16 MiB
        ),
        cost_estimate=pl.CostEstimate(flops=flops, transcendentals=0,
                                      bytes_accessed=bytes_accessed),
    )(x_flat, m, b_row)


# ----------------- host-side weight lowering (runs once) -------------------

def lower_conv2dsame(weight_oihw, bias, h_in, w_in, *, stride=1, dilation=1):
    """Lower one Conv2dSame layer to (M, b_row, meta).

    For a single image x, with flatten_nchw = row-major flatten of (C, H, W):
        flatten_nchw(conv2dsame(x)) == flatten_nchw(x) @ M + b_row[:P]
    Padding semantics match the PyTorch module exactly: per spatial dim
    total = dilation*(kernel-1), left = total//2, right = total - left,
    followed by an un-padded Conv2d(stride, dilation).
    Columns of M / b_row are zero-padded to a multiple of 128 (lane-dense).
    """
    w = np.asarray(weight_oihw, np.float32)           # (Cout, Cin, Kh, Kw)
    cout, cin, kh, kw = w.shape
    sh = sw = int(stride)
    dh = dw = int(dilation)
    tot_h, tot_w = dh * (kh - 1), dw * (kw - 1)
    pad_h, pad_w = tot_h // 2, tot_w // 2             # left pads; right = tot - left
    h_out = (h_in + tot_h - dh * (kh - 1) - 1) // sh + 1
    w_out = (w_in + tot_w - dw * (kw - 1) - 1) // sw + 1

    k_dim = cin * h_in * w_in
    p_dim = cout * h_out * w_out
    p_pad = _round_up(p_dim, 128)                     # lane-dense output stores

    m = np.zeros((k_dim, p_pad), np.float32)
    row_c = np.arange(cin) * (h_in * w_in)            # NCHW row offsets per channel
    col_c = np.arange(cout) * (h_out * w_out)         # NCHW col offsets per channel
    for oh in range(h_out):
        for ow in range(w_out):
            col = col_c + oh * w_out + ow
            for ki in range(kh):
                ih = oh * sh + ki * dh - pad_h
                if ih < 0 or ih >= h_in:
                    continue                          # zero 'same' padding (rows)
                for kj in range(kw):
                    iw = ow * sw + kj * dw - pad_w
                    if iw < 0 or iw >= w_in:
                        continue                      # zero 'same' padding (cols)
                    row = row_c + ih * w_in + iw
                    m[np.ix_(row, col)] = w[:, :, ki, kj].T   # (Cin, Cout) tap

    b_row = np.zeros((1, p_pad), np.float32)
    b_row[0, :p_dim] = np.repeat(np.asarray(bias, np.float32), h_out * w_out)

    meta = dict(cout=int(cout), h_out=int(h_out), w_out=int(w_out),
                p_dim=int(p_dim), k_dim=int(k_dim), p_pad=int(p_pad))
    return jnp.asarray(m, jnp.bfloat16), jnp.asarray(b_row, jnp.float32), meta


# ------------------------------- forward -----------------------------------

def _choose_batch_tile(n, k_dim, p_pad):
    """Batch tile (multiple of 8 sublanes).

    * Cap decoupled from next_power_of_2(n): fixed 512-row upper bound, further
      limited so the double-buffered bf16 x-tile + f32 out-tile stay <= ~16 MiB
      (the VMEM-resident weights add ~2*|M| on top, inside the 32 MiB limit).
    * >= 2 grid steps whenever n >= 16 so ("parallel",) gives both v7x TCs work.
    * Batch padding limited to at most one partial tile.
    """
    bytes_per_row = 2 * (2 * k_dim + 4 * p_pad)       # x(bf16)+out(f32), x2 buffers
    vmem_rows = max(8, (16 * 1024 * 1024 // bytes_per_row) // 8 * 8)
    cap = min(512, vmem_rows)
    n8 = _round_up(max(int(n), 1), 8)
    if n8 < 16:
        return min(n8, cap)
    half = _round_up(-(-n8 // 2), 8)
    return max(8, min(cap, half))


def make_conv2dsame(weight_oihw, bias, h_in, w_in, *, stride=1, dilation=1):
    """Build a jitted Conv2dSame forward for fixed weights / spatial size."""
    m, b_row, meta = lower_conv2dsame(weight_oihw, bias, h_in, w_in,
                                      stride=stride, dilation=dilation)
    cout, h_out, w_out = meta["cout"], meta["h_out"], meta["w_out"]
    k_dim, p_dim = meta["k_dim"], meta["p_dim"]

    @jax.jit
    def forward(x_nchw):
        n = x_nchw.shape[0]
        # Pure row-major reshape of the NCHW input; the channel/spatial order
        # and the zero padding live inside M, so there is no wrapper transpose.
        x_flat = x_nchw.reshape(n, k_dim).astype(jnp.bfloat16)

        b_tile = _choose_batch_tile(n, k_dim, meta["p_pad"])
        n_pad = _round_up(n, b_tile)
        if n_pad != n:               # pad batch to a tile multiple (<= 1 tile)
            x_flat = jnp.pad(x_flat, ((0, n_pad - n), (0, 0)))

        out_flat = _conv2dsame_pallas(x_flat, m, b_row, b_tile=b_tile)
        out = out_flat[:n, :p_dim]   # drop batch padding + lane padding (no-op
        return out.reshape(n, cout, h_out, w_out)   # when already dense)

    return forward


def conv2dsame_reference(x_nchw, weight_oihw, bias, *, stride=1, dilation=1):
    """Pure-JAX reference with the module's exact padding semantics."""
    kh, kw = int(weight_oihw.shape[2]), int(weight_oihw.shape[3])
    tot_h, tot_w = dilation * (kh - 1), dilation * (kw - 1)
    pad = [(tot_h // 2, tot_h - tot_h // 2), (tot_w // 2, tot_w - tot_w // 2)]
    y = lax.conv_general_dilated(
        x_nchw.astype(jnp.float32), jnp.asarray(weight_oihw, jnp.float32),
        window_strides=(stride, stride), padding=pad,
        rhs_dilation=(dilation, dilation),
        dimension_numbers=("NCHW", "OIHW", "NCHW"))
    return y + jnp.asarray(bias, jnp.float32)[None, :, None, None]


if __name__ == "__main__":
    key = jax.random.PRNGKey(0)
    k_x1, k_x2, k_w, k_b = jax.random.split(key, 4)

    cin, cout, ksz = 4, 8, 3
    bound = 1.0 / np.sqrt(cin * ksz * ksz)            # PyTorch-style init range
    weight = jax.random.uniform(k_w, (cout, cin, ksz, ksz), jnp.float32,
                                -bound, bound)
    bias = jax.random.uniform(k_b, (cout,), jnp.float32, -bound, bound)

    # Config 1: the small canonical case.  Config 2 exercises stride=2, >=2
    # grid steps (both v7x TCs) and the padded last batch tile.
    configs = [(2, 16, 16, 1, k_x1), (20, 16, 16, 2, k_x2)]

    for n, h, w, stride, kx in configs:
        x = jax.random.uniform(kx, (n, cin, h, w), dtype=jnp.float32)
        fwd = make_conv2dsame(weight, bias, h, w, stride=stride)
        out = fwd(x)
        jax.block_until_ready(out)

        ref = conv2dsame_reference(x, weight, bias, stride=stride)
        assert out.shape == ref.shape, (out.shape, ref.shape)
        # Tolerance covers bf16 MXU operands with f32 accumulation vs. the f32
        # XLA conv; structural bugs would be ~100x larger.
        assert jnp.allclose(out, ref, atol=1e-2, rtol=1e-2), \
            float(jnp.max(jnp.abs(out - ref)))

    print("KERNEL_OK")
</pallas_src>

<mosaic_0001>
module attributes {stable_mosaic.version = 11 : i64} {
  func.func @_conv2dsame_kernel(%arg0: i32, %arg1: memref<8x1024xbf16, #tpu.memory_space<vmem>>, %arg2: memref<1024x2048xbf16, #tpu.memory_space<vmem>>, %arg3: memref<1x2048xf32, #tpu.memory_space<vmem>>, %arg4: memref<8x2048xf32, #tpu.memory_space<vmem>>) attributes {dimension_semantics = [#tpu.dimension_semantics<parallel>], iteration_bounds = array<i64: 1>, scalar_prefetch = 0 : i64, scratch_operands = 0 : i64, tpu.core_type = #tpu.core_type<tc>, window_params = [{transform_indices = @transform_0, window_bounds = array<i64: 8, 1024>}, {pipeline_mode = #tpu.pipeline_mode<synchronous>, transform_indices = @transform_1, window_bounds = array<i64: 1024, 2048>}, {pipeline_mode = #tpu.pipeline_mode<synchronous>, transform_indices = @transform_2, window_bounds = array<i64: 1, 2048>}, {transform_indices = @transform_3, window_bounds = array<i64: 8, 2048>}]} {
    %c0 = arith.constant 0 : index
    %c0_0 = arith.constant 0 : index
    %0 = vector.load %arg1[%c0, %c0_0] : memref<8x1024xbf16, #tpu.memory_space<vmem>>, vector<8x1024xbf16>
    %c0_1 = arith.constant 0 : index
    %c0_2 = arith.constant 0 : index
    %1 = vector.load %arg2[%c0_1, %c0_2] : memref<1024x2048xbf16, #tpu.memory_space<vmem>>, vector<1024x2048xbf16>
    %cst = arith.constant dense<0.000000e+00> : vector<8x2048xf32>
    %2 = tpu.matmul %0, %1, %cst {dimension_numbers = #tpu.dot_dimension_numbers<[1], [0], [0], [1], [0, 0, 1, 1], [], []>} : vector<8x1024xbf16>, vector<1024x2048xbf16>, vector<8x2048xf32> -> vector<8x2048xf32>
    %c0_3 = arith.constant 0 : index
    %c0_4 = arith.constant 0 : index
    %3 = vector.load %arg3[%c0_3, %c0_4] : memref<1x2048xf32, #tpu.memory_space<vmem>>, vector<1x2048xf32>
    %4 = vector.broadcast %3 : vector<1x2048xf32> to vector<8x2048xf32>
    %5 = arith.addf %2, %4 : vector<8x2048xf32>
    %c0_5 = arith.constant 0 : index
    %c0_6 = arith.constant 0 : index
    %6 = vector.load %arg4[%c0_5, %c0_6] : memref<8x2048xf32, #tpu.memory_space<vmem>>, vector<8x2048xf32>
    tpu.vector_store %arg4[%c0_5, %c0_6], %5 {strides = array<i32>} : memref<8x2048xf32, #tpu.memory_space<vmem>>, vector<8x2048xf32>,
    return
  }
  func.func @transform_0(%arg0: i32) -> (i32, i32) {
    %c0_i32 = arith.constant 0 : i32
    %c0_i32_0 = arith.constant 0 : i32
    return %arg0, %c0_i32 : i32, i32
  }
  func.func @transform_1(%arg0: i32) -> (i32, i32) {
    %c0_i32 = arith.constant 0 : i32
    %c0_i32_0 = arith.constant 0 : i32
    %c0_i32_1 = arith.constant 0 : i32
    return %c0_i32, %c0_i32_0 : i32, i32
  }
  func.func @transform_2(%arg0: i32) -> (i32, i32) {
    %c0_i32 = arith.constant 0 : i32
    %c0_i32_0 = arith.constant 0 : i32
    %c0_i32_1 = arith.constant 0 : i32
    return %c0_i32, %c0_i32_0 : i32, i32
  }
  func.func @transform_3(%arg0: i32) -> (i32, i32) {
    %c0_i32 = arith.constant 0 : i32
    %c0_i32_0 = arith.constant 0 : i32
    return %arg0, %c0_i32 : i32, i32
  }
}

</mosaic_0001>

<bundles_post_ra>
// kernel: forward.1
= control target key start
LH: loop header
LB: loop body
LE: loop exit
PB: predicated region body
PF: predicated region fallthrough
CT: control target
= control target key end

     0   :  { %s12076_s1 = inlined_call_operand.vmem [shape: bf16[1024,2048], index: 1, kind: input, shape index: {}]   ;;  %s12077_s0 = inlined_call_operand.vmem [shape: bf16[8,1024], index: 0, kind: input, shape index: {}]   ;;  %s12078_s2 = inlined_call_operand.vmem [shape: f32[1,2048], index: 2, kind: input, shape index: {}]   ;;  %s12079_s3 = inlined_call_operand.vmem [shape: f32[8,2048], index: 3, kind: output, shape index: {}]  }
   0x1   :  { %v18_v0 = vld [vmem:[%s12076_s1] sm:$0xff]  ;;  %v19_v2 = vld [vmem:[%s12076_s1 + $0x8] sm:$0xff] }
   0x2   :  { %v26_v1 = vld [vmem:[%s12076_s1 + $0x40] sm:$0xff]  ;;  %v27_v4 = vld [vmem:[%s12076_s1 + $0x48] sm:$0xff] }
   0x3   :  { %v7615_v3 = vcombine.high %v18_v0, %v26_v1  ;;  %v7614_v5 = vcombine.low %v18_v0, %v26_v1  ;;  %v34_v6 = vld [vmem:[%s12076_s1 + $0x80] sm:$0xff]  ;;  %v7617_v8 = vcombine.high %v19_v2, %v27_v4  ;;  %v7616_v9 = vcombine.low %v19_v2, %v27_v4  ;;  %v35_v11 = vld [vmem:[%s12076_s1 + $0x88] sm:$0xff] }
   0x4   :  { %v42_v7 = vld [vmem:[%s12076_s1 + $0xc0] sm:$0xff]  ;;  %v43_v12 = vld [vmem:[%s12076_s1 + $0xc8] sm:$0xff] }
   0x5   :  { %v7631_v10 = vcombine.high %v34_v6, %v42_v7  ;;  %v50_v13 = vld [vmem:[%s12076_s1 + $0x100] sm:$0xff]  ;;  %6274 = vmatprep.subr.bf16.mxu0 %v7615_v3  ;;  %v7633_v14 = vcombine.high %v35_v11, %v43_v12  ;;  %v51_v16 = vld [vmem:[%s12076_s1 + $0x108] sm:$0xff]  ;;  %6438 = vmatprep.subr.bf16.mxu1 %v7617_v8  ;;  %v7630_v18 = vcombine.low %v34_v6, %v42_v7 }
   0x6   :  { %v58_v15 = vld [vmem:[%s12076_s1 + $0x140] sm:$0xff]  ;;  %v59_v17 = vld [vmem:[%s12076_s1 + $0x148] sm:$0xff]  ;;  %6275 = vmatpush1.bf16.msra.mxu0 %v7614_v5  ;;  %6439 = vmatpush1.bf16.msra.mxu1 %v7616_v9  ;;  %v7632_v19 = vcombine.low %v35_v11, %v43_v12 }
   0x7   :  { %6276 = vmatprep.subr.bf16.mxu0 %v7631_v10  ;;  %v7647_v20 = vcombine.high %v50_v13, %v58_v15  ;;  %6440 = vmatprep.subr.bf16.mxu1 %v7633_v14  ;;  %v7649_v21 = vcombine.high %v51_v16, %v59_v17  ;;  %v66_v22 = vld [vmem:[%s12076_s1 + $0x180] sm:$0xff]  ;;  %v67_v24 = vld [vmem:[%s12076_s1 + $0x188] sm:$0xff]  ;;  %v7646_v26 = vcombine.low %v50_v13, %v58_v15 }
   0x8   :  { %v74_v23 = vld [vmem:[%s12076_s1 + $0x1c0] sm:$0xff]  ;;  %v75_v25 = vld [vmem:[%s12076_s1 + $0x1c8] sm:$0xff]  ;;  %v7648_v27 = vcombine.low %v51_v16, %v59_v17 }
   0x9   :  { %v7663_v28 = vcombine.high %v66_v22, %v74_v23  ;;  %v7665_v29 = vcombine.high %v67_v24, %v75_v25  ;;  %v82_v30 = vld [vmem:[%s12076_s1 + $0x200] sm:$0xff]  ;;  %v83_v32 = vld [vmem:[%s12076_s1 + $0x208] sm:$0xff]  ;;  %v7662_v34 = vcombine.low %v66_v22, %v74_v23  ;;  %v7664_v35 = vcombine.low %v67_v24, %v75_v25 }
   0xa   :  { %6277 = vmatpush1.bf16.msra.mxu0 %v7630_v18  ;;  %6441 = vmatpush1.bf16.msra.mxu1 %v7632_v19  ;;  %v90_v31 = vld [vmem:[%s12076_s1 + $0x240] sm:$0xff]  ;;  %v91_v33 = vld [vmem:[%s12076_s1 + $0x248] sm:$0xff] }
   0xb   :  { %6278 = vmatprep.subr.bf16.mxu0 %v7647_v20  ;;  %6442 = vmatprep.subr.bf16.mxu1 %v7649_v21  ;;  %v7679_v36 = vcombine.high %v82_v30, %v90_v31  ;;  %v7681_v37 = vcombine.high %v83_v32, %v91_v33  ;;  %v98_v38 = vld [vmem:[%s12076_s1 + $0x280] sm:$0xff]  ;;  %v99_v40 = vld [vmem:[%s12076_s1 + $0x288] sm:$0xff]  ;;  %v7678_v42 = vcombine.low %v82_v30, %v90_v31 }
   0xc   :  { %v106_v39 = vld [vmem:[%s12076_s1 + $0x2c0] sm:$0xff]  ;;  %v107_v41 = vld [vmem:[%s12076_s1 + $0x2c8] sm:$0xff]  ;;  %v7680_v43 = vcombine.low %v83_v32, %v91_v33 }
   0xd   :  { %v7695_v44 = vcombine.high %v98_v38, %v106_v39  ;;  %v7697_v45 = vcombine.high %v99_v40, %v107_v41  ;;  %v114_v46 = vld [vmem:[%s12076_s1 + $0x300] sm:$0xff]  ;;  %v115_v48 = vld [vmem:[%s12076_s1 + $0x308] sm:$0xff]  ;;  %v7694_v50 = vcombine.low %v98_v38, %v106_v39  ;;  %v7696_v51 = vcombine.low %v99_v40, %v107_v41 }
   0xe   :  { %6279 = vmatpush1.bf16.msra.mxu0 %v7646_v26  ;;  %6443 = vmatpush1.bf16.msra.mxu1 %v7648_v27  ;;  %v122_v47 = vld [vmem:[%s12076_s1 + $0x340] sm:$0xff]  ;;  %v123_v49 = vld [vmem:[%s12076_s1 + $0x348] sm:$0xff] }
   0xf   :  { %6280 = vmatprep.subr.bf16.mxu0 %v7663_v28  ;;  %6444 = vmatprep.subr.bf16.mxu1 %v7665_v29  ;;  %v7711_v52 = vcombine.high %v114_v46, %v122_v47  ;;  %v8866_v53 = vld [vmem:[%s12077_s0] sm:$0xff]  ;;  %v7713_v54 = vcombine.high %v115_v48, %v123_v49  ;;  %v131_v58 = vld [vmem:[%s12076_s1 + $0x388] sm:$0xff]  ;;  %v7710_v60 = vcombine.low %v114_v46, %v122_v47 }
  0x10   :  { %v130_v55 = vld [vmem:[%s12076_s1 + $0x380] sm:$0xff]  ;;  %v8876_v57 = vcombine.high %v8866_v53, %v8866_v53  ;;  %v139_v59 = vld [vmem:[%s12076_s1 + $0x3c8] sm:$0xff]  ;;  %v7712_v61 = vcombine.low %v115_v48, %v123_v49 }
  0x11   :  { %v138_v56 = vld [vmem:[%s12076_s1 + $0x3c0] sm:$0xff]  ;;  %v7729_v63 = vcombine.high %v131_v58, %v139_v59  ;;  %v147_v2 = vld [vmem:[%s12076_s1 + $0x408] sm:$0xff]  ;;  %v7728_v5 = vcombine.low %v131_v58, %v139_v59 }
  0x12   :  { %6281 = vmatpush1.bf16.msra.mxu0 %v7662_v34  ;;  %6445 = vmatpush1.bf16.msra.mxu1 %v7664_v35  ;;  %v7727_v62 = vcombine.high %v130_v55, %v138_v56  ;;  %v146_v0 = vld [vmem:[%s12076_s1 + $0x400] sm:$0xff]  ;;  %v155_v3 = vld [vmem:[%s12076_s1 + $0x448] sm:$0xff]  ;;  %v7726_v4 = vcombine.low %v130_v55, %v138_v56 }
  0x13   :  { %6282 = vmatprep.subr.bf16.mxu0 %v7679_v36  ;;  %6446 = vmatprep.subr.bf16.mxu1 %v7681_v37  ;;  %v154_v1 = vld [vmem:[%s12076_s1 + $0x440] sm:$0xff]  ;;  %v7745_v7 = vcombine.high %v147_v2, %v155_v3  ;;  %v163_v10 = vld [vmem:[%s12076_s1 + $0x488] sm:$0xff]  ;;  %v7744_v13 = vcombine.low %v147_v2, %v155_v3 }
  0x14   :  { %6306 = vmatprep.mubr.bf16.mxu0 %v8876_v57  ;;  %6470 = vmatprep.mubr.bf16.mxu1 %v8876_v57  ;;  %v7743_v6 = vcombine.high %v146_v0, %v154_v1  ;;  %v162_v8 = vld [vmem:[%s12076_s1 + $0x480] sm:$0xff]  ;;  %v171_v11 = vld [vmem:[%s12076_s1 + $0x4c8] sm:$0xff]  ;;  %v7742_v12 = vcombine.low %v146_v0, %v154_v1 }
  0x15   :  { %v170_v9 = vld [vmem:[%s12076_s1 + $0x4c0] sm:$0xff]  ;;  %v7761_v15 = vcombine.high %v163_v10, %v171_v11  ;;  %v179_v18 = vld [vmem:[%s12076_s1 + $0x508] sm:$0xff]  ;;  %v7760_v21 = vcombine.low %v163_v10, %v171_v11 }
  0x16   :  { %6283 = vmatpush1.bf16.msra.mxu0 %v7678_v42  ;;  %6447 = vmatpush1.bf16.msra.mxu1 %v7680_v43  ;;  %v7759_v14 = vcombine.high %v162_v8, %v170_v9  ;;  %v178_v16 = vld [vmem:[%s12076_s1 + $0x500] sm:$0xff]  ;;  %v187_v19 = vld [vmem:[%s12076_s1 + $0x548] sm:$0xff]  ;;  %v7758_v20 = vcombine.low %v162_v8, %v170_v9 }
  0x17   :  { %6284 = vmatprep.subr.bf16.mxu0 %v7695_v44  ;;  %6448 = vmatprep.subr.bf16.mxu1 %v7697_v45  ;;  %v186_v17 = vld [vmem:[%s12076_s1 + $0x540] sm:$0xff]  ;;  %v7777_v23 = vcombine.high %v179_v18, %v187_v19  ;;  %v195_v26 = vld [vmem:[%s12076_s1 + $0x588] sm:$0xff]  ;;  %v7776_v29 = vcombine.low %v179_v18, %v187_v19 }
  0x18   :  { %v7775_v22 = vcombine.high %v178_v16, %v186_v17  ;;  %v194_v24 = vld [vmem:[%s12076_s1 + $0x580] sm:$0xff]  ;;  %v203_v27 = vld [vmem:[%s12076_s1 + $0x5c8] sm:$0xff]  ;;  %v7774_v28 = vcombine.low %v178_v16, %v186_v17 }
  0x19   :  { %v202_v25 = vld [vmem:[%s12076_s1 + $0x5c0] sm:$0xff]  ;;  %v7793_v31 = vcombine.high %v195_v26, %v203_v27  ;;  %v211_v34 = vld [vmem:[%s12076_s1 + $0x608] sm:$0xff]  ;;  %v7792_v37 = vcombine.low %v195_v26, %v203_v27 }
  0x1a   :  { %6285 = vmatpush1.bf16.msra.mxu0 %v7694_v50  ;;  %6449 = vmatpush1.bf16.msra.mxu1 %v7696_v51  ;;  %v7791_v30 = vcombine.high %v194_v24, %v202_v25  ;;  %v210_v32 = vld [vmem:[%s12076_s1 + $0x600] sm:$0xff]  ;;  %v219_v35 = vld [vmem:[%s12076_s1 + $0x648] sm:$0xff]  ;;  %v7790_v36 = vcombine.low %v194_v24, %v202_v25 }
  0x1b   :  { %6286 = vmatprep.subr.bf16.mxu0 %v7711_v52  ;;  %6450 = vmatprep.subr.bf16.mxu1 %v7713_v54  ;;  %v218_v33 = vld [vmem:[%s12076_s1 + $0x640] sm:$0xff]  ;;  %v7809_v39 = vcombine.high %v211_v34, %v219_v35  ;;  %v227_v42 = vld [vmem:[%s12076_s1 + $0x688] sm:$0xff]  ;;  %v7808_v45 = vcombine.low %v211_v34, %v219_v35 }
  0x1c   :  { %v7807_v38 = vcombine.high %v210_v32, %v218_v33  ;;  %v226_v40 = vld [vmem:[%s12076_s1 + $0x680] sm:$0xff]  ;;  %v235_v43 = vld [vmem:[%s12076_s1 + $0x6c8] sm:$0xff]  ;;  %v7806_v44 = vcombine.low %v210_v32, %v218_v33 }
  0x1d   :  { %v234_v41 = vld [vmem:[%s12076_s1 + $0x6c0] sm:$0xff]  ;;  %v7825_v47 = vcombine.high %v227_v42, %v235_v43  ;;  %v243_v50 = vld [vmem:[%s12076_s1 + $0x708] sm:$0xff]  ;;  %v7824_v54 = vcombine.low %v227_v42, %v235_v43 }
  0x1e   :  { %6287 = vmatpush1.bf16.msra.mxu0 %v7710_v60  ;;  %6451 = vmatpush1.bf16.msra.mxu1 %v7712_v61  ;;  %v7823_v46 = vcombine.high %v226_v40, %v234_v41  ;;  %v242_v48 = vld [vmem:[%s12076_s1 + $0x700] sm:$0xff]  ;;  %v251_v51 = vld [vmem:[%s12076_s1 + $0x748] sm:$0xff]  ;;  %v7822_v52 = vcombine.low %v226_v40, %v234_v41 }
  0x1f   :  { %6288 = vmatprep.subr.bf16.mxu0 %v7727_v62  ;;  %6452 = vmatprep.subr.bf16.mxu1 %v7729_v63  ;;  %v250_v49 = vld [vmem:[%s12076_s1 + $0x740] sm:$0xff]  ;;  %v7841_v56 = vcombine.high %v243_v50, %v251_v51  ;;  %v259_v60 = vld [vmem:[%s12076_s1 + $0x788] sm:$0xff]  ;;  %v7840_v63 = vcombine.low %v243_v50, %v251_v51 }
  0x20   :  { %v7839_v55 = vcombine.high %v242_v48, %v250_v49  ;;  %v258_v58 = vld [vmem:[%s12076_s1 + $0x780] sm:$0xff]  ;;  %v267_v61 = vld [vmem:[%s12076_s1 + $0x7c8] sm:$0xff]  ;;  %v7838_v62 = vcombine.low %v242_v48, %v250_v49 }
  0x21   :  { %v266_v59 = vld [vmem:[%s12076_s1 + $0x7c0] sm:$0xff]  ;;  %v7857_v1 = vcombine.high %v259_v60, %v267_v61 }
  0x22   :  { %6289 = vmatpush1.bf16.msra.mxu0 %v7726_v4  ;;  %6453 = vmatpush1.bf16.msra.mxu1 %v7728_v5  ;;  %v7855_v0 = vcombine.high %v258_v58, %v266_v59  ;;  %v274_v2 = vld [vmem:[%s12076_s1 + $0x800] sm:$0xff]  ;;  %v275_v4 = vld [vmem:[%s12076_s1 + $0x808] sm:$0xff] }
  0x23   :  { %6290 = vmatprep.subr.bf16.mxu0 %v7743_v6  ;;  %6454 = vmatprep.subr.bf16.mxu1 %v7745_v7  ;;  %v282_v3 = vld [vmem:[%s12076_s1 + $0x840] sm:$0xff]  ;;  %v283_v5 = vld [vmem:[%s12076_s1 + $0x848] sm:$0xff]  ;;  %v7854_v6 = vcombine.low %v258_v58, %v266_v59  ;;  %v7856_v7 = vcombine.low %v259_v60, %v267_v61 }
  0x24   :  { %v7871_v8 = vcombine.high %v274_v2, %v282_v3  ;;  %v7873_v9 = vcombine.high %v275_v4, %v283_v5  ;;  %v290_v10 = vld [vmem:[%s12076_s1 + $0x880] sm:$0xff]  ;;  %v7870_v16 = vcombine.low %v274_v2, %v282_v3  ;;  %v7872_v17 = vcombine.low %v275_v4, %v283_v5 }
  0x25   :  { %v298_v11 = vld [vmem:[%s12076_s1 + $0x8c0] sm:$0xff] }
  0x26   :  { %6291 = vmatpush1.bf16.msra.mxu0 %v7742_v12  ;;  %6455 = vmatpush1.bf16.msra.mxu1 %v7744_v13  ;;  %v9002_v12 = vcombine.low %v8866_v53, %v8866_v53  ;;  %v291_v13 = vld [vmem:[%s12076_s1 + $0x888] sm:$0xff]  ;;  %v7887_v53 = vcombine.high %v290_v10, %v298_v11  ;;  %v306_v19 = vld [vmem:[%s12076_s1 + $0x900] sm:$0xff]  ;;  %v7886_v24 = vcombine.low %v290_v10, %v298_v11 }
  0x27   :  { %6292 = vmatprep.subr.bf16.mxu0 %v7759_v14  ;;  %6456 = vmatprep.subr.bf16.mxu1 %v7761_v15  ;;  %v299_v14 = vld [vmem:[%s12076_s1 + $0x8c8] sm:$0xff] }
  0x28   :  { %v9013_v15 = vld [vmem:[%s12077_s0 + $0x8] sm:$0xff]  ;;  %v7889_v18 = vcombine.high %v291_v13, %v299_v14  ;;  %v7888_v25 = vcombine.low %v291_v13, %v299_v14 }
  0x2a   :  { %6293 = vmatpush1.bf16.msra.mxu0 %v7758_v20  ;;  %6457 = vmatpush1.bf16.msra.mxu1 %v7760_v21  ;;  %v314_v20 = vld [vmem:[%s12076_s1 + $0x940] sm:$0xff]  ;;  %v9023_v21 = vcombine.high %v9013_v15, %v9013_v15 }
  0x2b   :  { %6294 = vmatprep.subr.bf16.mxu0 %v7775_v22  ;;  %6458 = vmatprep.subr.bf16.mxu1 %v7777_v23  ;;  %v307_v22 = vld [vmem:[%s12076_s1 + $0x908] sm:$0xff]  ;;  %v7903_v26 = vcombine.high %v306_v19, %v314_v20  ;;  %v7902_v32 = vcombine.low %v306_v19, %v314_v20 }
  0x2c   :  { %v315_v23 = vld [vmem:[%s12076_s1 + $0x948] sm:$0xff] }
  0x2d   :  { %v7905_v27 = vcombine.high %v307_v22, %v315_v23  ;;  %v7904_v33 = vcombine.low %v307_v22, %v315_v23 }
  0x2e   :  { %6295 = vmatpush1.bf16.msra.mxu0 %v7774_v28  ;;  %6459 = vmatpush1.bf16.msra.mxu1 %v7776_v29  ;;  %v322_v28 = vld [vmem:[%s12076_s1 + $0x980] sm:$0xff] }
  0x2f   :  { %6296 = vmatprep.subr.bf16.mxu0 %v7791_v30  ;;  %6460 = vmatprep.subr.bf16.mxu1 %v7793_v31  ;;  %v330_v29 = vld [vmem:[%s12076_s1 + $0x9c0] sm:$0xff]  ;;  %v323_v30 = vld [vmem:[%s12076_s1 + $0x988] sm:$0xff] }
  0x30   :  { %v331_v31 = vld [vmem:[%s12076_s1 + $0x9c8] sm:$0xff]  ;;  %v7919_v34 = vcombine.high %v322_v28, %v330_v29  ;;  %v7918_v40 = vcombine.low %v322_v28, %v330_v29 }
  0x31   :  { %v7921_v35 = vcombine.high %v323_v30, %v331_v31  ;;  %v7920_v41 = vcombine.low %v323_v30, %v331_v31 }
  0x32   :  { %6297 = vmatpush1.bf16.msra.mxu0 %v7790_v36  ;;  %6461 = vmatpush1.bf16.msra.mxu1 %v7792_v37  ;;  %v338_v36 = vld [vmem:[%s12076_s1 + $0xa00] sm:$0xff] }
  0x33   :  { %6298 = vmatprep.subr.bf16.mxu0 %v7807_v38  ;;  %6462 = vmatprep.subr.bf16.mxu1 %v7809_v39  ;;  %v346_v37 = vld [vmem:[%s12076_s1 + $0xa40] sm:$0xff]  ;;  %v339_v38 = vld [vmem:[%s12076_s1 + $0xa08] sm:$0xff] }
  0x34   :  { %v347_v39 = vld [vmem:[%s12076_s1 + $0xa48] sm:$0xff]  ;;  %v7935_v42 = vcombine.high %v338_v36, %v346_v37  ;;  %v7934_v48 = vcombine.low %v338_v36, %v346_v37 }
  0x35   :  { %v7937_v43 = vcombine.high %v339_v38, %v347_v39  ;;  %v7936_v49 = vcombine.low %v339_v38, %v347_v39 }
  0x36   :  { %6299 = vmatpush1.bf16.msra.mxu0 %v7806_v44  ;;  %6463 = vmatpush1.bf16.msra.mxu1 %v7808_v45  ;;  %v354_v44 = vld [vmem:[%s12076_s1 + $0xa80] sm:$0xff] }
  0x37   :  { %6300 = vmatprep.subr.bf16.mxu0 %v7823_v46  ;;  %6464 = vmatprep.subr.bf16.mxu1 %v7825_v47  ;;  %v362_v45 = vld [vmem:[%s12076_s1 + $0xac0] sm:$0xff]  ;;  %v355_v46 = vld [vmem:[%s12076_s1 + $0xa88] sm:$0xff] }
  0x38   :  { %v363_v47 = vld [vmem:[%s12076_s1 + $0xac8] sm:$0xff]  ;;  %v7951_v50 = vcombine.high %v354_v44, %v362_v45  ;;  %v7950_v58 = vcombine.low %v354_v44, %v362_v45 }
  0x39   :  { %v7953_v51 = vcombine.high %v355_v46, %v363_v47  ;;  %v7952_v59 = vcombine.low %v355_v46, %v363_v47 }
  0x3a   :  { %6301 = vmatpush1.bf16.msra.mxu0 %v7822_v52  ;;  %6465 = vmatpush1.bf16.msra.mxu1 %v7824_v54  ;;  %v370_v52 = vld [vmem:[%s12076_s1 + $0xb00] sm:$0xff] }
  0x3b   :  { %6302 = vmatprep.subr.bf16.mxu0 %v7839_v55  ;;  %6466 = vmatprep.subr.bf16.mxu1 %v7841_v56  ;;  %v378_v54 = vld [vmem:[%s12076_s1 + $0xb40] sm:$0xff]  ;;  %v371_v55 = vld [vmem:[%s12076_s1 + $0xb08] sm:$0xff] }
  0x3c   :  { %v379_v56 = vld [vmem:[%s12076_s1 + $0xb48] sm:$0xff]  ;;  %v7967_v60 = vcombine.high %v370_v52, %v378_v54  ;;  %v7966_v2 = vcombine.low %v370_v52, %v378_v54 }
  0x3d   :  { %v7969_v61 = vcombine.high %v371_v55, %v379_v56  ;;  %v7968_v3 = vcombine.low %v371_v55, %v379_v56 }
  0x3e   :  { %6303 = vmatpush1.bf16.msra.mxu0 %v7838_v62  ;;  %6467 = vmatpush1.bf16.msra.mxu1 %v7840_v63  ;;  %v386_v62 = vld [vmem:[%s12076_s1 + $0xb80] sm:$0xff] }
  0x3f   :  { %6304 = vmatprep.subr.bf16.mxu0 %v7855_v0  ;;  %6468 = vmatprep.subr.bf16.mxu1 %v7857_v1  ;;  %v394_v63 = vld [vmem:[%s12076_s1 + $0xbc0] sm:$0xff]  ;;  %v387_v0 = vld [vmem:[%s12076_s1 + $0xb88] sm:$0xff] }
  0x40   :  { %v395_v1 = vld [vmem:[%s12076_s1 + $0xbc8] sm:$0xff]  ;;  %v7983_v4 = vcombine.high %v386_v62, %v394_v63  ;;  %v7982_v10 = vcombine.low %v386_v62, %v394_v63 }
  0x41   :  { %v7985_v5 = vcombine.high %v387_v0, %v395_v1  ;;  %v7984_v11 = vcombine.low %v387_v0, %v395_v1 }
  0x42   :  { %6305 = vmatpush1.bf16.msra.mxu0 %v7854_v6  ;;  %6469 = vmatpush1.bf16.msra.mxu1 %v7856_v7  ;;  %v402_v6 = vld [vmem:[%s12076_s1 + $0xc00] sm:$0xff] }
  0x43   :  { %6315 = vmatprep.subr.bf16.mxu0 %v7871_v8  ;;  %6479 = vmatprep.subr.bf16.mxu1 %v7873_v9  ;;  %v410_v7 = vld [vmem:[%s12076_s1 + $0xc40] sm:$0xff]  ;;  %v403_v8 = vld [vmem:[%s12076_s1 + $0xc08] sm:$0xff] }
  0x44   :  { %v411_v9 = vld [vmem:[%s12076_s1 + $0xc48] sm:$0xff]  ;;  %v7999_v13 = vcombine.high %v402_v6, %v410_v7  ;;  %v7998_v19 = vcombine.low %v402_v6, %v410_v7 }
  0x45   :  { %6307 = vmatmul.mubr.bf16.vlgmr.msra.gmra.mrb[0].mxu0 %v9002_v12  ;;  %6471 = vmatmul.mubr.bf16.vlgmr.msra.gmra.mrb[0].mxu1 %v9002_v12  ;;  %v8001_v14 = vcombine.high %v403_v8, %v411_v9  ;;  %v8000_v20 = vcombine.low %v403_v8, %v411_v9 }
  0x46   :  { %6316 = vmatpush1.bf16.msra.mxu0 %v7870_v16  ;;  %6480 = vmatpush1.bf16.msra.mxu1 %v7872_v17  ;;  %v418_v16 = vld [vmem:[%s12076_s1 + $0xc80] sm:$0xff] }
  0x47   :  { %6317 = vmatprep.subr.bf16.mxu0 %v7887_v53  ;;  %6481 = vmatprep.subr.bf16.mxu1 %v7889_v18  ;;  %v426_v17 = vld [vmem:[%s12076_s1 + $0xcc0] sm:$0xff]  ;;  %v419_v53 = vld [vmem:[%s12076_s1 + $0xc88] sm:$0xff] }
  0x48   :  { %6347 = vmatprep.mubr.bf16.mxu0 %v9023_v21  ;;  %6511 = vmatprep.mubr.bf16.mxu1 %v9023_v21  ;;  %v427_v18 = vld [vmem:[%s12076_s1 + $0xcc8] sm:$0xff]  ;;  %v8015_v22 = vcombine.high %v418_v16, %v426_v17  ;;  %v8014_v28 = vcombine.low %v418_v16, %v426_v17 }
  0x49   :  { %v8017_v23 = vcombine.high %v419_v53, %v427_v18  ;;  %v8016_v29 = vcombine.low %v419_v53, %v427_v18 }
  0x4a   :  { %6318 = vmatpush1.bf16.msra.mxu0 %v7886_v24  ;;  %6482 = vmatpush1.bf16.msra.mxu1 %v7888_v25  ;;  %v434_v24 = vld [vmem:[%s12076_s1 + $0xd00] sm:$0xff] }
  0x4b   :  { %6319 = vmatprep.subr.bf16.mxu0 %v7903_v26  ;;  %6483 = vmatprep.subr.bf16.mxu1 %v7905_v27  ;;  %v442_v25 = vld [vmem:[%s12076_s1 + $0xd40] sm:$0xff]  ;;  %v435_v26 = vld [vmem:[%s12076_s1 + $0xd08] sm:$0xff] }
  0x4c   :  { %v443_v27 = vld [vmem:[%s12076_s1 + $0xd48] sm:$0xff]  ;;  %v8031_v30 = vcombine.high %v434_v24, %v442_v25  ;;  %v8030_v36 = vcombine.low %v434_v24, %v442_v25  ;;  %v9222_v25 = vld [vmem:[%s12077_s0 + $0x10] sm:$0xff] }
  0x4d   :  { %v8033_v31 = vcombine.high %v435_v26, %v443_v27  ;;  %v8032_v37 = vcombine.low %v435_v26, %v443_v27  ;;  %v555_v24 = vld [vmem:[%s12076_s1 + $0x10c8] sm:$0xff] }
  0x4e   :  { %6320 = vmatpush1.bf16.msra.mxu0 %v7902_v32  ;;  %6484 = vmatpush1.bf16.msra.mxu1 %v7904_v33  ;;  %v450_v32 = vld [vmem:[%s12076_s1 + $0xd80] sm:$0xff] }
  0x4f   :  { %6321 = vmatprep.subr.bf16.mxu0 %v7919_v34  ;;  %6485 = vmatprep.subr.bf16.mxu1 %v7921_v35  ;;  %v458_v33 = vld [vmem:[%s12076_s1 + $0xdc0] sm:$0xff]  ;;  %v451_v34 = vld [vmem:[%s12076_s1 + $0xd88] sm:$0xff] }
  0x50   :  { %v459_v35 = vld [vmem:[%s12076_s1 + $0xdc8] sm:$0xff]  ;;  %v8047_v38 = vcombine.high %v450_v32, %v458_v33  ;;  %v8046_v44 = vcombine.low %v450_v32, %v458_v33 }
  0x51   :  { %v8049_v39 = vcombine.high %v451_v34, %v459_v35  ;;  %v8048_v45 = vcombine.low %v451_v34, %v459_v35  ;;  %v563_v32 = vld [vmem:[%s12076_s1 + $0x1108] sm:$0xff] }
  0x52   :  { %6322 = vmatpush1.bf16.msra.mxu0 %v7918_v40  ;;  %6486 = vmatpush1.bf16.msra.mxu1 %v7920_v41  ;;  %v466_v40 = vld [vmem:[%s12076_s1 + $0xe00] sm:$0xff]  ;;  %v571_v33 = vld [vmem:[%s12076_s1 + $0x1148] sm:$0xff] }
  0x53   :  { %6323 = vmatprep.subr.bf16.mxu0 %v7935_v42  ;;  %6487 = vmatprep.subr.bf16.mxu1 %v7937_v43  ;;  %v474_v41 = vld [vmem:[%s12076_s1 + $0xe40] sm:$0xff]  ;;  %v467_v42 = vld [vmem:[%s12076_s1 + $0xe08] sm:$0xff] }
  0x54   :  { %v475_v43 = vld [vmem:[%s12076_s1 + $0xe48] sm:$0xff]  ;;  %v8063_v46 = vcombine.high %v466_v40, %v474_v41  ;;  %v8062_v52 = vcombine.low %v466_v40, %v474_v41 }
  0x55   :  { %v8065_v47 = vcombine.high %v467_v42, %v475_v43  ;;  %v8064_v54 = vcombine.low %v467_v42, %v475_v43  ;;  %v579_v40 = vld [vmem:[%s12076_s1 + $0x1188] sm:$0xff]  ;;  %v8160_v43 = vcombine.low %v563_v32, %v571_v33 }
  0x56   :  { %6324 = vmatpush1.bf16.msra.mxu0 %v7934_v48  ;;  %6488 = vmatpush1.bf16.msra.mxu1 %v7936_v49  ;;  %v482_v48 = vld [vmem:[%s12076_s1 + $0xe80] sm:$0xff]  ;;  %v587_v41 = vld [vmem:[%s12076_s1 + $0x11c8] sm:$0xff] }
  0x57   :  { %6325 = vmatprep.subr.bf16.mxu0 %v7951_v50  ;;  %6489 = vmatprep.subr.bf16.mxu1 %v7953_v51  ;;  %v490_v49 = vld [vmem:[%s12076_s1 + $0xec0] sm:$0xff]  ;;  %v483_v50 = vld [vmem:[%s12076_s1 + $0xe88] sm:$0xff] }
  0x58   :  { %v491_v51 = vld [vmem:[%s12076_s1 + $0xec8] sm:$0xff]  ;;  %v8079_v55 = vcombine.high %v482_v48, %v490_v49  ;;  %v8078_v62 = vcombine.low %v482_v48, %v490_v49 }
  0x59   :  { %v8081_v56 = vcombine.high %v483_v50, %v491_v51  ;;  %v8080_v63 = vcombine.low %v483_v50, %v491_v51  ;;  %v595_v48 = vld [vmem:[%s12076_s1 + $0x1208] sm:$0xff]  ;;  %v8176_v51 = vcombine.low %v579_v40, %v587_v41 }
  0x5a   :  { %6326 = vmatpush1.bf16.msra.mxu0 %v7950_v58  ;;  %6490 = vmatpush1.bf16.msra.mxu1 %v7952_v59  ;;  %v498_v58 = vld [vmem:[%s12076_s1 + $0xf00] sm:$0xff]  ;;  %v603_v49 = vld [vmem:[%s12076_s1 + $0x1248] sm:$0xff] }
  0x5b   :  { %6327 = vmatprep.subr.bf16.mxu0 %v7967_v60  ;;  %6491 = vmatprep.subr.bf16.mxu1 %v7969_v61  ;;  %v506_v59 = vld [vmem:[%s12076_s1 + $0xf40] sm:$0xff]  ;;  %v499_v60 = vld [vmem:[%s12076_s1 + $0xf08] sm:$0xff] }
  0x5c   :  { %v507_v61 = vld [vmem:[%s12076_s1 + $0xf48] sm:$0xff]  ;;  %v8095_v0 = vcombine.high %v498_v58, %v506_v59  ;;  %v8094_v6 = vcombine.low %v498_v58, %v506_v59 }
  0x5d   :  { %v8097_v1 = vcombine.high %v499_v60, %v507_v61  ;;  %v8096_v7 = vcombine.low %v499_v60, %v507_v61  ;;  %v611_v58 = vld [vmem:[%s12076_s1 + $0x1288] sm:$0xff]  ;;  %v8192_v61 = vcombine.low %v595_v48, %v603_v49 }
  0x5e   :  { %6328 = vmatpush1.bf16.msra.mxu0 %v7966_v2  ;;  %6492 = vmatpush1.bf16.msra.mxu1 %v7968_v3  ;;  %v514_v2 = vld [vmem:[%s12076_s1 + $0xf80] sm:$0xff]  ;;  %v619_v59 = vld [vmem:[%s12076_s1 + $0x12c8] sm:$0xff] }
  0x5f   :  { %6329 = vmatprep.subr.bf16.mxu0 %v7983_v4  ;;  %6493 = vmatprep.subr.bf16.mxu1 %v7985_v5  ;;  %v522_v3 = vld [vmem:[%s12076_s1 + $0xfc0] sm:$0xff]  ;;  %v515_v4 = vld [vmem:[%s12076_s1 + $0xf88] sm:$0xff] }
  0x60   :  { %v523_v5 = vld [vmem:[%s12076_s1 + $0xfc8] sm:$0xff]  ;;  %v8111_v8 = vcombine.high %v514_v2, %v522_v3  ;;  %v8110_v16 = vcombine.low %v514_v2, %v522_v3 }
  0x61   :  { %v8113_v9 = vcombine.high %v515_v4, %v523_v5  ;;  %v8112_v17 = vcombine.low %v515_v4, %v523_v5  ;;  %v627_v2 = vld [vmem:[%s12076_s1 + $0x1308] sm:$0xff]  ;;  %v8208_v5 = vcombine.low %v611_v58, %v619_v59 }
  0x62   :  { %6330 = vmatpush1.bf16.msra.mxu0 %v7982_v10  ;;  %6494 = vmatpush1.bf16.msra.mxu1 %v7984_v11  ;;  %v530_v10 = vld [vmem:[%s12076_s1 + $0x1000] sm:$0xff]  ;;  %v635_v3 = vld [vmem:[%s12076_s1 + $0x1348] sm:$0xff] }
  0x63   :  { %6331 = vmatprep.subr.bf16.mxu0 %v7999_v13  ;;  %6495 = vmatprep.subr.bf16.mxu1 %v8001_v14  ;;  %v538_v11 = vld [vmem:[%s12076_s1 + $0x1040] sm:$0xff]  ;;  %v531_v13 = vld [vmem:[%s12076_s1 + $0x1008] sm:$0xff] }
  0x64   :  { %v539_v14 = vld [vmem:[%s12076_s1 + $0x1048] sm:$0xff]  ;;  %v8127_v53 = vcombine.high %v530_v10, %v538_v11  ;;  %v8126_v26 = vcombine.low %v530_v10, %v538_v11 }
  0x65   :  { %v8129_v18 = vcombine.high %v531_v13, %v539_v14  ;;  %v8128_v27 = vcombine.low %v531_v13, %v539_v14  ;;  %v643_v10 = vld [vmem:[%s12076_s1 + $0x1388] sm:$0xff]  ;;  %v8224_v14 = vcombine.low %v627_v2, %v635_v3 }
  0x66   :  { %6332 = vmatpush1.bf16.msra.mxu0 %v7998_v19  ;;  %6496 = vmatpush1.bf16.msra.mxu1 %v8000_v20  ;;  %v546_v19 = vld [vmem:[%s12076_s1 + $0x1080] sm:$0xff]  ;;  %v651_v11 = vld [vmem:[%s12076_s1 + $0x13c8] sm:$0xff] }
  0x67   :  { %6333 = vmatprep.subr.bf16.mxu0 %v8015_v22  ;;  %6497 = vmatprep.subr.bf16.mxu1 %v8017_v23  ;;  %v554_v20 = vld [vmem:[%s12076_s1 + $0x10c0] sm:$0xff]  ;;  %v9211_v22 = vcombine.low %v9013_v15, %v9013_v15  ;;  %v547_v23 = vld [vmem:[%s12076_s1 + $0x1088] sm:$0xff] }
  0x68   :  { %v8143_v15 = vcombine.high %v546_v19, %v554_v20  ;;  %v8142_v34 = vcombine.low %v546_v19, %v554_v20  ;;  %v8144_v35 = vcombine.low %v547_v23, %v555_v24  ;;  %v659_v19 = vld [vmem:[%s12076_s1 + $0x1408] sm:$0xff] }
  0x69   :  { %v667_v20 = vld [vmem:[%s12076_s1 + $0x1448] sm:$0xff] }
  0x6a   :  { %6334 = vmatpush1.bf16.msra.mxu0 %v8014_v28  ;;  %6498 = vmatpush1.bf16.msra.mxu1 %v8016_v29  ;;  %v8145_v28 = vcombine.high %v547_v23, %v555_v24  ;;  %v562_v29 = vld [vmem:[%s12076_s1 + $0x1100] sm:$0xff]  ;;  %v8240_v24 = vcombine.low %v643_v10, %v651_v11 }
  0x6b   :  { %6335 = vmatprep.subr.bf16.mxu0 %v8031_v30  ;;  %6499 = vmatprep.subr.bf16.mxu1 %v8033_v31  ;;  %v570_v30 = vld [vmem:[%s12076_s1 + $0x1140] sm:$0xff]  ;;  %v9232_v31 = vcombine.high %v9222_v25, %v9222_v25 }
  0x6c   :  { %v8158_v42 = vcombine.low %v562_v29, %v570_v30 }
  0x6e   :  { %6336 = vmatpush1.bf16.msra.mxu0 %v8030_v36  ;;  %6500 = vmatpush1.bf16.msra.mxu1 %v8032_v37  ;;  %v8159_v36 = vcombine.high %v562_v29, %v570_v30  ;;  %v8161_v37 = vcombine.high %v563_v32, %v571_v33  ;;  %v675_v29 = vld [vmem:[%s12076_s1 + $0x1488] sm:$0xff]  ;;  %v8256_v33 = vcombine.low %v659_v19, %v667_v20 }
  0x6f   :  { %6337 = vmatprep.subr.bf16.mxu0 %v8047_v38  ;;  %6501 = vmatprep.subr.bf16.mxu1 %v8049_v39  ;;  %v578_v38 = vld [vmem:[%s12076_s1 + $0x1180] sm:$0xff]  ;;  %v683_v30 = vld [vmem:[%s12076_s1 + $0x14c8] sm:$0xff] }
  0x70   :  { %v586_v39 = vld [vmem:[%s12076_s1 + $0x11c0] sm:$0xff] }
  0x71   :  { %v8174_v50 = vcombine.low %v578_v38, %v586_v39 }
  0x72   :  { %6338 = vmatpush1.bf16.msra.mxu0 %v8046_v44  ;;  %6502 = vmatpush1.bf16.msra.mxu1 %v8048_v45  ;;  %v8175_v44 = vcombine.high %v578_v38, %v586_v39  ;;  %v8177_v45 = vcombine.high %v579_v40, %v587_v41  ;;  %v691_v38 = vld [vmem:[%s12076_s1 + $0x1508] sm:$0xff]  ;;  %v8272_v41 = vcombine.low %v675_v29, %v683_v30 }
  0x73   :  { %6339 = vmatprep.subr.bf16.mxu0 %v8063_v46  ;;  %6503 = vmatprep.subr.bf16.mxu1 %v8065_v47  ;;  %v594_v46 = vld [vmem:[%s12076_s1 + $0x1200] sm:$0xff]  ;;  %v699_v39 = vld [vmem:[%s12076_s1 + $0x1548] sm:$0xff] }
  0x74   :  { %v602_v47 = vld [vmem:[%s12076_s1 + $0x1240] sm:$0xff] }
  0x75   :  { %v8190_v60 = vcombine.low %v594_v46, %v602_v47 }
  0x76   :  { %6340 = vmatpush1.bf16.msra.mxu0 %v8062_v52  ;;  %6504 = vmatpush1.bf16.msra.mxu1 %v8064_v54  ;;  %v8191_v52 = vcombine.high %v594_v46, %v602_v47  ;;  %v8193_v54 = vcombine.high %v595_v48, %v603_v49  ;;  %v707_v46 = vld [vmem:[%s12076_s1 + $0x1588] sm:$0xff]  ;;  %v8288_v49 = vcombine.low %v691_v38, %v699_v39 }
  0x77   :  { %6341 = vmatprep.subr.bf16.mxu0 %v8079_v55  ;;  %6505 = vmatprep.subr.bf16.mxu1 %v8081_v56  ;;  %v610_v55 = vld [vmem:[%s12076_s1 + $0x1280] sm:$0xff]  ;;  %v715_v47 = vld [vmem:[%s12076_s1 + $0x15c8] sm:$0xff] }
  0x78   :  { %v618_v56 = vld [vmem:[%s12076_s1 + $0x12c0] sm:$0xff] }
  0x79   :  { %v8206_v4 = vcombine.low %v610_v55, %v618_v56 }
  0x7a   :  { %6342 = vmatpush1.bf16.msra.mxu0 %v8078_v62  ;;  %6506 = vmatpush1.bf16.msra.mxu1 %v8080_v63  ;;  %v8207_v62 = vcombine.high %v610_v55, %v618_v56  ;;  %v8209_v63 = vcombine.high %v611_v58, %v619_v59  ;;  %v723_v55 = vld [vmem:[%s12076_s1 + $0x1608] sm:$0xff]  ;;  %v8304_v59 = vcombine.low %v707_v46, %v715_v47 }
  0x7b   :  { %6343 = vmatprep.subr.bf16.mxu0 %v8095_v0  ;;  %6507 = vmatprep.subr.bf16.mxu1 %v8097_v1  ;;  %v626_v0 = vld [vmem:[%s12076_s1 + $0x1300] sm:$0xff]  ;;  %v731_v56 = vld [vmem:[%s12076_s1 + $0x1648] sm:$0xff] }
  0x7c   :  { %v634_v1 = vld [vmem:[%s12076_s1 + $0x1340] sm:$0xff] }
  0x7d   :  { %v8222_v13 = vcombine.low %v626_v0, %v634_v1 }
  0x7e   :  { %6344 = vmatpush1.bf16.msra.mxu0 %v8094_v6  ;;  %6508 = vmatpush1.bf16.msra.mxu1 %v8096_v7  ;;  %v8223_v6 = vcombine.high %v626_v0, %v634_v1  ;;  %v8225_v7 = vcombine.high %v627_v2, %v635_v3  ;;  %v739_v0 = vld [vmem:[%s12076_s1 + $0x1688] sm:$0xff]  ;;  %v8320_v3 = vcombine.low %v723_v55, %v731_v56 }
  0x7f   :  { %6345 = vmatprep.subr.bf16.mxu0 %v8111_v8  ;;  %6509 = vmatprep.subr.bf16.mxu1 %v8113_v9  ;;  %v642_v8 = vld [vmem:[%s12076_s1 + $0x1380] sm:$0xff]  ;;  %v747_v1 = vld [vmem:[%s12076_s1 + $0x16c8] sm:$0xff] }
  0x80   :  { %v650_v9 = vld [vmem:[%s12076_s1 + $0x13c0] sm:$0xff] }
  0x81   :  { %v8238_v23 = vcombine.low %v642_v8, %v650_v9 }
  0x82   :  { %6346 = vmatpush1.bf16.msra.mxu0 %v8110_v16  ;;  %6510 = vmatpush1.bf16.msra.mxu1 %v8112_v17  ;;  %v8239_v16 = vcombine.high %v642_v8, %v650_v9  ;;  %v8241_v17 = vcombine.high %v643_v10, %v651_v11  ;;  %v755_v8 = vld [vmem:[%s12076_s1 + $0x1708] sm:$0xff]  ;;  %v8336_v11 = vcombine.low %v739_v0, %v747_v1 }
  0x83   :  { %6356 = vmatprep.subr.bf16.mxu0 %v8127_v53  ;;  %6520 = vmatprep.subr.bf16.mxu1 %v8129_v18  ;;  %v658_v53 = vld [vmem:[%s12076_s1 + $0x1400] sm:$0xff]  ;;  %v763_v9 = vld [vmem:[%s12076_s1 + $0x1748] sm:$0xff] }
  0x84   :  { %v666_v18 = vld [vmem:[%s12076_s1 + $0x1440] sm:$0xff] }
  0x85   :  { %6348 = vmatmul.mubr.bf16.vlgmr.msra.gmra.mrb[0].mxu0 %v9211_v22  ;;  %6512 = vmatmul.mubr.bf16.vlgmr.msra.gmra.mrb[0].mxu1 %v9211_v22  ;;  %v8254_v32 = vcombine.low %v658_v53, %v666_v18 }
  0x86   :  { %6357 = vmatpush1.bf16.msra.mxu0 %v8126_v26  ;;  %6521 = vmatpush1.bf16.msra.mxu1 %v8128_v27  ;;  %v8255_v26 = vcombine.high %v658_v53, %v666_v18  ;;  %v8257_v27 = vcombine.high %v659_v19, %v667_v20  ;;  %v771_v53 = vld [vmem:[%s12076_s1 + $0x1788] sm:$0xff]  ;;  %v8352_v20 = vcombine.low %v755_v8, %v763_v9 }
  0x87   :  { %6358 = vmatprep.subr.bf16.mxu0 %v8143_v15  ;;  %6522 = vmatprep.subr.bf16.mxu1 %v8145_v28  ;;  %v674_v15 = vld [vmem:[%s12076_s1 + $0x1480] sm:$0xff]  ;;  %v779_v18 = vld [vmem:[%s12076_s1 + $0x17c8] sm:$0xff] }
  0x88   :  { %6388 = vmatprep.mubr.bf16.mxu0 %v9232_v31  ;;  %6552 = vmatprep.mubr.bf16.mxu1 %v9232_v31  ;;  %v682_v28 = vld [vmem:[%s12076_s1 + $0x14c0] sm:$0xff] }
  0x89   :  { %v8270_v40 = vcombine.low %v674_v15, %v682_v28 }
  0x8a   :  { %6359 = vmatpush1.bf16.msra.mxu0 %v8142_v34  ;;  %6523 = vmatpush1.bf16.msra.mxu1 %v8144_v35  ;;  %v8271_v34 = vcombine.high %v674_v15, %v682_v28  ;;  %v8273_v35 = vcombine.high %v675_v29, %v683_v30  ;;  %v787_v15 = vld [vmem:[%s12076_s1 + $0x1808] sm:$0xff]  ;;  %v8368_v30 = vcombine.low %v771_v53, %v779_v18 }
  0x8b   :  { %6360 = vmatprep.subr.bf16.mxu0 %v8159_v36  ;;  %6524 = vmatprep.subr.bf16.mxu1 %v8161_v37  ;;  %v690_v36 = vld [vmem:[%s12076_s1 + $0x1500] sm:$0xff]  ;;  %v795_v28 = vld [vmem:[%s12076_s1 + $0x1848] sm:$0xff] }
  0x8c   :  { %v698_v37 = vld [vmem:[%s12076_s1 + $0x1540] sm:$0xff] }
  0x8d   :  { %v8286_v48 = vcombine.low %v690_v36, %v698_v37 }
  0x8e   :  { %6361 = vmatpush1.bf16.msra.mxu0 %v8158_v42  ;;  %6525 = vmatpush1.bf16.msra.mxu1 %v8160_v43  ;;  %v8287_v42 = vcombine.high %v690_v36, %v698_v37  ;;  %v8289_v43 = vcombine.high %v691_v38, %v699_v39  ;;  %v9420_v36 = vcombine.low %v9222_v25, %v9222_v25  ;;  %v803_v37 = vld [vmem:[%s12076_s1 + $0x1888] sm:$0xff]  ;;  %v9431_v39 = vld [vmem:[%s12077_s0 + $0x18] sm:$0xff] }
  0x8f   :  { %6362 = vmatprep.subr.bf16.mxu0 %v8175_v44  ;;  %6526 = vmatprep.subr.bf16.mxu1 %v8177_v45  ;;  %v706_v44 = vld [vmem:[%s12076_s1 + $0x1580] sm:$0xff]  ;;  %v811_v38 = vld [vmem:[%s12076_s1 + $0x18c8] sm:$0xff] }
  0x90   :  { %v714_v45 = vld [vmem:[%s12076_s1 + $0x15c0] sm:$0xff] }
  0x91   :  { %v8302_v58 = vcombine.low %v706_v44, %v714_v45 }
  0x92   :  { %6363 = vmatpush1.bf16.msra.mxu0 %v8174_v50  ;;  %6527 = vmatpush1.bf16.msra.mxu1 %v8176_v51  ;;  %v8303_v50 = vcombine.high %v706_v44, %v714_v45  ;;  %v8305_v51 = vcombine.high %v707_v46, %v715_v47  ;;  %v826_v44 = vld [vmem:[%s12076_s1 + $0x1940] sm:$0xff]  ;;  %v9441_v45 = vcombine.high %v9431_v39, %v9431_v39  ;;  %v819_v46 = vld [vmem:[%s12076_s1 + $0x1908] sm:$0xff] }
  0x93   :  { %6364 = vmatprep.subr.bf16.mxu0 %v8191_v52  ;;  %6528 = vmatprep.subr.bf16.mxu1 %v8193_v54  ;;  %v722_v52 = vld [vmem:[%s12076_s1 + $0x1600] sm:$0xff]  ;;  %v827_v47 = vld [vmem:[%s12076_s1 + $0x1948] sm:$0xff] }
  0x94   :  { %v730_v54 = vld [vmem:[%s12076_s1 + $0x1640] sm:$0xff] }
  0x95   :  { %v8318_v2 = vcombine.low %v722_v52, %v730_v54 }
  0x96   :  { %6365 = vmatpush1.bf16.msra.mxu0 %v8190_v60  ;;  %6529 = vmatpush1.bf16.msra.mxu1 %v8192_v61  ;;  %v8319_v60 = vcombine.high %v722_v52, %v730_v54  ;;  %v8321_v61 = vcombine.high %v723_v55, %v731_v56  ;;  %v834_v52 = vld [vmem:[%s12076_s1 + $0x1980] sm:$0xff]  ;;  %v835_v55 = vld [vmem:[%s12076_s1 + $0x1988] sm:$0xff] }
  0x97   :  { %6366 = vmatprep.subr.bf16.mxu0 %v8207_v62  ;;  %6530 = vmatprep.subr.bf16.mxu1 %v8209_v63  ;;  %v738_v62 = vld [vmem:[%s12076_s1 + $0x1680] sm:$0xff]  ;;  %v843_v56 = vld [vmem:[%s12076_s1 + $0x19c8] sm:$0xff] }
  0x98   :  { %v746_v63 = vld [vmem:[%s12076_s1 + $0x16c0] sm:$0xff] }
  0x99   :  { %v8334_v10 = vcombine.low %v738_v62, %v746_v63  ;;  %v842_v54 = vld [vmem:[%s12076_s1 + $0x19c0] sm:$0xff] }
  0x9a   :  { %6367 = vmatpush1.bf16.msra.mxu0 %v8206_v4  ;;  %6531 = vmatpush1.bf16.msra.mxu1 %v8208_v5  ;;  %v8335_v4 = vcombine.high %v738_v62, %v746_v63  ;;  %v8337_v5 = vcombine.high %v739_v0, %v747_v1  ;;  %v850_v62 = vld [vmem:[%s12076_s1 + $0x1a00] sm:$0xff]  ;;  %v851_v0 = vld [vmem:[%s12076_s1 + $0x1a08] sm:$0xff] }
  0x9b   :  { %6368 = vmatprep.subr.bf16.mxu0 %v8223_v6  ;;  %6532 = vmatprep.subr.bf16.mxu1 %v8225_v7  ;;  %v754_v6 = vld [vmem:[%s12076_s1 + $0x1700] sm:$0xff]  ;;  %v859_v1 = vld [vmem:[%s12076_s1 + $0x1a48] sm:$0xff] }
  0x9c   :  { %v762_v7 = vld [vmem:[%s12076_s1 + $0x1740] sm:$0xff] }
  0x9d   :  { %v8350_v19 = vcombine.low %v754_v6, %v762_v7  ;;  %v858_v63 = vld [vmem:[%s12076_s1 + $0x1a40] sm:$0xff] }
  0x9e   :  { %6369 = vmatpush1.bf16.msra.mxu0 %v8222_v13  ;;  %6533 = vmatpush1.bf16.msra.mxu1 %v8224_v14  ;;  %v8351_v13 = vcombine.high %v754_v6, %v762_v7  ;;  %v8353_v14 = vcombine.high %v755_v8, %v763_v9  ;;  %v866_v6 = vld [vmem:[%s12076_s1 + $0x1a80] sm:$0xff]  ;;  %v867_v8 = vld [vmem:[%s12076_s1 + $0x1a88] sm:$0xff] }
  0x9f   :  { %6370 = vmatprep.subr.bf16.mxu0 %v8239_v16  ;;  %6534 = vmatprep.subr.bf16.mxu1 %v8241_v17  ;;  %v770_v16 = vld [vmem:[%s12076_s1 + $0x1780] sm:$0xff]  ;;  %v875_v9 = vld [vmem:[%s12076_s1 + $0x1ac8] sm:$0xff] }
  0xa0   :  { %v778_v17 = vld [vmem:[%s12076_s1 + $0x17c0] sm:$0xff] }
  0xa1   :  { %v8366_v29 = vcombine.low %v770_v16, %v778_v17  ;;  %v874_v7 = vld [vmem:[%s12076_s1 + $0x1ac0] sm:$0xff] }
  0xa2   :  { %6371 = vmatpush1.bf16.msra.mxu0 %v8238_v23  ;;  %6535 = vmatpush1.bf16.msra.mxu1 %v8240_v24  ;;  %v8367_v23 = vcombine.high %v770_v16, %v778_v17  ;;  %v8369_v24 = vcombine.high %v771_v53, %v779_v18  ;;  %v882_v16 = vld [vmem:[%s12076_s1 + $0x1b00] sm:$0xff]  ;;  %v883_v53 = vld [vmem:[%s12076_s1 + $0x1b08] sm:$0xff] }
  0xa3   :  { %6372 = vmatprep.subr.bf16.mxu0 %v8255_v26  ;;  %6536 = vmatprep.subr.bf16.mxu1 %v8257_v27  ;;  %v786_v26 = vld [vmem:[%s12076_s1 + $0x1800] sm:$0xff]  ;;  %v891_v18 = vld [vmem:[%s12076_s1 + $0x1b48] sm:$0xff] }
  0xa4   :  { %v794_v27 = vld [vmem:[%s12076_s1 + $0x1840] sm:$0xff] }
  0xa5   :  { %v890_v17 = vld [vmem:[%s12076_s1 + $0x1b40] sm:$0xff] }
  0xa6   :  { %6373 = vmatpush1.bf16.msra.mxu0 %v8254_v32  ;;  %6537 = vmatpush1.bf16.msra.mxu1 %v8256_v33  ;;  %v8383_v32 = vcombine.high %v786_v26, %v794_v27  ;;  %v8385_v33 = vcombine.high %v787_v15, %v795_v28 }
  0xa7   :  { %6374 = vmatprep.subr.bf16.mxu0 %v8271_v34  ;;  %6538 = vmatprep.subr.bf16.mxu1 %v8273_v35  ;;  %v802_v34 = vld [vmem:[%s12076_s1 + $0x1880] sm:$0xff] }
  0xa8   :  { %v810_v35 = vld [vmem:[%s12076_s1 + $0x18c0] sm:$0xff] }
  0xa9   :  { %v8399_v25 = vcombine.high %v802_v34, %v810_v35 }
  0xaa   :  { %6375 = vmatpush1.bf16.msra.mxu0 %v8270_v40  ;;  %6539 = vmatpush1.bf16.msra.mxu1 %v8272_v41  ;;  %v8382_v40 = vcombine.low %v786_v26, %v794_v27  ;;  %v8384_v41 = vcombine.low %v787_v15, %v795_v28  ;;  %v898_v26 = vld [vmem:[%s12076_s1 + $0x1b80] sm:$0xff]  ;;  %v899_v15 = vld [vmem:[%s12076_s1 + $0x1b88] sm:$0xff] }
  0xab   :  { %6376 = vmatprep.subr.bf16.mxu0 %v8287_v42  ;;  %6540 = vmatprep.subr.bf16.mxu1 %v8289_v43  ;;  %v8401_v42 = vcombine.high %v803_v37, %v811_v38  ;;  %v818_v43 = vld [vmem:[%s12076_s1 + $0x1900] sm:$0xff]  ;;  %v907_v28 = vld [vmem:[%s12076_s1 + $0x1bc8] sm:$0xff] }
  0xac   :  { %v906_v27 = vld [vmem:[%s12076_s1 + $0x1bc0] sm:$0xff] }
  0xae   :  { %6377 = vmatpush1.bf16.msra.mxu0 %v8286_v48  ;;  %6541 = vmatpush1.bf16.msra.mxu1 %v8288_v49  ;;  %v8398_v48 = vcombine.low %v802_v34, %v810_v35  ;;  %v8400_v49 = vcombine.low %v803_v37, %v811_v38  ;;  %v914_v34 = vld [vmem:[%s12076_s1 + $0x1c00] sm:$0xff]  ;;  %v915_v37 = vld [vmem:[%s12076_s1 + $0x1c08] sm:$0xff] }
  0xaf   :  { %6378 = vmatprep.subr.bf16.mxu0 %v8303_v50  ;;  %6542 = vmatprep.subr.bf16.mxu1 %v8305_v51  ;;  %v8415_v50 = vcombine.high %v818_v43, %v826_v44  ;;  %v8417_v51 = vcombine.high %v819_v46, %v827_v47  ;;  %v922_v35 = vld [vmem:[%s12076_s1 + $0x1c40] sm:$0xff]  ;;  %v923_v38 = vld [vmem:[%s12076_s1 + $0x1c48] sm:$0xff] }
  0xb2   :  { %6379 = vmatpush1.bf16.msra.mxu0 %v8302_v58  ;;  %6543 = vmatpush1.bf16.msra.mxu1 %v8304_v59  ;;  %v8414_v58 = vcombine.low %v818_v43, %v826_v44  ;;  %v8416_v59 = vcombine.low %v819_v46, %v827_v47  ;;  %v930_v43 = vld [vmem:[%s12076_s1 + $0x1c80] sm:$0xff]  ;;  %v931_v46 = vld [vmem:[%s12076_s1 + $0x1c88] sm:$0xff] }
  0xb3   :  { %6380 = vmatprep.subr.bf16.mxu0 %v8319_v60  ;;  %6544 = vmatprep.subr.bf16.mxu1 %v8321_v61  ;;  %v8431_v60 = vcombine.high %v834_v52, %v842_v54  ;;  %v8433_v61 = vcombine.high %v835_v55, %v843_v56  ;;  %v938_v44 = vld [vmem:[%s12076_s1 + $0x1cc0] sm:$0xff]  ;;  %v939_v47 = vld [vmem:[%s12076_s1 + $0x1cc8] sm:$0xff] }
  0xb6   :  { %6381 = vmatpush1.bf16.msra.mxu0 %v8318_v2  ;;  %6545 = vmatpush1.bf16.msra.mxu1 %v8320_v3  ;;  %v8430_v2 = vcombine.low %v834_v52, %v842_v54  ;;  %v8432_v3 = vcombine.low %v835_v55, %v843_v56  ;;  %v946_v52 = vld [vmem:[%s12076_s1 + $0x1d00] sm:$0xff]  ;;  %v947_v55 = vld [vmem:[%s12076_s1 + $0x1d08] sm:$0xff] }
  0xb7   :  { %6382 = vmatprep.subr.bf16.mxu0 %v8335_v4  ;;  %6546 = vmatprep.subr.bf16.mxu1 %v8337_v5  ;;  %v8447_v4 = vcombine.high %v850_v62, %v858_v63  ;;  %v8449_v5 = vcombine.high %v851_v0, %v859_v1  ;;  %v954_v54 = vld [vmem:[%s12076_s1 + $0x1d40] sm:$0xff]  ;;  %v955_v56 = vld [vmem:[%s12076_s1 + $0x1d48] sm:$0xff] }
  0xba   :  { %6383 = vmatpush1.bf16.msra.mxu0 %v8334_v10  ;;  %6547 = vmatpush1.bf16.msra.mxu1 %v8336_v11  ;;  %v8446_v10 = vcombine.low %v850_v62, %v858_v63  ;;  %v8448_v11 = vcombine.low %v851_v0, %v859_v1  ;;  %v962_v62 = vld [vmem:[%s12076_s1 + $0x1d80] sm:$0xff]  ;;  %v963_v0 = vld [vmem:[%s12076_s1 + $0x1d88] sm:$0xff] }
  0xbb   :  { %6384 = vmatprep.subr.bf16.mxu0 %v8351_v13  ;;  %6548 = vmatprep.subr.bf16.mxu1 %v8353_v14  ;;  %v8463_v13 = vcombine.high %v866_v6, %v874_v7  ;;  %v8465_v14 = vcombine.high %v867_v8, %v875_v9  ;;  %v970_v63 = vld [vmem:[%s12076_s1 + $0x1dc0] sm:$0xff]  ;;  %v971_v1 = vld [vmem:[%s12076_s1 + $0x1dc8] sm:$0xff] }
  0xbe   :  { %6385 = vmatpush1.bf16.msra.mxu0 %v8350_v19  ;;  %6549 = vmatpush1.bf16.msra.mxu1 %v8352_v20  ;;  %v8462_v19 = vcombine.low %v866_v6, %v874_v7  ;;  %v8464_v20 = vcombine.low %v867_v8, %v875_v9  ;;  %v978_v6 = vld [vmem:[%s12076_s1 + $0x1e00] sm:$0xff]  ;;  %v979_v8 = vld [vmem:[%s12076_s1 + $0x1e08] sm:$0xff] }
  0xbf   :  { %6386 = vmatprep.subr.bf16.mxu0 %v8367_v23  ;;  %6550 = vmatprep.subr.bf16.mxu1 %v8369_v24  ;;  %v8479_v23 = vcombine.high %v882_v16, %v890_v17  ;;  %v8481_v24 = vcombine.high %v883_v53, %v891_v18  ;;  %v986_v7 = vld [vmem:[%s12076_s1 + $0x1e40] sm:$0xff]  ;;  %v987_v9 = vld [vmem:[%s12076_s1 + $0x1e48] sm:$0xff] }
  0xc2   :  { %6387 = vmatpush1.bf16.msra.mxu0 %v8366_v29  ;;  %6551 = vmatpush1.bf16.msra.mxu1 %v8368_v30  ;;  %v8478_v29 = vcombine.low %v882_v16, %v890_v17  ;;  %v8480_v30 = vcombine.low %v883_v53, %v891_v18  ;;  %v994_v16 = vld [vmem:[%s12076_s1 + $0x1e80] sm:$0xff]  ;;  %v995_v53 = vld [vmem:[%s12076_s1 + $0x1e88] sm:$0xff] }
  0xc3   :  { %6397 = vmatprep.subr.bf16.mxu0 %v8383_v32  ;;  %6561 = vmatprep.subr.bf16.mxu1 %v8385_v33  ;;  %v8495_v32 = vcombine.high %v898_v26, %v906_v27  ;;  %v8497_v33 = vcombine.high %v899_v15, %v907_v28  ;;  %v1002_v17 = vld [vmem:[%s12076_s1 + $0x1ec0] sm:$0xff]  ;;  %v1003_v18 = vld [vmem:[%s12076_s1 + $0x1ec8] sm:$0xff] }
  0xc5   :  { %6389 = vmatmul.mubr.bf16.vlgmr.msra.gmra.mrb[0].mxu0 %v9420_v36  ;;  %6553 = vmatmul.mubr.bf16.vlgmr.msra.gmra.mrb[0].mxu1 %v9420_v36 }
  0xc6   :  { %6398 = vmatpush1.bf16.msra.mxu0 %v8382_v40  ;;  %6562 = vmatpush1.bf16.msra.mxu1 %v8384_v41  ;;  %v8494_v40 = vcombine.low %v898_v26, %v906_v27  ;;  %v8496_v41 = vcombine.low %v899_v15, %v907_v28  ;;  %v1010_v26 = vld [vmem:[%s12076_s1 + $0x1f00] sm:$0xff]  ;;  %v1011_v15 = vld [vmem:[%s12076_s1 + $0x1f08] sm:$0xff] }
  0xc7   :  { %6399 = vmatprep.subr.bf16.mxu0 %v8399_v25  ;;  %6563 = vmatprep.subr.bf16.mxu1 %v8401_v42  ;;  %v8511_v25 = vcombine.high %v914_v34, %v922_v35  ;;  %v8513_v42 = vcombine.high %v915_v37, %v923_v38  ;;  %v1018_v27 = vld [vmem:[%s12076_s1 + $0x1f40] sm:$0xff]  ;;  %v1019_v28 = vld [vmem:[%s12076_s1 + $0x1f48] sm:$0xff] }
  0xc8   :  { %6429 = vmatprep.mubr.bf16.mxu0 %v9441_v45  ;;  %6593 = vmatprep.mubr.bf16.mxu1 %v9441_v45 }
  0xca   :  { %6400 = vmatpush1.bf16.msra.mxu0 %v8398_v48  ;;  %6564 = vmatpush1.bf16.msra.mxu1 %v8400_v49  ;;  %v8510_v48 = vcombine.low %v914_v34, %v922_v35  ;;  %v8512_v49 = vcombine.low %v915_v37, %v923_v38  ;;  %v1026_v34 = vld [vmem:[%s12076_s1 + $0x1f80] sm:$0xff]  ;;  %v1027_v37 = vld [vmem:[%s12076_s1 + $0x1f88] sm:$0xff] }
  0xcb   :  { %6401 = vmatprep.subr.bf16.mxu0 %v8415_v50  ;;  %6565 = vmatprep.subr.bf16.mxu1 %v8417_v51  ;;  %v8527_v50 = vcombine.high %v930_v43, %v938_v44  ;;  %v8529_v51 = vcombine.high %v931_v46, %v939_v47  ;;  %v1034_v35 = vld [vmem:[%s12076_s1 + $0x1fc0] sm:$0xff]  ;;  %v1035_v38 = vld [vmem:[%s12076_s1 + $0x1fc8] sm:$0xff] }
  0xce   :  { %6402 = vmatpush1.bf16.msra.mxu0 %v8414_v58  ;;  %6566 = vmatpush1.bf16.msra.mxu1 %v8416_v59  ;;  %v8526_v58 = vcombine.low %v930_v43, %v938_v44  ;;  %v8528_v59 = vcombine.low %v931_v46, %v939_v47  ;;  %v20_v43 = vld [vmem:[%s12076_s1 + $0x10] sm:$0xff]  ;;  %v21_v46 = vld [vmem:[%s12076_s1 + $0x18] sm:$0xff] }
  0xcf   :  { %6403 = vmatprep.subr.bf16.mxu0 %v8431_v60  ;;  %6567 = vmatprep.subr.bf16.mxu1 %v8433_v61  ;;  %v8543_v60 = vcombine.high %v946_v52, %v954_v54  ;;  %v8545_v61 = vcombine.high %v947_v55, %v955_v56  ;;  %v28_v44 = vld [vmem:[%s12076_s1 + $0x50] sm:$0xff]  ;;  %v29_v47 = vld [vmem:[%s12076_s1 + $0x58] sm:$0xff] }
  0xd2   :  { %6404 = vmatpush1.bf16.msra.mxu0 %v8430_v2  ;;  %6568 = vmatpush1.bf16.msra.mxu1 %v8432_v3  ;;  %v8542_v2 = vcombine.low %v946_v52, %v954_v54  ;;  %v8544_v3 = vcombine.low %v947_v55, %v955_v56  ;;  %v36_v52 = vld [vmem:[%s12076_s1 + $0x90] sm:$0xff]  ;;  %v9629_v55 = vcombine.low %v9431_v39, %v9431_v39  ;;  %v37_v56 = vld [vmem:[%s12076_s1 + $0x98] sm:$0xff] }
  0xd3   :  { %6405 = vmatprep.subr.bf16.mxu0 %v8447_v4  ;;  %6569 = vmatprep.subr.bf16.mxu1 %v8449_v5  ;;  %v8559_v4 = vcombine.high %v962_v62, %v970_v63  ;;  %v8561_v5 = vcombine.high %v963_v0, %v971_v1  ;;  %v44_v54 = vld [vmem:[%s12076_s1 + $0xd0] sm:$0xff] }
  0xd4   :  { %v52_v39 = vld [vmem:[%s12076_s1 + $0x110] sm:$0xff] }
  0xd6   :  { %6406 = vmatpush1.bf16.msra.mxu0 %v8446_v10  ;;  %6570 = vmatpush1.bf16.msra.mxu1 %v8448_v11  ;;  %v8558_v10 = vcombine.low %v962_v62, %v970_v63  ;;  %v8560_v11 = vcombine.low %v963_v0, %v971_v1  ;;  %v60_v63 = vld [vmem:[%s12076_s1 + $0x150] sm:$0xff]  ;;  %v53_v0 = vld [vmem:[%s12076_s1 + $0x118] sm:$0xff] }
  0xd7   :  { %6407 = vmatprep.subr.bf16.mxu0 %v8463_v13  ;;  %6571 = vmatprep.subr.bf16.mxu1 %v8465_v14  ;;  %v8575_v13 = vcombine.high %v978_v6, %v986_v7  ;;  %v8577_v14 = vcombine.high %v979_v8, %v987_v9  ;;  %v61_v1 = vld [vmem:[%s12076_s1 + $0x158] sm:$0xff] }
  0xda   :  { %6408 = vmatpush1.bf16.msra.mxu0 %v8462_v19  ;;  %6572 = vmatpush1.bf16.msra.mxu1 %v8464_v20  ;;  %v8574_v19 = vcombine.low %v978_v6, %v986_v7  ;;  %v8576_v20 = vcombine.low %v979_v8, %v987_v9  ;;  %v68_v6 = vld [vmem:[%s12076_s1 + $0x190] sm:$0xff]  ;;  %v69_v8 = vld [vmem:[%s12076_s1 + $0x198] sm:$0xff] }
  0xdb   :  { %6409 = vmatprep.subr.bf16.mxu0 %v8479_v23  ;;  %6573 = vmatprep.subr.bf16.mxu1 %v8481_v24  ;;  %v8591_v23 = vcombine.high %v994_v16, %v1002_v17  ;;  %v8593_v24 = vcombine.high %v995_v53, %v1003_v18  ;;  %v76_v7 = vld [vmem:[%s12076_s1 + $0x1d0] sm:$0xff]  ;;  %v77_v9 = vld [vmem:[%s12076_s1 + $0x1d8] sm:$0xff] }
  0xde   :  { %6410 = vmatpush1.bf16.msra.mxu0 %v8478_v29  ;;  %6574 = vmatpush1.bf16.msra.mxu1 %v8480_v30  ;;  %v8590_v29 = vcombine.low %v994_v16, %v1002_v17  ;;  %v8592_v30 = vcombine.low %v995_v53, %v1003_v18  ;;  %v84_v16 = vld [vmem:[%s12076_s1 + $0x210] sm:$0xff]  ;;  %v85_v53 = vld [vmem:[%s12076_s1 + $0x218] sm:$0xff] }
  0xdf   :  { %6411 = vmatprep.subr.bf16.mxu0 %v8495_v32  ;;  %6575 = vmatprep.subr.bf16.mxu1 %v8497_v33  ;;  %v8607_v32 = vcombine.high %v1010_v26, %v1018_v27  ;;  %v8609_v33 = vcombine.high %v1011_v15, %v1019_v28  ;;  %v92_v17 = vld [vmem:[%s12076_s1 + $0x250] sm:$0xff]  ;;  %v93_v18 = vld [vmem:[%s12076_s1 + $0x258] sm:$0xff] }
  0xe2   :  { %6412 = vmatpush1.bf16.msra.mxu0 %v8494_v40  ;;  %6576 = vmatpush1.bf16.msra.mxu1 %v8496_v41  ;;  %v8606_v40 = vcombine.low %v1010_v26, %v1018_v27  ;;  %v8608_v41 = vcombine.low %v1011_v15, %v1019_v28  ;;  %v100_v26 = vld [vmem:[%s12076_s1 + $0x290] sm:$0xff]  ;;  %v101_v15 = vld [vmem:[%s12076_s1 + $0x298] sm:$0xff] }
  0xe3   :  { %6413 = vmatprep.subr.bf16.mxu0 %v8511_v25  ;;  %6577 = vmatprep.subr.bf16.mxu1 %v8513_v42  ;;  %v8623_v25 = vcombine.high %v1026_v34, %v1034_v35  ;;  %v8625_v42 = vcombine.high %v1027_v37, %v1035_v38  ;;  %v108_v27 = vld [vmem:[%s12076_s1 + $0x2d0] sm:$0xff]  ;;  %v109_v28 = vld [vmem:[%s12076_s1 + $0x2d8] sm:$0xff] }
  0xe6   :  { %6414 = vmatpush1.bf16.msra.mxu0 %v8510_v48  ;;  %6578 = vmatpush1.bf16.msra.mxu1 %v8512_v49  ;;  %v8622_v48 = vcombine.low %v1026_v34, %v1034_v35  ;;  %v8624_v49 = vcombine.low %v1027_v37, %v1035_v38  ;;  %v116_v34 = vld [vmem:[%s12076_s1 + $0x310] sm:$0xff]  ;;  %v117_v37 = vld [vmem:[%s12076_s1 + $0x318] sm:$0xff] }
  0xe7   :  { %6415 = vmatprep.subr.bf16.mxu0 %v8527_v50  ;;  %6579 = vmatprep.subr.bf16.mxu1 %v8529_v51  ;;  %v7619_v50 = vcombine.high %v20_v43, %v28_v44  ;;  %v7621_v51 = vcombine.high %v21_v46, %v29_v47  ;;  %v124_v35 = vld [vmem:[%s12076_s1 + $0x350] sm:$0xff]  ;;  %v125_v38 = vld [vmem:[%s12076_s1 + $0x358] sm:$0xff] }
  0xea   :  { %6416 = vmatpush1.bf16.msra.mxu0 %v8526_v58  ;;  %6580 = vmatpush1.bf16.msra.mxu1 %v8528_v59  ;;  %v45_v58 = vld [vmem:[%s12076_s1 + $0xd8] sm:$0xff]  ;;  %v7618_v59 = vcombine.low %v20_v43, %v28_v44  ;;  %v132_v43 = vld [vmem:[%s12076_s1 + $0x390] sm:$0xff] }
  0xeb   :  { %6417 = vmatprep.subr.bf16.mxu0 %v8543_v60  ;;  %6581 = vmatprep.subr.bf16.mxu1 %v8545_v61  ;;  %v7620_v60 = vcombine.low %v21_v46, %v29_v47  ;;  %v7635_v61 = vcombine.high %v36_v52, %v44_v54  ;;  %v7637_v62 = vcombine.high %v37_v56, %v45_v58  ;;  %v140_v44 = vld [vmem:[%s12076_s1 + $0x3d0] sm:$0xff]  ;;  %v133_v46 = vld [vmem:[%s12076_s1 + $0x398] sm:$0xff] }
  0xec   :  { %v141_v47 = vld [vmem:[%s12076_s1 + $0x3d8] sm:$0xff] }
  0xee   :  { %6418 = vmatpush1.bf16.msra.mxu0 %v8542_v2  ;;  %6582 = vmatpush1.bf16.msra.mxu1 %v8544_v3  ;;  %v7634_v2 = vcombine.low %v36_v52, %v44_v54  ;;  %v7636_v3 = vcombine.low %v37_v56, %v45_v58  ;;  %v148_v52 = vld [vmem:[%s12076_s1 + $0x410] sm:$0xff]  ;;  %v149_v56 = vld [vmem:[%s12076_s1 + $0x418] sm:$0xff] }
  0xef   :  { %6419 = vmatprep.subr.bf16.mxu0 %v8559_v4  ;;  %6583 = vmatprep.subr.bf16.mxu1 %v8561_v5  ;;  %v7651_v4 = vcombine.high %v52_v39, %v60_v63  ;;  %v7653_v5 = vcombine.high %v53_v0, %v61_v1  ;;  %v156_v54 = vld [vmem:[%s12076_s1 + $0x450] sm:$0xff]  ;;  %v157_v58 = vld [vmem:[%s12076_s1 + $0x458] sm:$0xff] }
  0xf2   :  { %6420 = vmatpush1.bf16.msra.mxu0 %v8558_v10  ;;  %6584 = vmatpush1.bf16.msra.mxu1 %v8560_v11  ;;  %v7650_v10 = vcombine.low %v52_v39, %v60_v63  ;;  %v7652_v11 = vcombine.low %v53_v0, %v61_v1  ;;  %v164_v39 = vld [vmem:[%s12076_s1 + $0x490] sm:$0xff]  ;;  %v165_v0 = vld [vmem:[%s12076_s1 + $0x498] sm:$0xff] }
  0xf3   :  { %6421 = vmatprep.subr.bf16.mxu0 %v8575_v13  ;;  %6585 = vmatprep.subr.bf16.mxu1 %v8577_v14  ;;  %v7667_v13 = vcombine.high %v68_v6, %v76_v7  ;;  %v7669_v14 = vcombine.high %v69_v8, %v77_v9  ;;  %v172_v63 = vld [vmem:[%s12076_s1 + $0x4d0] sm:$0xff]  ;;  %v173_v1 = vld [vmem:[%s12076_s1 + $0x4d8] sm:$0xff] }
  0xf6   :  { %6422 = vmatpush1.bf16.msra.mxu0 %v8574_v19  ;;  %6586 = vmatpush1.bf16.msra.mxu1 %v8576_v20  ;;  %v7666_v19 = vcombine.low %v68_v6, %v76_v7  ;;  %v7668_v20 = vcombine.low %v69_v8, %v77_v9  ;;  %v180_v6 = vld [vmem:[%s12076_s1 + $0x510] sm:$0xff]  ;;  %v181_v8 = vld [vmem:[%s12076_s1 + $0x518] sm:$0xff] }
  0xf7   :  { %6423 = vmatprep.subr.bf16.mxu0 %v8591_v23  ;;  %6587 = vmatprep.subr.bf16.mxu1 %v8593_v24  ;;  %v7683_v23 = vcombine.high %v84_v16, %v92_v17  ;;  %v7685_v24 = vcombine.high %v85_v53, %v93_v18  ;;  %v188_v7 = vld [vmem:[%s12076_s1 + $0x550] sm:$0xff]  ;;  %v189_v9 = vld [vmem:[%s12076_s1 + $0x558] sm:$0xff] }
  0xfa   :  { %6424 = vmatpush1.bf16.msra.mxu0 %v8590_v29  ;;  %6588 = vmatpush1.bf16.msra.mxu1 %v8592_v30  ;;  %v7682_v29 = vcombine.low %v84_v16, %v92_v17  ;;  %v7684_v30 = vcombine.low %v85_v53, %v93_v18  ;;  %v196_v16 = vld [vmem:[%s12076_s1 + $0x590] sm:$0xff]  ;;  %v197_v53 = vld [vmem:[%s12076_s1 + $0x598] sm:$0xff] }
  0xfb   :  { %6425 = vmatprep.subr.bf16.mxu0 %v8607_v32  ;;  %6589 = vmatprep.subr.bf16.mxu1 %v8609_v33  ;;  %v7699_v32 = vcombine.high %v100_v26, %v108_v27  ;;  %v7701_v33 = vcombine.high %v101_v15, %v109_v28  ;;  %v204_v17 = vld [vmem:[%s12076_s1 + $0x5d0] sm:$0xff]  ;;  %v205_v18 = vld [vmem:[%s12076_s1 + $0x5d8] sm:$0xff] }
  0xfe   :  { %6426 = vmatpush1.bf16.msra.mxu0 %v8606_v40  ;;  %6590 = vmatpush1.bf16.msra.mxu1 %v8608_v41  ;;  %v7698_v40 = vcombine.low %v100_v26, %v108_v27  ;;  %v7700_v41 = vcombine.low %v101_v15, %v109_v28  ;;  %v212_v26 = vld [vmem:[%s12076_s1 + $0x610] sm:$0xff]  ;;  %v213_v15 = vld [vmem:[%s12076_s1 + $0x618] sm:$0xff] }
  0xff   :  { %6427 = vmatprep.subr.bf16.mxu0 %v8623_v25  ;;  %6591 = vmatprep.subr.bf16.mxu1 %v8625_v42  ;;  %v7715_v25 = vcombine.high %v116_v34, %v124_v35  ;;  %v7717_v42 = vcombine.high %v117_v37, %v125_v38  ;;  %v220_v27 = vld [vmem:[%s12076_s1 + $0x650] sm:$0xff]  ;;  %v221_v28 = vld [vmem:[%s12076_s1 + $0x658] sm:$0xff] }
 0x102   :  { %6428 = vmatpush1.bf16.msra.mxu0 %v8622_v48  ;;  %6592 = vmatpush1.bf16.msra.mxu1 %v8624_v49  ;;  %v7714_v48 = vcombine.low %v116_v34, %v124_v35  ;;  %v7716_v49 = vcombine.low %v117_v37, %v125_v38  ;;  %v228_v34 = vld [vmem:[%s12076_s1 + $0x690] sm:$0xff]  ;;  %v229_v37 = vld [vmem:[%s12076_s1 + $0x698] sm:$0xff] }
 0x103   :  { %6602 = vmatprep.subr.bf16.mxu0 %v7619_v50  ;;  %6766 = vmatprep.subr.bf16.mxu1 %v7621_v51  ;;  %v7731_v50 = vcombine.high %v132_v43, %v140_v44  ;;  %v7733_v51 = vcombine.high %v133_v46, %v141_v47  ;;  %v236_v35 = vld [vmem:[%s12076_s1 + $0x6d0] sm:$0xff]  ;;  %v237_v38 = vld [vmem:[%s12076_s1 + $0x6d8] sm:$0xff] }
 0x105   :  { %6430 = vmatmul.mubr.bf16.vlgmr.msra.gmra.mrb[0].mxu0 %v9629_v55  ;;  %6594 = vmatmul.mubr.bf16.vlgmr.msra.gmra.mrb[0].mxu1 %v9629_v55 }
 0x106   :  { %6603 = vmatpush1.bf16.msra.mxu0 %v7618_v59  ;;  %6767 = vmatpush1.bf16.msra.mxu1 %v7620_v60  ;;  %v7730_v59 = vcombine.low %v132_v43, %v140_v44  ;;  %v7732_v60 = vcombine.low %v133_v46, %v141_v47  ;;  %v244_v43 = vld [vmem:[%s12076_s1 + $0x710] sm:$0xff]  ;;  %v245_v46 = vld [vmem:[%s12076_s1 + $0x718] sm:$0xff] }
 0x107   :  { %6604 = vmatprep.subr.bf16.mxu0 %v7635_v61  ;;  %6768 = vmatprep.subr.bf16.mxu1 %v7637_v62  ;;  %v7747_v61 = vcombine.high %v148_v52, %v156_v54  ;;  %v7749_v62 = vcombine.high %v149_v56, %v157_v58  ;;  %v252_v44 = vld [vmem:[%s12076_s1 + $0x750] sm:$0xff]  ;;  %v253_v47 = vld [vmem:[%s12076_s1 + $0x758] sm:$0xff] }
 0x108   :  { %6634 = vmatprep.mubr.bf16.mxu0 %v8876_v57  ;;  %6798 = vmatprep.mubr.bf16.mxu1 %v8876_v57 }
 0x10a   :  { %6605 = vmatpush1.bf16.msra.mxu0 %v7634_v2  ;;  %6769 = vmatpush1.bf16.msra.mxu1 %v7636_v3  ;;  %v7746_v2 = vcombine.low %v148_v52, %v156_v54  ;;  %v7748_v3 = vcombine.low %v149_v56, %v157_v58  ;;  %v260_v52 = vld [vmem:[%s12076_s1 + $0x790] sm:$0xff]  ;;  %v261_v56 = vld [vmem:[%s12076_s1 + $0x798] sm:$0xff] }
 0x10b   :  { %6606 = vmatprep.subr.bf16.mxu0 %v7651_v4  ;;  %6770 = vmatprep.subr.bf16.mxu1 %v7653_v5  ;;  %v7763_v4 = vcombine.high %v164_v39, %v172_v63  ;;  %v7765_v5 = vcombine.high %v165_v0, %v173_v1  ;;  %v268_v54 = vld [vmem:[%s12076_s1 + $0x7d0] sm:$0xff]  ;;  %v269_v58 = vld [vmem:[%s12076_s1 + $0x7d8] sm:$0xff] }
 0x10e   :  { %6607 = vmatpush1.bf16.msra.mxu0 %v7650_v10  ;;  %6771 = vmatpush1.bf16.msra.mxu1 %v7652_v11  ;;  %v7762_v10 = vcombine.low %v164_v39, %v172_v63  ;;  %v7764_v11 = vcombine.low %v165_v0, %v173_v1  ;;  %v276_v39 = vld [vmem:[%s12076_s1 + $0x810] sm:$0xff]  ;;  %v277_v0 = vld [vmem:[%s12076_s1 + $0x818] sm:$0xff] }
 0x10f   :  { %6608 = vmatprep.subr.bf16.mxu0 %v7667_v13  ;;  %6772 = vmatprep.subr.bf16.mxu1 %v7669_v14  ;;  %v7779_v13 = vcombine.high %v180_v6, %v188_v7  ;;  %v7781_v14 = vcombine.high %v181_v8, %v189_v9  ;;  %v284_v63 = vld [vmem:[%s12076_s1 + $0x850] sm:$0xff]  ;;  %v285_v1 = vld [vmem:[%s12076_s1 + $0x858] sm:$0xff] }
 0x112   :  { %6609 = vmatpush1.bf16.msra.mxu0 %v7666_v19  ;;  %6773 = vmatpush1.bf16.msra.mxu1 %v7668_v20  ;;  %v7778_v19 = vcombine.low %v180_v6, %v188_v7  ;;  %v7780_v20 = vcombine.low %v181_v8, %v189_v9  ;;  %v292_v6 = vld [vmem:[%s12076_s1 + $0x890] sm:$0xff]  ;;  %v293_v8 = vld [vmem:[%s12076_s1 + $0x898] sm:$0xff] }
 0x113   :  { %6610 = vmatprep.subr.bf16.mxu0 %v7683_v23  ;;  %6774 = vmatprep.subr.bf16.mxu1 %v7685_v24  ;;  %v7795_v23 = vcombine.high %v196_v16, %v204_v17  ;;  %v7797_v24 = vcombine.high %v197_v53, %v205_v18  ;;  %v300_v7 = vld [vmem:[%s12076_s1 + $0x8d0] sm:$0xff]  ;;  %v301_v9 = vld [vmem:[%s12076_s1 + $0x8d8] sm:$0xff] }
 0x116   :  { %6611 = vmatpush1.bf16.msra.mxu0 %v7682_v29  ;;  %6775 = vmatpush1.bf16.msra.mxu1 %v7684_v30  ;;  %v7794_v29 = vcombine.low %v196_v16, %v204_v17  ;;  %v7796_v30 = vcombine.low %v197_v53, %v205_v18  ;;  %v308_v16 = vld [vmem:[%s12076_s1 + $0x910] sm:$0xff]  ;;  %v309_v53 = vld [vmem:[%s12076_s1 + $0x918] sm:$0xff] }
 0x117   :  { %6612 = vmatprep.subr.bf16.mxu0 %v7699_v32  ;;  %6776 = vmatprep.subr.bf16.mxu1 %v7701_v33  ;;  %v7811_v32 = vcombine.high %v212_v26, %v220_v27  ;;  %v7813_v33 = vcombine.high %v213_v15, %v221_v28  ;;  %v316_v17 = vld [vmem:[%s12076_s1 + $0x950] sm:$0xff]  ;;  %v317_v18 = vld [vmem:[%s12076_s1 + $0x958] sm:$0xff] }
 0x11a   :  { %6613 = vmatpush1.bf16.msra.mxu0 %v7698_v40  ;;  %6777 = vmatpush1.bf16.msra.mxu1 %v7700_v41  ;;  %v7810_v40 = vcombine.low %v212_v26, %v220_v27  ;;  %v7812_v41 = vcombine.low %v213_v15, %v221_v28  ;;  %v324_v26 = vld [vmem:[%s12076_s1 + $0x990] sm:$0xff]  ;;  %v325_v15 = vld [vmem:[%s12076_s1 + $0x998] sm:$0xff] }
 0x11b   :  { %6614 = vmatprep.subr.bf16.mxu0 %v7715_v25  ;;  %6778 = vmatprep.subr.bf16.mxu1 %v7717_v42  ;;  %v7827_v25 = vcombine.high %v228_v34, %v236_v35  ;;  %v7829_v42 = vcombine.high %v229_v37, %v237_v38  ;;  %v332_v27 = vld [vmem:[%s12076_s1 + $0x9d0] sm:$0xff]  ;;  %v333_v28 = vld [vmem:[%s12076_s1 + $0x9d8] sm:$0xff] }
 0x11e   :  { %6615 = vmatpush1.bf16.msra.mxu0 %v7714_v48  ;;  %6779 = vmatpush1.bf16.msra.mxu1 %v7716_v49  ;;  %v7826_v48 = vcombine.low %v228_v34, %v236_v35  ;;  %v7828_v49 = vcombine.low %v229_v37, %v237_v38  ;;  %v340_v34 = vld [vmem:[%s12076_s1 + $0xa10] sm:$0xff]  ;;  %v341_v37 = vld [vmem:[%s12076_s1 + $0xa18] sm:$0xff] }
 0x11f   :  { %6616 = vmatprep.subr.bf16.mxu0 %v7731_v50  ;;  %6780 = vmatprep.subr.bf16.mxu1 %v7733_v51  ;;  %v7843_v50 = vcombine.high %v244_v43, %v252_v44  ;;  %v7845_v51 = vcombine.high %v245_v46, %v253_v47  ;;  %v348_v35 = vld [vmem:[%s12076_s1 + $0xa50] sm:$0xff]  ;;  %v349_v38 = vld [vmem:[%s12076_s1 + $0xa58] sm:$0xff] }
 0x122   :  { %6617 = vmatpush1.bf16.msra.mxu0 %v7730_v59  ;;  %6781 = vmatpush1.bf16.msra.mxu1 %v7732_v60  ;;  %v7842_v59 = vcombine.low %v244_v43, %v252_v44  ;;  %v7844_v60 = vcombine.low %v245_v46, %v253_v47  ;;  %v356_v43 = vld [vmem:[%s12076_s1 + $0xa90] sm:$0xff]  ;;  %v357_v46 = vld [vmem:[%s12076_s1 + $0xa98] sm:$0xff] }
 0x123   :  { %6618 = vmatprep.subr.bf16.mxu0 %v7747_v61  ;;  %6782 = vmatprep.subr.bf16.mxu1 %v7749_v62  ;;  %v7859_v61 = vcombine.high %v260_v52, %v268_v54  ;;  %v7861_v62 = vcombine.high %v261_v56, %v269_v58  ;;  %v364_v44 = vld [vmem:[%s12076_s1 + $0xad0] sm:$0xff]  ;;  %v365_v47 = vld [vmem:[%s12076_s1 + $0xad8] sm:$0xff] }
 0x126   :  { %6619 = vmatpush1.bf16.msra.mxu0 %v7746_v2  ;;  %6783 = vmatpush1.bf16.msra.mxu1 %v7748_v3  ;;  %v7858_v2 = vcombine.low %v260_v52, %v268_v54  ;;  %v7860_v3 = vcombine.low %v261_v56, %v269_v58  ;;  %v372_v52 = vld [vmem:[%s12076_s1 + $0xb10] sm:$0xff]  ;;  %v373_v56 = vld [vmem:[%s12076_s1 + $0xb18] sm:$0xff] }
 0x127   :  { %6620 = vmatprep.subr.bf16.mxu0 %v7763_v4  ;;  %6784 = vmatprep.subr.bf16.mxu1 %v7765_v5  ;;  %v7875_v4 = vcombine.high %v276_v39, %v284_v63  ;;  %v7877_v5 = vcombine.high %v277_v0, %v285_v1  ;;  %v380_v54 = vld [vmem:[%s12076_s1 + $0xb50] sm:$0xff]  ;;  %v381_v58 = vld [vmem:[%s12076_s1 + $0xb58] sm:$0xff] }
 0x12a   :  { %6621 = vmatpush1.bf16.msra.mxu0 %v7762_v10  ;;  %6785 = vmatpush1.bf16.msra.mxu1 %v7764_v11  ;;  %v7874_v10 = vcombine.low %v276_v39, %v284_v63  ;;  %v7876_v11 = vcombine.low %v277_v0, %v285_v1  ;;  %v388_v39 = vld [vmem:[%s12076_s1 + $0xb90] sm:$0xff]  ;;  %v389_v0 = vld [vmem:[%s12076_s1 + $0xb98] sm:$0xff] }
 0x12b   :  { %6622 = vmatprep.subr.bf16.mxu0 %v7779_v13  ;;  %6786 = vmatprep.subr.bf16.mxu1 %v7781_v14  ;;  %v7891_v13 = vcombine.high %v292_v6, %v300_v7  ;;  %v7893_v14 = vcombine.high %v293_v8, %v301_v9  ;;  %v396_v63 = vld [vmem:[%s12076_s1 + $0xbd0] sm:$0xff]  ;;  %v397_v1 = vld [vmem:[%s12076_s1 + $0xbd8] sm:$0xff] }
 0x12e   :  { %6623 = vmatpush1.bf16.msra.mxu0 %v7778_v19  ;;  %6787 = vmatpush1.bf16.msra.mxu1 %v7780_v20  ;;  %v7890_v19 = vcombine.low %v292_v6, %v300_v7  ;;  %v7892_v20 = vcombine.low %v293_v8, %v301_v9  ;;  %v404_v6 = vld [vmem:[%s12076_s1 + $0xc10] sm:$0xff]  ;;  %v405_v8 = vld [vmem:[%s12076_s1 + $0xc18] sm:$0xff] }
 0x12f   :  { %6624 = vmatprep.subr.bf16.mxu0 %v7795_v23  ;;  %6788 = vmatprep.subr.bf16.mxu1 %v7797_v24  ;;  %v7907_v23 = vcombine.high %v308_v16, %v316_v17  ;;  %v7909_v24 = vcombine.high %v309_v53, %v317_v18  ;;  %v412_v7 = vld [vmem:[%s12076_s1 + $0xc50] sm:$0xff]  ;;  %v413_v9 = vld [vmem:[%s12076_s1 + $0xc58] sm:$0xff] }
 0x132   :  { %6625 = vmatpush1.bf16.msra.mxu0 %v7794_v29  ;;  %6789 = vmatpush1.bf16.msra.mxu1 %v7796_v30  ;;  %v7906_v29 = vcombine.low %v308_v16, %v316_v17  ;;  %v7908_v30 = vcombine.low %v309_v53, %v317_v18  ;;  %v420_v16 = vld [vmem:[%s12076_s1 + $0xc90] sm:$0xff]  ;;  %v421_v53 = vld [vmem:[%s12076_s1 + $0xc98] sm:$0xff] }
 0x133   :  { %6626 = vmatprep.subr.bf16.mxu0 %v7811_v32  ;;  %6790 = vmatprep.subr.bf16.mxu1 %v7813_v33  ;;  %v7923_v32 = vcombine.high %v324_v26, %v332_v27  ;;  %v7925_v33 = vcombine.high %v325_v15, %v333_v28  ;;  %v428_v17 = vld [vmem:[%s12076_s1 + $0xcd0] sm:$0xff]  ;;  %v429_v18 = vld [vmem:[%s12076_s1 + $0xcd8] sm:$0xff] }
 0x136   :  { %6627 = vmatpush1.bf16.msra.mxu0 %v7810_v40  ;;  %6791 = vmatpush1.bf16.msra.mxu1 %v7812_v41  ;;  %v7922_v40 = vcombine.low %v324_v26, %v332_v27  ;;  %v7924_v41 = vcombine.low %v325_v15, %v333_v28  ;;  %v436_v26 = vld [vmem:[%s12076_s1 + $0xd10] sm:$0xff]  ;;  %v437_v15 = vld [vmem:[%s12076_s1 + $0xd18] sm:$0xff] }
 0x137   :  { %6628 = vmatprep.subr.bf16.mxu0 %v7827_v25  ;;  %6792 = vmatprep.subr.bf16.mxu1 %v7829_v42  ;;  %v7939_v25 = vcombine.high %v340_v34, %v348_v35  ;;  %v7941_v42 = vcombine.high %v341_v37, %v349_v38  ;;  %v444_v27 = vld [vmem:[%s12076_s1 + $0xd50] sm:$0xff]  ;;  %v445_v28 = vld [vmem:[%s12076_s1 + $0xd58] sm:$0xff] }
 0x13a   :  { %6629 = vmatpush1.bf16.msra.mxu0 %v7826_v48  ;;  %6793 = vmatpush1.bf16.msra.mxu1 %v7828_v49  ;;  %v7938_v48 = vcombine.low %v340_v34, %v348_v35  ;;  %v7940_v49 = vcombine.low %v341_v37, %v349_v38  ;;  %v452_v34 = vld [vmem:[%s12076_s1 + $0xd90] sm:$0xff]  ;;  %v453_v37 = vld [vmem:[%s12076_s1 + $0xd98] sm:$0xff] }
 0x13b   :  { %6630 = vmatprep.subr.bf16.mxu0 %v7843_v50  ;;  %6794 = vmatprep.subr.bf16.mxu1 %v7845_v51  ;;  %v7955_v50 = vcombine.high %v356_v43, %v364_v44  ;;  %v7957_v51 = vcombine.high %v357_v46, %v365_v47  ;;  %v460_v35 = vld [vmem:[%s12076_s1 + $0xdd0] sm:$0xff]  ;;  %v461_v38 = vld [vmem:[%s12076_s1 + $0xdd8] sm:$0xff] }
 0x13e   :  { %6631 = vmatpush1.bf16.msra.mxu0 %v7842_v59  ;;  %6795 = vmatpush1.bf16.msra.mxu1 %v7844_v60  ;;  %v7954_v59 = vcombine.low %v356_v43, %v364_v44  ;;  %v7956_v60 = vcombine.low %v357_v46, %v365_v47  ;;  %v468_v43 = vld [vmem:[%s12076_s1 + $0xe10] sm:$0xff]  ;;  %v469_v46 = vld [vmem:[%s12076_s1 + $0xe18] sm:$0xff] }
 0x13f   :  { %6632 = vmatprep.subr.bf16.mxu0 %v7859_v61  ;;  %6796 = vmatprep.subr.bf16.mxu1 %v7861_v62  ;;  %v7971_v61 = vcombine.high %v372_v52, %v380_v54  ;;  %v7973_v62 = vcombine.high %v373_v56, %v381_v58  ;;  %v476_v44 = vld [vmem:[%s12076_s1 + $0xe50] sm:$0xff]  ;;  %v477_v47 = vld [vmem:[%s12076_s1 + $0xe58] sm:$0xff] }
 0x142   :  { %6633 = vmatpush1.bf16.msra.mxu0 %v7858_v2  ;;  %6797 = vmatpush1.bf16.msra.mxu1 %v7860_v3  ;;  %v7970_v2 = vcombine.low %v372_v52, %v380_v54  ;;  %v7972_v3 = vcombine.low %v373_v56, %v381_v58  ;;  %v484_v52 = vld [vmem:[%s12076_s1 + $0xe90] sm:$0xff]  ;;  %v485_v56 = vld [vmem:[%s12076_s1 + $0xe98] sm:$0xff] }
 0x143   :  { %6643 = vmatprep.subr.bf16.mxu0 %v7875_v4  ;;  %6807 = vmatprep.subr.bf16.mxu1 %v7877_v5  ;;  %v7987_v4 = vcombine.high %v388_v39, %v396_v63  ;;  %v7989_v5 = vcombine.high %v389_v0, %v397_v1  ;;  %v492_v54 = vld [vmem:[%s12076_s1 + $0xed0] sm:$0xff]  ;;  %v493_v58 = vld [vmem:[%s12076_s1 + $0xed8] sm:$0xff] }
 0x145   :  { %6635 = vmatmul.mubr.bf16.vlgmr.msra.gmra.mrb[4].mxu0 %v9002_v12  ;;  %6799 = vmatmul.mubr.bf16.vlgmr.msra.gmra.mrb[4].mxu1 %v9002_v12 }
 0x146   :  { %6644 = vmatpush1.bf16.msra.mxu0 %v7874_v10  ;;  %6808 = vmatpush1.bf16.msra.mxu1 %v7876_v11  ;;  %v7986_v10 = vcombine.low %v388_v39, %v396_v63  ;;  %v7988_v11 = vcombine.low %v389_v0, %v397_v1  ;;  %v500_v39 = vld [vmem:[%s12076_s1 + $0xf10] sm:$0xff]  ;;  %v501_v0 = vld [vmem:[%s12076_s1 + $0xf18] sm:$0xff] }
 0x147   :  { %6645 = vmatprep.subr.bf16.mxu0 %v7891_v13  ;;  %6809 = vmatprep.subr.bf16.mxu1 %v7893_v14  ;;  %v8003_v13 = vcombine.high %v404_v6, %v412_v7  ;;  %v8005_v14 = vcombine.high %v405_v8, %v413_v9  ;;  %v508_v63 = vld [vmem:[%s12076_s1 + $0xf50] sm:$0xff]  ;;  %v509_v1 = vld [vmem:[%s12076_s1 + $0xf58] sm:$0xff] }
 0x148   :  { %6675 = vmatprep.mubr.bf16.mxu0 %v9023_v21  ;;  %6839 = vmatprep.mubr.bf16.mxu1 %v9023_v21 }
 0x14a   :  { %6646 = vmatpush1.bf16.msra.mxu0 %v7890_v19  ;;  %6810 = vmatpush1.bf16.msra.mxu1 %v7892_v20  ;;  %v8002_v19 = vcombine.low %v404_v6, %v412_v7  ;;  %v8004_v20 = vcombine.low %v405_v8, %v413_v9  ;;  %v516_v6 = vld [vmem:[%s12076_s1 + $0xf90] sm:$0xff]  ;;  %v517_v8 = vld [vmem:[%s12076_s1 + $0xf98] sm:$0xff] }
 0x14b   :  { %6647 = vmatprep.subr.bf16.mxu0 %v7907_v23  ;;  %6811 = vmatprep.subr.bf16.mxu1 %v7909_v24  ;;  %v8019_v23 = vcombine.high %v420_v16, %v428_v17  ;;  %v8021_v24 = vcombine.high %v421_v53, %v429_v18  ;;  %v524_v7 = vld [vmem:[%s12076_s1 + $0xfd0] sm:$0xff]  ;;  %v525_v9 = vld [vmem:[%s12076_s1 + $0xfd8] sm:$0xff] }
 0x14e   :  { %6648 = vmatpush1.bf16.msra.mxu0 %v7906_v29  ;;  %6812 = vmatpush1.bf16.msra.mxu1 %v7908_v30  ;;  %v8018_v29 = vcombine.low %v420_v16, %v428_v17  ;;  %v8020_v30 = vcombine.low %v421_v53, %v429_v18  ;;  %v532_v16 = vld [vmem:[%s12076_s1 + $0x1010] sm:$0xff]  ;;  %v533_v53 = vld [vmem:[%s12076_s1 + $0x1018] sm:$0xff] }
 0x14f   :  { %6649 = vmatprep.subr.bf16.mxu0 %v7923_v32  ;;  %6813 = vmatprep.subr.bf16.mxu1 %v7925_v33  ;;  %v8035_v32 = vcombine.high %v436_v26, %v444_v27  ;;  %v8037_v33 = vcombine.high %v437_v15, %v445_v28  ;;  %v540_v17 = vld [vmem:[%s12076_s1 + $0x1050] sm:$0xff]  ;;  %v541_v18 = vld [vmem:[%s12076_s1 + $0x1058] sm:$0xff] }
 0x152   :  { %6650 = vmatpush1.bf16.msra.mxu0 %v7922_v40  ;;  %6814 = vmatpush1.bf16.msra.mxu1 %v7924_v41  ;;  %v8034_v40 = vcombine.low %v436_v26, %v444_v27  ;;  %v8036_v41 = vcombine.low %v437_v15, %v445_v28  ;;  %v548_v26 = vld [vmem:[%s12076_s1 + $0x1090] sm:$0xff]  ;;  %v549_v15 = vld [vmem:[%s12076_s1 + $0x1098] sm:$0xff] }
 0x153   :  { %6651 = vmatprep.subr.bf16.mxu0 %v7939_v25  ;;  %6815 = vmatprep.subr.bf16.mxu1 %v7941_v42  ;;  %v8051_v25 = vcombine.high %v452_v34, %v460_v35  ;;  %v8053_v42 = vcombine.high %v453_v37, %v461_v38  ;;  %v556_v27 = vld [vmem:[%s12076_s1 + $0x10d0] sm:$0xff]  ;;  %v557_v28 = vld [vmem:[%s12076_s1 + $0x10d8] sm:$0xff] }
 0x156   :  { %6652 = vmatpush1.bf16.msra.mxu0 %v7938_v48  ;;  %6816 = vmatpush1.bf16.msra.mxu1 %v7940_v49  ;;  %v8050_v48 = vcombine.low %v452_v34, %v460_v35  ;;  %v8052_v49 = vcombine.low %v453_v37, %v461_v38  ;;  %v564_v34 = vld [vmem:[%s12076_s1 + $0x1110] sm:$0xff]  ;;  %v565_v37 = vld [vmem:[%s12076_s1 + $0x1118] sm:$0xff] }
 0x157   :  { %6653 = vmatprep.subr.bf16.mxu0 %v7955_v50  ;;  %6817 = vmatprep.subr.bf16.mxu1 %v7957_v51  ;;  %v8067_v50 = vcombine.high %v468_v43, %v476_v44  ;;  %v8069_v51 = vcombine.high %v469_v46, %v477_v47  ;;  %v572_v35 = vld [vmem:[%s12076_s1 + $0x1150] sm:$0xff]  ;;  %v573_v38 = vld [vmem:[%s12076_s1 + $0x1158] sm:$0xff] }
 0x15a   :  { %6654 = vmatpush1.bf16.msra.mxu0 %v7954_v59  ;;  %6818 = vmatpush1.bf16.msra.mxu1 %v7956_v60  ;;  %v8066_v59 = vcombine.low %v468_v43, %v476_v44  ;;  %v8068_v60 = vcombine.low %v469_v46, %v477_v47  ;;  %v580_v43 = vld [vmem:[%s12076_s1 + $0x1190] sm:$0xff]  ;;  %v581_v46 = vld [vmem:[%s12076_s1 + $0x1198] sm:$0xff] }
 0x15b   :  { %6655 = vmatprep.subr.bf16.mxu0 %v7971_v61  ;;  %6819 = vmatprep.subr.bf16.mxu1 %v7973_v62  ;;  %v8083_v61 = vcombine.high %v484_v52, %v492_v54  ;;  %v8085_v62 = vcombine.high %v485_v56, %v493_v58  ;;  %v588_v44 = vld [vmem:[%s12076_s1 + $0x11d0] sm:$0xff]  ;;  %v589_v47 = vld [vmem:[%s12076_s1 + $0x11d8] sm:$0xff] }
 0x15e   :  { %6656 = vmatpush1.bf16.msra.mxu0 %v7970_v2  ;;  %6820 = vmatpush1.bf16.msra.mxu1 %v7972_v3  ;;  %v8082_v2 = vcombine.low %v484_v52, %v492_v54  ;;  %v8084_v3 = vcombine.low %v485_v56, %v493_v58  ;;  %v596_v52 = vld [vmem:[%s12076_s1 + $0x1210] sm:$0xff]  ;;  %v597_v56 = vld [vmem:[%s12076_s1 + $0x1218] sm:$0xff] }
 0x15f   :  { %6657 = vmatprep.subr.bf16.mxu0 %v7987_v4  ;;  %6821 = vmatprep.subr.bf16.mxu1 %v7989_v5  ;;  %v8099_v4 = vcombine.high %v500_v39, %v508_v63  ;;  %v8101_v5 = vcombine.high %v501_v0, %v509_v1  ;;  %v604_v54 = vld [vmem:[%s12076_s1 + $0x1250] sm:$0xff]  ;;  %v605_v58 = vld [vmem:[%s12076_s1 + $0x1258] sm:$0xff] }
 0x162   :  { %6658 = vmatpush1.bf16.msra.mxu0 %v7986_v10  ;;  %6822 = vmatpush1.bf16.msra.mxu1 %v7988_v11  ;;  %v8098_v10 = vcombine.low %v500_v39, %v508_v63  ;;  %v8100_v11 = vcombine.low %v501_v0, %v509_v1  ;;  %v612_v39 = vld [vmem:[%s12076_s1 + $0x1290] sm:$0xff]  ;;  %v613_v0 = vld [vmem:[%s12076_s1 + $0x1298] sm:$0xff] }
 0x163   :  { %6659 = vmatprep.subr.bf16.mxu0 %v8003_v13  ;;  %6823 = vmatprep.subr.bf16.mxu1 %v8005_v14  ;;  %v8115_v13 = vcombine.high %v516_v6, %v524_v7  ;;  %v8117_v14 = vcombine.high %v517_v8, %v525_v9  ;;  %v620_v63 = vld [vmem:[%s12076_s1 + $0x12d0] sm:$0xff]  ;;  %v621_v1 = vld [vmem:[%s12076_s1 + $0x12d8] sm:$0xff] }
 0x166   :  { %6660 = vmatpush1.bf16.msra.mxu0 %v8002_v19  ;;  %6824 = vmatpush1.bf16.msra.mxu1 %v8004_v20  ;;  %v8114_v19 = vcombine.low %v516_v6, %v524_v7  ;;  %v8116_v20 = vcombine.low %v517_v8, %v525_v9  ;;  %v628_v6 = vld [vmem:[%s12076_s1 + $0x1310] sm:$0xff]  ;;  %v629_v8 = vld [vmem:[%s12076_s1 + $0x1318] sm:$0xff] }
 0x167   :  { %6661 = vmatprep.subr.bf16.mxu0 %v8019_v23  ;;  %6825 = vmatprep.subr.bf16.mxu1 %v8021_v24  ;;  %v8131_v23 = vcombine.high %v532_v16, %v540_v17  ;;  %v8133_v24 = vcombine.high %v533_v53, %v541_v18  ;;  %v636_v7 = vld [vmem:[%s12076_s1 + $0x1350] sm:$0xff]  ;;  %v637_v9 = vld [vmem:[%s12076_s1 + $0x1358] sm:$0xff] }
 0x16a   :  { %6662 = vmatpush1.bf16.msra.mxu0 %v8018_v29  ;;  %6826 = vmatpush1.bf16.msra.mxu1 %v8020_v30  ;;  %v8130_v29 = vcombine.low %v532_v16, %v540_v17  ;;  %v8132_v30 = vcombine.low %v533_v53, %v541_v18  ;;  %v644_v16 = vld [vmem:[%s12076_s1 + $0x1390] sm:$0xff]  ;;  %v645_v53 = vld [vmem:[%s12076_s1 + $0x1398] sm:$0xff] }
 0x16b   :  { %6663 = vmatprep.subr.bf16.mxu0 %v8035_v32  ;;  %6827 = vmatprep.subr.bf16.mxu1 %v8037_v33  ;;  %v8147_v32 = vcombine.high %v548_v26, %v556_v27  ;;  %v8149_v33 = vcombine.high %v549_v15, %v557_v28  ;;  %v652_v17 = vld [vmem:[%s12076_s1 + $0x13d0] sm:$0xff]  ;;  %v653_v18 = vld [vmem:[%s12076_s1 + $0x13d8] sm:$0xff] }
 0x16e   :  { %6664 = vmatpush1.bf16.msra.mxu0 %v8034_v40  ;;  %6828 = vmatpush1.bf16.msra.mxu1 %v8036_v41  ;;  %v8146_v40 = vcombine.low %v548_v26, %v556_v27  ;;  %v8148_v41 = vcombine.low %v549_v15, %v557_v28  ;;  %v660_v26 = vld [vmem:[%s12076_s1 + $0x1410] sm:$0xff]  ;;  %v661_v15 = vld [vmem:[%s12076_s1 + $0x1418] sm:$0xff] }
 0x16f   :  { %6665 = vmatprep.subr.bf16.mxu0 %v8051_v25  ;;  %6829 = vmatprep.subr.bf16.mxu1 %v8053_v42  ;;  %v8163_v25 = vcombine.high %v564_v34, %v572_v35  ;;  %v8165_v42 = vcombine.high %v565_v37, %v573_v38  ;;  %v668_v27 = vld [vmem:[%s12076_s1 + $0x1450] sm:$0xff]  ;;  %v669_v28 = vld [vmem:[%s12076_s1 + $0x1458] sm:$0xff] }
 0x172   :  { %6666 = vmatpush1.bf16.msra.mxu0 %v8050_v48  ;;  %6830 = vmatpush1.bf16.msra.mxu1 %v8052_v49  ;;  %v8162_v48 = vcombine.low %v564_v34, %v572_v35  ;;  %v8164_v49 = vcombine.low %v565_v37, %v573_v38  ;;  %v676_v34 = vld [vmem:[%s12076_s1 + $0x1490] sm:$0xff]  ;;  %v677_v37 = vld [vmem:[%s12076_s1 + $0x1498] sm:$0xff] }
 0x173   :  { %6667 = vmatprep.subr.bf16.mxu0 %v8067_v50  ;;  %6831 = vmatprep.subr.bf16.mxu1 %v8069_v51  ;;  %v8179_v50 = vcombine.high %v580_v43, %v588_v44  ;;  %v8181_v51 = vcombine.high %v581_v46, %v589_v47  ;;  %v684_v35 = vld [vmem:[%s12076_s1 + $0x14d0] sm:$0xff]  ;;  %v685_v38 = vld [vmem:[%s12076_s1 + $0x14d8] sm:$0xff] }
 0x176   :  { %6668 = vmatpush1.bf16.msra.mxu0 %v8066_v59  ;;  %6832 = vmatpush1.bf16.msra.mxu1 %v8068_v60  ;;  %v8178_v59 = vcombine.low %v580_v43, %v588_v44  ;;  %v8180_v60 = vcombine.low %v581_v46, %v589_v47  ;;  %v692_v43 = vld [vmem:[%s12076_s1 + $0x1510] sm:$0xff]  ;;  %v693_v46 = vld [vmem:[%s12076_s1 + $0x1518] sm:$0xff] }
 0x177   :  { %6669 = vmatprep.subr.bf16.mxu0 %v8083_v61  ;;  %6833 = vmatprep.subr.bf16.mxu1 %v8085_v62  ;;  %v8195_v61 = vcombine.high %v596_v52, %v604_v54  ;;  %v8197_v62 = vcombine.high %v597_v56, %v605_v58  ;;  %v700_v44 = vld [vmem:[%s12076_s1 + $0x1550] sm:$0xff]  ;;  %v701_v47 = vld [vmem:[%s12076_s1 + $0x1558] sm:$0xff] }
 0x17a   :  { %6670 = vmatpush1.bf16.msra.mxu0 %v8082_v2  ;;  %6834 = vmatpush1.bf16.msra.mxu1 %v8084_v3  ;;  %v8194_v2 = vcombine.low %v596_v52, %v604_v54  ;;  %v8196_v3 = vcombine.low %v597_v56, %v605_v58  ;;  %v708_v52 = vld [vmem:[%s12076_s1 + $0x1590] sm:$0xff]  ;;  %v709_v56 = vld [vmem:[%s12076_s1 + $0x1598] sm:$0xff] }
 0x17b   :  { %6671 = vmatprep.subr.bf16.mxu0 %v8099_v4  ;;  %6835 = vmatprep.subr.bf16.mxu1 %v8101_v5  ;;  %v8211_v4 = vcombine.high %v612_v39, %v620_v63  ;;  %v8213_v5 = vcombine.high %v613_v0, %v621_v1  ;;  %v716_v54 = vld [vmem:[%s12076_s1 + $0x15d0] sm:$0xff]  ;;  %v717_v58 = vld [vmem:[%s12076_s1 + $0x15d8] sm:$0xff] }
 0x17e   :  { %6672 = vmatpush1.bf16.msra.mxu0 %v8098_v10  ;;  %6836 = vmatpush1.bf16.msra.mxu1 %v8100_v11  ;;  %v8210_v10 = vcombine.low %v612_v39, %v620_v63  ;;  %v8212_v11 = vcombine.low %v613_v0, %v621_v1  ;;  %v724_v39 = vld [vmem:[%s12076_s1 + $0x1610] sm:$0xff]  ;;  %v725_v0 = vld [vmem:[%s12076_s1 + $0x1618] sm:$0xff] }
 0x17f   :  { %6673 = vmatprep.subr.bf16.mxu0 %v8115_v13  ;;  %6837 = vmatprep.subr.bf16.mxu1 %v8117_v14  ;;  %v8227_v13 = vcombine.high %v628_v6, %v636_v7  ;;  %v8229_v14 = vcombine.high %v629_v8, %v637_v9  ;;  %v732_v63 = vld [vmem:[%s12076_s1 + $0x1650] sm:$0xff]  ;;  %v733_v1 = vld [vmem:[%s12076_s1 + $0x1658] sm:$0xff] }
 0x182   :  { %6674 = vmatpush1.bf16.msra.mxu0 %v8114_v19  ;;  %6838 = vmatpush1.bf16.msra.mxu1 %v8116_v20  ;;  %v8226_v19 = vcombine.low %v628_v6, %v636_v7  ;;  %v8228_v20 = vcombine.low %v629_v8, %v637_v9  ;;  %v740_v6 = vld [vmem:[%s12076_s1 + $0x1690] sm:$0xff]  ;;  %v741_v8 = vld [vmem:[%s12076_s1 + $0x1698] sm:$0xff] }
 0x183   :  { %6684 = vmatprep.subr.bf16.mxu0 %v8131_v23  ;;  %6848 = vmatprep.subr.bf16.mxu1 %v8133_v24  ;;  %v8243_v23 = vcombine.high %v644_v16, %v652_v17  ;;  %v8245_v24 = vcombine.high %v645_v53, %v653_v18  ;;  %v748_v7 = vld [vmem:[%s12076_s1 + $0x16d0] sm:$0xff]  ;;  %v749_v9 = vld [vmem:[%s12076_s1 + $0x16d8] sm:$0xff] }
 0x185   :  { %6676 = vmatmul.mubr.bf16.vlgmr.msra.gmra.mrb[4].mxu0 %v9211_v22  ;;  %6840 = vmatmul.mubr.bf16.vlgmr.msra.gmra.mrb[4].mxu1 %v9211_v22 }
 0x186   :  { %6685 = vmatpush1.bf16.msra.mxu0 %v8130_v29  ;;  %6849 = vmatpush1.bf16.msra.mxu1 %v8132_v30  ;;  %v8242_v29 = vcombine.low %v644_v16, %v652_v17  ;;  %v8244_v30 = vcombine.low %v645_v53, %v653_v18  ;;  %v756_v16 = vld [vmem:[%s12076_s1 + $0x1710] sm:$0xff]  ;;  %v757_v53 = vld [vmem:[%s12076_s1 + $0x1718] sm:$0xff] }
 0x187   :  { %6686 = vmatprep.subr.bf16.mxu0 %v8147_v32  ;;  %6850 = vmatprep.subr.bf16.mxu1 %v8149_v33  ;;  %v8259_v32 = vcombine.high %v660_v26, %v668_v27  ;;  %v8261_v33 = vcombine.high %v661_v15, %v669_v28  ;;  %v764_v17 = vld [vmem:[%s12076_s1 + $0x1750] sm:$0xff]  ;;  %v765_v18 = vld [vmem:[%s12076_s1 + $0x1758] sm:$0xff] }
 0x188   :  { %6716 = vmatprep.mubr.bf16.mxu0 %v9232_v31  ;;  %6880 = vmatprep.mubr.bf16.mxu1 %v9232_v31 }
 0x18a   :  { %6687 = vmatpush1.bf16.msra.mxu0 %v8146_v40  ;;  %6851 = vmatpush1.bf16.msra.mxu1 %v8148_v41  ;;  %v8258_v40 = vcombine.low %v660_v26, %v668_v27  ;;  %v8260_v41 = vcombine.low %v661_v15, %v669_v28  ;;  %v772_v26 = vld [vmem:[%s12076_s1 + $0x1790] sm:$0xff]  ;;  %v773_v15 = vld [vmem:[%s12076_s1 + $0x1798] sm:$0xff] }
 0x18b   :  { %6688 = vmatprep.subr.bf16.mxu0 %v8163_v25  ;;  %6852 = vmatprep.subr.bf16.mxu1 %v8165_v42  ;;  %v8275_v25 = vcombine.high %v676_v34, %v684_v35  ;;  %v8277_v42 = vcombine.high %v677_v37, %v685_v38  ;;  %v780_v27 = vld [vmem:[%s12076_s1 + $0x17d0] sm:$0xff]  ;;  %v781_v28 = vld [vmem:[%s12076_s1 + $0x17d8] sm:$0xff] }
 0x18e   :  { %6689 = vmatpush1.bf16.msra.mxu0 %v8162_v48  ;;  %6853 = vmatpush1.bf16.msra.mxu1 %v8164_v49  ;;  %v8274_v48 = vcombine.low %v676_v34, %v684_v35  ;;  %v8276_v49 = vcombine.low %v677_v37, %v685_v38  ;;  %v788_v34 = vld [vmem:[%s12076_s1 + $0x1810] sm:$0xff]  ;;  %v789_v37 = vld [vmem:[%s12076_s1 + $0x1818] sm:$0xff] }
 0x18f   :  { %6690 = vmatprep.subr.bf16.mxu0 %v8179_v50  ;;  %6854 = vmatprep.subr.bf16.mxu1 %v8181_v51  ;;  %v8291_v50 = vcombine.high %v692_v43, %v700_v44  ;;  %v8293_v51 = vcombine.high %v693_v46, %v701_v47  ;;  %v796_v35 = vld [vmem:[%s12076_s1 + $0x1850] sm:$0xff]  ;;  %v797_v38 = vld [vmem:[%s12076_s1 + $0x1858] sm:$0xff] }
 0x192   :  { %6691 = vmatpush1.bf16.msra.mxu0 %v8178_v59  ;;  %6855 = vmatpush1.bf16.msra.mxu1 %v8180_v60  ;;  %v8290_v59 = vcombine.low %v692_v43, %v700_v44  ;;  %v8292_v60 = vcombine.low %v693_v46, %v701_v47  ;;  %v804_v43 = vld [vmem:[%s12076_s1 + $0x1890] sm:$0xff]  ;;  %v805_v46 = vld [vmem:[%s12076_s1 + $0x1898] sm:$0xff] }
 0x193   :  { %6692 = vmatprep.subr.bf16.mxu0 %v8195_v61  ;;  %6856 = vmatprep.subr.bf16.mxu1 %v8197_v62  ;;  %v8307_v61 = vcombine.high %v708_v52, %v716_v54  ;;  %v8309_v62 = vcombine.high %v709_v56, %v717_v58  ;;  %v812_v44 = vld [vmem:[%s12076_s1 + $0x18d0] sm:$0xff]  ;;  %v813_v47 = vld [vmem:[%s12076_s1 + $0x18d8] sm:$0xff] }
 0x196   :  { %6693 = vmatpush1.bf16.msra.mxu0 %v8194_v2  ;;  %6857 = vmatpush1.bf16.msra.mxu1 %v8196_v3  ;;  %v8306_v2 = vcombine.low %v708_v52, %v716_v54  ;;  %v8308_v3 = vcombine.low %v709_v56, %v717_v58  ;;  %v820_v52 = vld [vmem:[%s12076_s1 + $0x1910] sm:$0xff]  ;;  %v821_v56 = vld [vmem:[%s12076_s1 + $0x1918] sm:$0xff] }
 0x197   :  { %6694 = vmatprep.subr.bf16.mxu0 %v8211_v4  ;;  %6858 = vmatprep.subr.bf16.mxu1 %v8213_v5  ;;  %v8323_v4 = vcombine.high %v724_v39, %v732_v63  ;;  %v8325_v5 = vcombine.high %v725_v0, %v733_v1  ;;  %v828_v54 = vld [vmem:[%s12076_s1 + $0x1950] sm:$0xff]  ;;  %v829_v58 = vld [vmem:[%s12076_s1 + $0x1958] sm:$0xff] }
 0x19a   :  { %6695 = vmatpush1.bf16.msra.mxu0 %v8210_v10  ;;  %6859 = vmatpush1.bf16.msra.mxu1 %v8212_v11  ;;  %v8322_v10 = vcombine.low %v724_v39, %v732_v63  ;;  %v8324_v11 = vcombine.low %v725_v0, %v733_v1  ;;  %v836_v39 = vld [vmem:[%s12076_s1 + $0x1990] sm:$0xff]  ;;  %v837_v0 = vld [vmem:[%s12076_s1 + $0x1998] sm:$0xff] }
 0x19b   :  { %6696 = vmatprep.subr.bf16.mxu0 %v8227_v13  ;;  %6860 = vmatprep.subr.bf16.mxu1 %v8229_v14  ;;  %v8339_v13 = vcombine.high %v740_v6, %v748_v7  ;;  %v8341_v14 = vcombine.high %v741_v8, %v749_v9  ;;  %v844_v63 = vld [vmem:[%s12076_s1 + $0x19d0] sm:$0xff]  ;;  %v845_v1 = vld [vmem:[%s12076_s1 + $0x19d8] sm:$0xff] }
 0x19e   :  { %6697 = vmatpush1.bf16.msra.mxu0 %v8226_v19  ;;  %6861 = vmatpush1.bf16.msra.mxu1 %v8228_v20  ;;  %v8338_v19 = vcombine.low %v740_v6, %v748_v7  ;;  %v8340_v20 = vcombine.low %v741_v8, %v749_v9  ;;  %v8437_v6 = vcombine.high %v837_v0, %v845_v1  ;;  %v852_v7 = vld [vmem:[%s12076_s1 + $0x1a10] sm:$0xff]  ;;  %v853_v9 = vld [vmem:[%s12076_s1 + $0x1a18] sm:$0xff] }
 0x19f   :  { %6698 = vmatprep.subr.bf16.mxu0 %v8243_v23  ;;  %6862 = vmatprep.subr.bf16.mxu1 %v8245_v24  ;;  %v8355_v23 = vcombine.high %v756_v16, %v764_v17  ;;  %v8357_v24 = vcombine.high %v757_v53, %v765_v18  ;;  %v860_v8 = vld [vmem:[%s12076_s1 + $0x1a50] sm:$0xff] }
 0x1a2   :  { %6699 = vmatpush1.bf16.msra.mxu0 %v8242_v29  ;;  %6863 = vmatpush1.bf16.msra.mxu1 %v8244_v30  ;;  %v8354_v29 = vcombine.low %v756_v16, %v764_v17  ;;  %v8356_v30 = vcombine.low %v757_v53, %v765_v18  ;;  %v8451_v16 = vcombine.high %v852_v7, %v860_v8  ;;  %v868_v53 = vld [vmem:[%s12076_s1 + $0x1a90] sm:$0xff] }
 0x1a3   :  { %6700 = vmatprep.subr.bf16.mxu0 %v8259_v32  ;;  %6864 = vmatprep.subr.bf16.mxu1 %v8261_v33  ;;  %v8371_v32 = vcombine.high %v772_v26, %v780_v27  ;;  %v8373_v33 = vcombine.high %v773_v15, %v781_v28  ;;  %v876_v18 = vld [vmem:[%s12076_s1 + $0x1ad0] sm:$0xff] }
 0x1a6   :  { %6701 = vmatpush1.bf16.msra.mxu0 %v8258_v40  ;;  %6865 = vmatpush1.bf16.msra.mxu1 %v8260_v41  ;;  %v8370_v40 = vcombine.low %v772_v26, %v780_v27  ;;  %v8372_v41 = vcombine.low %v773_v15, %v781_v28  ;;  %v1042_v26 = vld [vmem:[%s12078_s2] sm:$0xff] }
 0x1a7   :  { %6702 = vmatprep.subr.bf16.mxu0 %v8275_v25  ;;  %6866 = vmatprep.subr.bf16.mxu1 %v8277_v42  ;;  %v8387_v25 = vcombine.high %v788_v34, %v796_v35  ;;  %v8389_v42 = vcombine.high %v789_v37, %v797_v38 }
 0x1aa   :  { %6703 = vmatpush1.bf16.msra.mxu0 %v8274_v48  ;;  %6867 = vmatpush1.bf16.msra.mxu1 %v8276_v49  ;;  %v8386_v48 = vcombine.low %v788_v34, %v796_v35  ;;  %v8388_v49 = vcombine.low %v789_v37, %v797_v38  ;;  %v892_v34 = vld [vmem:[%s12076_s1 + $0x1b50] sm:$0xff]  ;;  %v885_v37 = vld [vmem:[%s12076_s1 + $0x1b18] sm:$0xff] }
 0x1ab   :  { %6704 = vmatprep.subr.bf16.mxu0 %v8291_v50  ;;  %6868 = vmatprep.subr.bf16.mxu1 %v8293_v51  ;;  %v8403_v50 = vcombine.high %v804_v43, %v812_v44  ;;  %v8405_v51 = vcombine.high %v805_v46, %v813_v47  ;;  %v893_v38 = vld [vmem:[%s12076_s1 + $0x1b58] sm:$0xff] }
 0x1ae   :  { %6705 = vmatpush1.bf16.msra.mxu0 %v8290_v59  ;;  %6869 = vmatpush1.bf16.msra.mxu1 %v8292_v60  ;;  %v8402_v59 = vcombine.low %v804_v43, %v812_v44  ;;  %v8404_v60 = vcombine.low %v805_v46, %v813_v47  ;;  %v8485_v47 = vcombine.high %v885_v37, %v893_v38 }
 0x1af   :  { %6706 = vmatprep.subr.bf16.mxu0 %v8307_v61  ;;  %6870 = vmatprep.subr.bf16.mxu1 %v8309_v62  ;;  %v8419_v61 = vcombine.high %v820_v52, %v828_v54  ;;  %v8421_v62 = vcombine.high %v821_v56, %v829_v58 }
 0x1b2   :  { %6707 = vmatpush1.bf16.msra.mxu0 %v8306_v2  ;;  %6871 = vmatpush1.bf16.msra.mxu1 %v8308_v3  ;;  %v1046_v2 = vlaneseq  ;;  %v8418_v3 = vcombine.low %v820_v52, %v828_v54  ;;  %v901_v54 = vld [vmem:[%s12076_s1 + $0x1b98] sm:$0xff] }
 0x1b3   :  { %6708 = vmatprep.subr.bf16.mxu0 %v8323_v4  ;;  %6872 = vmatprep.subr.bf16.mxu1 %v8325_v5  ;;  %v8420_v4 = vcombine.low %v821_v56, %v829_v58  ;;  %v8435_v5 = vcombine.high %v836_v39, %v844_v63  ;;  %v909_v56 = vld [vmem:[%s12076_s1 + $0x1bd8] sm:$0xff] }
 0x1b6   :  { %6709 = vmatpush1.bf16.msra.mxu0 %v8322_v10  ;;  %6873 = vmatpush1.bf16.msra.mxu1 %v8324_v11  ;;  %v861_v10 = vld [vmem:[%s12076_s1 + $0x1a58] sm:$0xff]  ;;  %v10265_v11 = vshrl.u32 %v1046_v2, 7 }
 0x1b7   :  { %6710 = vmatprep.subr.bf16.mxu0 %v8339_v13  ;;  %6874 = vmatprep.subr.bf16.mxu1 %v8341_v14  ;;  %v8434_v13 = vcombine.low %v836_v39, %v844_v63  ;;  %v8436_v14 = vcombine.low %v837_v0, %v845_v1  ;;  %v8453_v17 = vcombine.high %v853_v9, %v861_v10 }
 0x1b8   :  { %v1056_v27 = vsub.s32 2, %v10265_v11  ;;  %v1052_v15 = vsub.s32 1, %v10265_v11  ;;  %v8452_v28 = vcombine.low %v853_v9, %v861_v10  ;;  %v8484_v1 = vcombine.low %v885_v37, %v893_v38 }
 0x1b9   :  { %v8500_v10 = vcombine.low %v901_v54, %v909_v56 }
 0x1ba   :  { %6711 = vmatpush1.bf16.msra.mxu0 %v8338_v19  ;;  %6875 = vmatpush1.bf16.msra.mxu1 %v8340_v20  ;;  %v1048_v19 = vsub.s32 0, %v10265_v11  ;;  %v869_v20 = vld [vmem:[%s12076_s1 + $0x1a98] sm:$0xff] }
 0x1bb   :  { %6712 = vmatprep.subr.bf16.mxu0 %v8355_v23  ;;  %6876 = vmatprep.subr.bf16.mxu1 %v8357_v24  ;;  %v877_v23 = vld [vmem:[%s12076_s1 + $0x1ad8] sm:$0xff]  ;;  %v8450_v24 = vcombine.low %v852_v7, %v860_v8 }
 0x1bc   :  { %v1049_v35 = vrot.slane %v1042_v26, %v1048_v19  ;;  %v8468_v43 = vcombine.low %v869_v20, %v877_v23  ;;  %v917_v7 = vld [vmem:[%s12076_s1 + $0x1c18] sm:$0xff] }
 0x1bd   :  { %v925_v8 = vld [vmem:[%s12076_s1 + $0x1c58] sm:$0xff] }
 0x1be   :  { %6713 = vmatpush1.bf16.msra.mxu0 %v8354_v29  ;;  %6877 = vmatpush1.bf16.msra.mxu1 %v8356_v30  ;;  %v1060_v29 = vsub.s32 3, %v10265_v11  ;;  %v8467_v30 = vcombine.high %v868_v53, %v876_v18 }
 0x1bf   :  { %6714 = vmatprep.subr.bf16.mxu0 %v8371_v32  ;;  %6878 = vmatprep.subr.bf16.mxu1 %v8373_v33  ;;  %v8469_v32 = vcombine.high %v869_v20, %v877_v23  ;;  %v884_v33 = vld [vmem:[%s12076_s1 + $0x1b10] sm:$0xff]  ;;  %v8516_v23 = vcombine.low %v917_v7, %v925_v8 }
 0x1c0   :  { %v8483_v44 = vcombine.high %v884_v33, %v892_v34 }
 0x1c2   :  { %6715 = vmatpush1.bf16.msra.mxu0 %v8370_v40  ;;  %6879 = vmatpush1.bf16.msra.mxu1 %v8372_v41  ;;  %v1057_v40 = vrot.slane %v1042_v26, %v1056_v27  ;;  %v1053_v41 = vrot.slane %v1042_v26, %v1052_v15 }
 0x1c3   :  { %6725 = vmatprep.subr.bf16.mxu0 %v8387_v25  ;;  %6889 = vmatprep.subr.bf16.mxu1 %v8389_v42  ;;  %v8466_v25 = vcombine.low %v868_v53, %v876_v18  ;;  %v1061_v42 = vrot.slane %v1042_v26, %v1060_v29  ;;  %v933_v53 = vld [vmem:[%s12076_s1 + $0x1c98] sm:$0xff] }
 0x1c4   :  { %v941_v18 = vld [vmem:[%s12076_s1 + $0x1cd8] sm:$0xff] }
 0x1c5   :  { %6717 = vmatmul.mubr.bf16.vlgmr.msra.gmra.mrb[4].mxu0 %v9420_v36  ;;  %6881 = vmatmul.mubr.bf16.vlgmr.msra.gmra.mrb[4].mxu1 %v9420_v36  ;;  %v8533_v26 = vcombine.high %v933_v53, %v941_v18 }
 0x1c6   :  { %6726 = vmatpush1.bf16.msra.mxu0 %v8386_v48  ;;  %6890 = vmatpush1.bf16.msra.mxu1 %v8388_v49  ;;  %v900_v48 = vld [vmem:[%s12076_s1 + $0x1b90] sm:$0xff] }
 0x1c7   :  { %6727 = vmatprep.subr.bf16.mxu0 %v8403_v50  ;;  %6891 = vmatprep.subr.bf16.mxu1 %v8405_v51  ;;  %v908_v49 = vld [vmem:[%s12076_s1 + $0x1bd0] sm:$0xff] }
 0x1c8   :  { %6757 = vmatprep.mubr.bf16.mxu0 %v9441_v45  ;;  %6921 = vmatprep.mubr.bf16.mxu1 %v9441_v45  ;;  %v8499_v2 = vcombine.high %v900_v48, %v908_v49  ;;  %v8498_v9 = vcombine.low %v900_v48, %v908_v49  ;;  %v980_v48 = vld [vmem:[%s12076_s1 + $0x1e10] sm:$0xff] }
 0x1c9   :  { %v988_v49 = vld [vmem:[%s12076_s1 + $0x1e50] sm:$0xff] }
 0x1ca   :  { %6728 = vmatpush1.bf16.msra.mxu0 %v8402_v59  ;;  %6892 = vmatpush1.bf16.msra.mxu1 %v8404_v60 }
 0x1cb   :  { %6729 = vmatprep.subr.bf16.mxu0 %v8419_v61  ;;  %6893 = vmatprep.subr.bf16.mxu1 %v8421_v62  ;;  %v8482_v62 = vcombine.low %v884_v33, %v892_v34  ;;  %v957_v33 = vld [vmem:[%s12076_s1 + $0x1d58] sm:$0xff] }
 0x1ce   :  { %6730 = vmatpush1.bf16.msra.mxu0 %v8418_v3  ;;  %6894 = vmatpush1.bf16.msra.mxu1 %v8420_v4  ;;  %v8501_v4 = vcombine.high %v901_v54, %v909_v56  ;;  %v8579_v56 = vcombine.high %v980_v48, %v988_v49 }
 0x1cf   :  { %6731 = vmatprep.subr.bf16.mxu0 %v8435_v5  ;;  %6895 = vmatprep.subr.bf16.mxu1 %v8437_v6  ;;  %v916_v5 = vld [vmem:[%s12076_s1 + $0x1c10] sm:$0xff] }
 0x1d0   :  { %v924_v6 = vld [vmem:[%s12076_s1 + $0x1c50] sm:$0xff] }
 0x1d1   :  { %v8514_v20 = vcombine.low %v916_v5, %v924_v6 }
 0x1d2   :  { %6732 = vmatpush1.bf16.msra.mxu0 %v8434_v13  ;;  %6896 = vmatpush1.bf16.msra.mxu1 %v8436_v14  ;;  %v8515_v13 = vcombine.high %v916_v5, %v924_v6  ;;  %v8517_v14 = vcombine.high %v917_v7, %v925_v8  ;;  %v1021_v5 = vld [vmem:[%s12076_s1 + $0x1f58] sm:$0xff] }
 0x1d3   :  { %6733 = vmatprep.subr.bf16.mxu0 %v8451_v16  ;;  %6897 = vmatprep.subr.bf16.mxu1 %v8453_v17  ;;  %v932_v16 = vld [vmem:[%s12076_s1 + $0x1c90] sm:$0xff] }
 0x1d4   :  { %v940_v17 = vld [vmem:[%s12076_s1 + $0x1cd0] sm:$0xff] }
 0x1d5   :  { %v8530_v34 = vcombine.low %v932_v16, %v940_v17 }
 0x1d6   :  { %6734 = vmatpush1.bf16.msra.mxu0 %v8450_v24  ;;  %6898 = vmatpush1.bf16.msra.mxu1 %v8452_v28  ;;  %v8531_v24 = vcombine.high %v932_v16, %v940_v17  ;;  %v948_v28 = vld [vmem:[%s12076_s1 + $0x1d10] sm:$0xff]  ;;  %v1037_v16 = vld [vmem:[%s12076_s1 + $0x1fd8] sm:$0xff] }
 0x1d7   :  { %6735 = vmatprep.subr.bf16.mxu0 %v8467_v30  ;;  %6899 = vmatprep.subr.bf16.mxu1 %v8469_v32  ;;  %v956_v30 = vld [vmem:[%s12076_s1 + $0x1d50] sm:$0xff]  ;;  %v949_v32 = vld [vmem:[%s12076_s1 + $0x1d18] sm:$0xff] }
 0x1d8   :  { %v6431_v46 = vpop.f32.mrb[0].mxu0  ;;  %v6595_v51 = vpop.f32.mrb[0].mxu1  ;;  %v8547_v37 = vcombine.high %v948_v28, %v956_v30  ;;  %v8549_v38 = vcombine.high %v949_v32, %v957_v33 }
 0x1d9   :  { %v8638_v50 = vadd.f32 %v6431_v46, %v1049_v35  ;;  %v6433_v52 = vpop.f32.mrb[1].mxu0  ;;  %v8640_v58 = vadd.f32 %v6595_v51, %v1057_v40  ;;  %v6597_v60 = vpop.f32.mrb[1].mxu1  ;;  %v8532_v35 = vcombine.low %v933_v53, %v941_v18  ;;  %v964_v40 = vld [vmem:[%s12076_s1 + $0x1d90] sm:$0xff]  ;;  %v989_v51 = vld [vmem:[%s12076_s1 + $0x1e58] sm:$0xff] }
 0x1da   :  { %v8639_v59 = vadd.f32 %v6433_v52, %v1053_v41  ;;  %v6435_v61 = vpop.f32.mrb[2].mxu0  ;;  %6736 = vmatpush1.bf16.msra.mxu0 %v8466_v25  ;;  %v8641_v39 = vadd.f32 %v6597_v60, %v1061_v42  ;;  %v6599_v63 = vpop.f32.mrb[2].mxu1  ;;  %6900 = vmatpush1.bf16.msra.mxu1 %v8468_v43  ;;  %v972_v41 = vld [vmem:[%s12076_s1 + $0x1dd0] sm:$0xff]  ;;  %v965_v25 = vld [vmem:[%s12076_s1 + $0x1d98] sm:$0xff]  ;;  %v8546_v43 = vcombine.low %v948_v28, %v956_v30  ;;  %v31_v28 = vld [vmem:[%s12076_s1 + $0x68] sm:$0xff] }
 0x1db   :  { %7586 = vst [vmem:[%s12079_s3] sm:$0xff] %v8638_v50  ;;  %v6436_v0 = vpop.f32.mrb[3].mxu0  ;;  %6737 = vmatprep.subr.bf16.mxu0 %v8483_v44  ;;  %7588 = vst [vmem:[%s12079_s3 + $0x10] sm:$0xff] %v8640_v58  ;;  %v6600_v3 = vpop.f32.mrb[3].mxu1  ;;  %6901 = vmatprep.subr.bf16.mxu1 %v8485_v47  ;;  %v973_v42 = vld [vmem:[%s12076_s1 + $0x1dd8] sm:$0xff]  ;;  %v8548_v44 = vcombine.low %v949_v32, %v957_v33  ;;  %v8563_v46 = vcombine.high %v964_v40, %v972_v41  ;;  %v1004_v60 = vld [vmem:[%s12076_s1 + $0x1ed0] sm:$0xff] }
 0x1dc   :  { %7587 = vst [vmem:[%s12079_s3 + $0x8] sm:$0xff] %v8639_v59  ;;  %7589 = vst [vmem:[%s12079_s3 + $0x18] sm:$0xff] %v8641_v39  ;;  %v8565_v47 = vcombine.high %v965_v25, %v973_v42  ;;  %v981_v50 = vld [vmem:[%s12076_s1 + $0x1e18] sm:$0xff]  ;;  %v8562_v52 = vcombine.low %v964_v40, %v972_v41  ;;  %v8564_v54 = vcombine.low %v965_v25, %v973_v42  ;;  %v996_v59 = vld [vmem:[%s12076_s1 + $0x1e90] sm:$0xff] }
 0x1dd   :  { %v8581_v58 = vcombine.high %v981_v50, %v989_v51  ;;  %v997_v61 = vld [vmem:[%s12076_s1 + $0x1e98] sm:$0xff]  ;;  %v8578_v39 = vcombine.low %v980_v48, %v988_v49  ;;  %v8580_v63 = vcombine.low %v981_v50, %v989_v51  ;;  %v8595_v0 = vcombine.high %v996_v59, %v1004_v60  ;;  %v1020_v3 = vld [vmem:[%s12076_s1 + $0x1f50] sm:$0xff]  ;;  %v47_v40 = vld [vmem:[%s12076_s1 + $0xe8] sm:$0xff] }
 0x1de   :  { %6738 = vmatpush1.bf16.msra.mxu0 %v8482_v62  ;;  %6902 = vmatpush1.bf16.msra.mxu1 %v8484_v1  ;;  %v1005_v62 = vld [vmem:[%s12076_s1 + $0x1ed8] sm:$0xff]  ;;  %v8594_v6 = vcombine.low %v996_v59, %v1004_v60  ;;  %v63_v48 = vld [vmem:[%s12076_s1 + $0x168] sm:$0xff] }
 0x1df   :  { %6739 = vmatprep.subr.bf16.mxu0 %v8499_v2  ;;  %6903 = vmatprep.subr.bf16.mxu1 %v8501_v4  ;;  %v8597_v1 = vcombine.high %v997_v61, %v1005_v62  ;;  %v1012_v2 = vld [vmem:[%s12076_s1 + $0x1f10] sm:$0xff]  ;;  %v1013_v4 = vld [vmem:[%s12076_s1 + $0x1f18] sm:$0xff]  ;;  %v8596_v7 = vcombine.low %v997_v61, %v1005_v62  ;;  %v79_v59 = vld [vmem:[%s12076_s1 + $0x1e8] sm:$0xff] }
 0x1e0   :  { %v8611_v8 = vcombine.high %v1012_v2, %v1020_v3  ;;  %v8610_v17 = vcombine.low %v1012_v2, %v1020_v3  ;;  %v8612_v53 = vcombine.low %v1013_v4, %v1021_v5  ;;  %v95_v2 = vld [vmem:[%s12076_s1 + $0x268] sm:$0xff] }
 0x1e2   :  { %6740 = vmatpush1.bf16.msra.mxu0 %v8498_v9  ;;  %6904 = vmatpush1.bf16.msra.mxu1 %v8500_v10  ;;  %v8613_v9 = vcombine.high %v1013_v4, %v1021_v5  ;;  %v1028_v10 = vld [vmem:[%s12076_s1 + $0x1f90] sm:$0xff] }
 0x1e3   :  { %6741 = vmatprep.subr.bf16.mxu0 %v8515_v13  ;;  %6905 = vmatprep.subr.bf16.mxu1 %v8517_v14  ;;  %v1036_v13 = vld [vmem:[%s12076_s1 + $0x1fd0] sm:$0xff]  ;;  %v1029_v14 = vld [vmem:[%s12076_s1 + $0x1f98] sm:$0xff] }
 0x1e4   :  { %v8627_v18 = vcombine.high %v1028_v10, %v1036_v13  ;;  %v8626_v30 = vcombine.low %v1028_v10, %v1036_v13  ;;  %v8628_v32 = vcombine.low %v1029_v14, %v1037_v16  ;;  %v111_v10 = vld [vmem:[%s12076_s1 + $0x2e8] sm:$0xff] }
 0x1e6   :  { %6742 = vmatpush1.bf16.msra.mxu0 %v8514_v20  ;;  %6906 = vmatpush1.bf16.msra.mxu1 %v8516_v23  ;;  %v8629_v20 = vcombine.high %v1029_v14, %v1037_v16  ;;  %v22_v23 = vld [vmem:[%s12076_s1 + $0x20] sm:$0xff] }
 0x1e7   :  { %6743 = vmatprep.subr.bf16.mxu0 %v8531_v24  ;;  %6907 = vmatprep.subr.bf16.mxu1 %v8533_v26  ;;  %v30_v24 = vld [vmem:[%s12076_s1 + $0x60] sm:$0xff]  ;;  %v23_v26 = vld [vmem:[%s12076_s1 + $0x28] sm:$0xff] }
 0x1e8   :  { %v7623_v33 = vcombine.high %v22_v23, %v30_v24  ;;  %v7622_v41 = vcombine.low %v22_v23, %v30_v24  ;;  %v7624_v25 = vcombine.low %v23_v26, %v31_v28  ;;  %v127_v23 = vld [vmem:[%s12076_s1 + $0x368] sm:$0xff] }
 0x1ea   :  { %6744 = vmatpush1.bf16.msra.mxu0 %v8530_v34  ;;  %6908 = vmatpush1.bf16.msra.mxu1 %v8532_v35  ;;  %v7625_v34 = vcombine.high %v23_v26, %v31_v28  ;;  %v38_v35 = vld [vmem:[%s12076_s1 + $0xa0] sm:$0xff] }
 0x1eb   :  { %6745 = vmatprep.subr.bf16.mxu0 %v8547_v37  ;;  %6909 = vmatprep.subr.bf16.mxu1 %v8549_v38  ;;  %v46_v37 = vld [vmem:[%s12076_s1 + $0xe0] sm:$0xff]  ;;  %v39_v38 = vld [vmem:[%s12076_s1 + $0xa8] sm:$0xff] }
 0x1ec   :  { %v7639_v42 = vcombine.high %v38_v35, %v46_v37  ;;  %v7638_v49 = vcombine.low %v38_v35, %v46_v37  ;;  %v7640_v50 = vcombine.low %v39_v38, %v47_v40  ;;  %v143_v35 = vld [vmem:[%s12076_s1 + $0x3e8] sm:$0xff] }
 0x1ee   :  { %6746 = vmatpush1.bf16.msra.mxu0 %v8546_v43  ;;  %6910 = vmatpush1.bf16.msra.mxu1 %v8548_v44  ;;  %v7641_v43 = vcombine.high %v39_v38, %v47_v40  ;;  %v54_v44 = vld [vmem:[%s12076_s1 + $0x120] sm:$0xff] }
 0x1ef   :  { %6747 = vmatprep.subr.bf16.mxu0 %v8563_v46  ;;  %6911 = vmatprep.subr.bf16.mxu1 %v8565_v47  ;;  %v62_v46 = vld [vmem:[%s12076_s1 + $0x160] sm:$0xff]  ;;  %v55_v47 = vld [vmem:[%s12076_s1 + $0x128] sm:$0xff] }
 0x1f0   :  { %v7655_v51 = vcombine.high %v54_v44, %v62_v46  ;;  %v7654_v60 = vcombine.low %v54_v44, %v62_v46  ;;  %v7656_v61 = vcombine.low %v55_v47, %v63_v48  ;;  %v159_v44 = vld [vmem:[%s12076_s1 + $0x468] sm:$0xff] }
 0x1f2   :  { %6748 = vmatpush1.bf16.msra.mxu0 %v8562_v52  ;;  %6912 = vmatpush1.bf16.msra.mxu1 %v8564_v54  ;;  %v7657_v52 = vcombine.high %v55_v47, %v63_v48  ;;  %v70_v54 = vld [vmem:[%s12076_s1 + $0x1a0] sm:$0xff] }
 0x1f3   :  { %6749 = vmatprep.subr.bf16.mxu0 %v8579_v56  ;;  %6913 = vmatprep.subr.bf16.mxu1 %v8581_v58  ;;  %v78_v56 = vld [vmem:[%s12076_s1 + $0x1e0] sm:$0xff]  ;;  %v71_v58 = vld [vmem:[%s12076_s1 + $0x1a8] sm:$0xff] }
 0x1f4   :  { %v7671_v62 = vcombine.high %v70_v54, %v78_v56  ;;  %v7670_v3 = vcombine.low %v70_v54, %v78_v56  ;;  %v7672_v4 = vcombine.low %v71_v58, %v79_v59  ;;  %v175_v54 = vld [vmem:[%s12076_s1 + $0x4e8] sm:$0xff] }
 0x1f6   :  { %6750 = vmatpush1.bf16.msra.mxu0 %v8578_v39  ;;  %6914 = vmatpush1.bf16.msra.mxu1 %v8580_v63  ;;  %v7673_v39 = vcombine.high %v71_v58, %v79_v59  ;;  %v86_v63 = vld [vmem:[%s12076_s1 + $0x220] sm:$0xff] }
 0x1f7   :  { %6751 = vmatprep.subr.bf16.mxu0 %v8595_v0  ;;  %6915 = vmatprep.subr.bf16.mxu1 %v8597_v1  ;;  %v94_v0 = vld [vmem:[%s12076_s1 + $0x260] sm:$0xff]  ;;  %v87_v1 = vld [vmem:[%s12076_s1 + $0x228] sm:$0xff] }
 0x1f8   :  { %v7687_v5 = vcombine.high %v86_v63, %v94_v0  ;;  %v7686_v13 = vcombine.low %v86_v63, %v94_v0  ;;  %v7688_v14 = vcombine.low %v87_v1, %v95_v2  ;;  %v191_v63 = vld [vmem:[%s12076_s1 + $0x568] sm:$0xff] }
 0x1fa   :  { %6752 = vmatpush1.bf16.msra.mxu0 %v8594_v6  ;;  %6916 = vmatpush1.bf16.msra.mxu1 %v8596_v7  ;;  %v7689_v6 = vcombine.high %v87_v1, %v95_v2  ;;  %v102_v7 = vld [vmem:[%s12076_s1 + $0x2a0] sm:$0xff] }
 0x1fb   :  { %6753 = vmatprep.subr.bf16.mxu0 %v8611_v8  ;;  %6917 = vmatprep.subr.bf16.mxu1 %v8613_v9  ;;  %v110_v8 = vld [vmem:[%s12076_s1 + $0x2e0] sm:$0xff]  ;;  %v103_v9 = vld [vmem:[%s12076_s1 + $0x2a8] sm:$0xff] }
 0x1fc   :  { %v7703_v16 = vcombine.high %v102_v7, %v110_v8  ;;  %v7702_v24 = vcombine.low %v102_v7, %v110_v8  ;;  %v7704_v26 = vcombine.low %v103_v9, %v111_v10  ;;  %v207_v7 = vld [vmem:[%s12076_s1 + $0x5e8] sm:$0xff] }
 0x1fe   :  { %6754 = vmatpush1.bf16.msra.mxu0 %v8610_v17  ;;  %6918 = vmatpush1.bf16.msra.mxu1 %v8612_v53  ;;  %v7705_v17 = vcombine.high %v103_v9, %v111_v10  ;;  %v118_v53 = vld [vmem:[%s12076_s1 + $0x320] sm:$0xff] }
 0x1ff   :  { %6755 = vmatprep.subr.bf16.mxu0 %v8627_v18  ;;  %6919 = vmatprep.subr.bf16.mxu1 %v8629_v20  ;;  %v126_v18 = vld [vmem:[%s12076_s1 + $0x360] sm:$0xff]  ;;  %v119_v20 = vld [vmem:[%s12076_s1 + $0x328] sm:$0xff] }
 0x200   :  { %v7719_v28 = vcombine.high %v118_v53, %v126_v18  ;;  %v7718_v37 = vcombine.low %v118_v53, %v126_v18  ;;  %v7720_v38 = vcombine.low %v119_v20, %v127_v23  ;;  %v223_v53 = vld [vmem:[%s12076_s1 + $0x668] sm:$0xff] }
 0x202   :  { %6756 = vmatpush1.bf16.msra.mxu0 %v8626_v30  ;;  %6920 = vmatpush1.bf16.msra.mxu1 %v8628_v32  ;;  %v7721_v30 = vcombine.high %v119_v20, %v127_v23  ;;  %v134_v32 = vld [vmem:[%s12076_s1 + $0x3a0] sm:$0xff] }
 0x203   :  { %6930 = vmatprep.subr.bf16.mxu0 %v7623_v33  ;;  %7094 = vmatprep.subr.bf16.mxu1 %v7625_v34  ;;  %v142_v33 = vld [vmem:[%s12076_s1 + $0x3e0] sm:$0xff]  ;;  %v135_v34 = vld [vmem:[%s12076_s1 + $0x3a8] sm:$0xff] }
 0x204   :  { %v7735_v40 = vcombine.high %v134_v32, %v142_v33  ;;  %v7734_v46 = vcombine.low %v134_v32, %v142_v33  ;;  %v7736_v47 = vcombine.low %v135_v34, %v143_v35  ;;  %v239_v32 = vld [vmem:[%s12076_s1 + $0x6e8] sm:$0xff] }
 0x205   :  { %6758 = vmatmul.mubr.bf16.vlgmr.msra.gmra.mrb[4].mxu0 %v9629_v55  ;;  %6922 = vmatmul.mubr.bf16.vlgmr.msra.gmra.mrb[4].mxu1 %v9629_v55 }
 0x206   :  { %6931 = vmatpush1.bf16.msra.mxu0 %v7622_v41  ;;  %7095 = vmatpush1.bf16.msra.mxu1 %v7624_v25  ;;  %v7737_v41 = vcombine.high %v135_v34, %v143_v35  ;;  %v150_v25 = vld [vmem:[%s12076_s1 + $0x420] sm:$0xff] }
 0x207   :  { %6932 = vmatprep.subr.bf16.mxu0 %v7639_v42  ;;  %7096 = vmatprep.subr.bf16.mxu1 %v7641_v43  ;;  %v158_v42 = vld [vmem:[%s12076_s1 + $0x460] sm:$0xff]  ;;  %v151_v43 = vld [vmem:[%s12076_s1 + $0x428] sm:$0xff] }
 0x208   :  { %6962 = vmatprep.mubr.bf16.mxu0 %v8876_v57  ;;  %7126 = vmatprep.mubr.bf16.mxu1 %v8876_v57  ;;  %v7751_v48 = vcombine.high %v150_v25, %v158_v42  ;;  %v7750_v56 = vcombine.low %v150_v25, %v158_v42  ;;  %v7752_v58 = vcombine.low %v151_v43, %v159_v44  ;;  %v255_v25 = vld [vmem:[%s12076_s1 + $0x768] sm:$0xff] }
 0x20a   :  { %6933 = vmatpush1.bf16.msra.mxu0 %v7638_v49  ;;  %7097 = vmatpush1.bf16.msra.mxu1 %v7640_v50  ;;  %v7753_v49 = vcombine.high %v151_v43, %v159_v44  ;;  %v166_v50 = vld [vmem:[%s12076_s1 + $0x4a0] sm:$0xff] }
 0x20b   :  { %6934 = vmatprep.subr.bf16.mxu0 %v7655_v51  ;;  %7098 = vmatprep.subr.bf16.mxu1 %v7657_v52  ;;  %v174_v51 = vld [vmem:[%s12076_s1 + $0x4e0] sm:$0xff]  ;;  %v167_v52 = vld [vmem:[%s12076_s1 + $0x4a8] sm:$0xff] }
 0x20c   :  { %v7767_v59 = vcombine.high %v166_v50, %v174_v51  ;;  %v7766_v0 = vcombine.low %v166_v50, %v174_v51  ;;  %v7768_v1 = vcombine.low %v167_v52, %v175_v54  ;;  %v271_v50 = vld [vmem:[%s12076_s1 + $0x7e8] sm:$0xff] }
 0x20e   :  { %6935 = vmatpush1.bf16.msra.mxu0 %v7654_v60  ;;  %7099 = vmatpush1.bf16.msra.mxu1 %v7656_v61  ;;  %v7769_v60 = vcombine.high %v167_v52, %v175_v54  ;;  %v182_v61 = vld [vmem:[%s12076_s1 + $0x520] sm:$0xff] }
 0x20f   :  { %6936 = vmatprep.subr.bf16.mxu0 %v7671_v62  ;;  %7100 = vmatprep.subr.bf16.mxu1 %v7673_v39  ;;  %v190_v62 = vld [vmem:[%s12076_s1 + $0x560] sm:$0xff]  ;;  %v183_v39 = vld [vmem:[%s12076_s1 + $0x528] sm:$0xff] }
 0x210   :  { %v7783_v2 = vcombine.high %v182_v61, %v190_v62  ;;  %v7782_v8 = vcombine.low %v182_v61, %v190_v62  ;;  %v7784_v9 = vcombine.low %v183_v39, %v191_v63  ;;  %v287_v61 = vld [vmem:[%s12076_s1 + $0x868] sm:$0xff] }
 0x212   :  { %6937 = vmatpush1.bf16.msra.mxu0 %v7670_v3  ;;  %7101 = vmatpush1.bf16.msra.mxu1 %v7672_v4  ;;  %v7785_v3 = vcombine.high %v183_v39, %v191_v63  ;;  %v198_v4 = vld [vmem:[%s12076_s1 + $0x5a0] sm:$0xff] }
 0x213   :  { %6938 = vmatprep.subr.bf16.mxu0 %v7687_v5  ;;  %7102 = vmatprep.subr.bf16.mxu1 %v7689_v6  ;;  %v206_v5 = vld [vmem:[%s12076_s1 + $0x5e0] sm:$0xff]  ;;  %v199_v6 = vld [vmem:[%s12076_s1 + $0x5a8] sm:$0xff] }
 0x214   :  { %v7799_v10 = vcombine.high %v198_v4, %v206_v5  ;;  %v7798_v18 = vcombine.low %v198_v4, %v206_v5  ;;  %v7800_v20 = vcombine.low %v199_v6, %v207_v7  ;;  %v303_v4 = vld [vmem:[%s12076_s1 + $0x8e8] sm:$0xff] }
 0x216   :  { %6939 = vmatpush1.bf16.msra.mxu0 %v7686_v13  ;;  %7103 = vmatpush1.bf16.msra.mxu1 %v7688_v14  ;;  %v7801_v13 = vcombine.high %v199_v6, %v207_v7  ;;  %v214_v14 = vld [vmem:[%s12076_s1 + $0x620] sm:$0xff] }
 0x217   :  { %6940 = vmatprep.subr.bf16.mxu0 %v7703_v16  ;;  %7104 = vmatprep.subr.bf16.mxu1 %v7705_v17  ;;  %v222_v16 = vld [vmem:[%s12076_s1 + $0x660] sm:$0xff]  ;;  %v215_v17 = vld [vmem:[%s12076_s1 + $0x628] sm:$0xff] }
 0x218   :  { %v7815_v23 = vcombine.high %v214_v14, %v222_v16  ;;  %v7814_v33 = vcombine.low %v214_v14, %v222_v16  ;;  %v7816_v34 = vcombine.low %v215_v17, %v223_v53  ;;  %v319_v14 = vld [vmem:[%s12076_s1 + $0x968] sm:$0xff] }
 0x21a   :  { %6941 = vmatpush1.bf16.msra.mxu0 %v7702_v24  ;;  %7105 = vmatpush1.bf16.msra.mxu1 %v7704_v26  ;;  %v7817_v24 = vcombine.high %v215_v17, %v223_v53  ;;  %v230_v26 = vld [vmem:[%s12076_s1 + $0x6a0] sm:$0xff] }
 0x21b   :  { %6942 = vmatprep.subr.bf16.mxu0 %v7719_v28  ;;  %7106 = vmatprep.subr.bf16.mxu1 %v7721_v30  ;;  %v238_v28 = vld [vmem:[%s12076_s1 + $0x6e0] sm:$0xff]  ;;  %v231_v30 = vld [vmem:[%s12076_s1 + $0x6a8] sm:$0xff] }
 0x21c   :  { %v7831_v35 = vcombine.high %v230_v26, %v238_v28  ;;  %v7830_v42 = vcombine.low %v230_v26, %v238_v28  ;;  %v7832_v43 = vcombine.low %v231_v30, %v239_v32  ;;  %v335_v26 = vld [vmem:[%s12076_s1 + $0x9e8] sm:$0xff] }
 0x21e   :  { %6943 = vmatpush1.bf16.msra.mxu0 %v7718_v37  ;;  %7107 = vmatpush1.bf16.msra.mxu1 %v7720_v38  ;;  %v7833_v37 = vcombine.high %v231_v30, %v239_v32  ;;  %v246_v38 = vld [vmem:[%s12076_s1 + $0x720] sm:$0xff] }
 0x21f   :  { %6944 = vmatprep.subr.bf16.mxu0 %v7735_v40  ;;  %7108 = vmatprep.subr.bf16.mxu1 %v7737_v41  ;;  %v254_v40 = vld [vmem:[%s12076_s1 + $0x760] sm:$0xff]  ;;  %v247_v41 = vld [vmem:[%s12076_s1 + $0x728] sm:$0xff] }
 0x220   :  { %v7847_v44 = vcombine.high %v246_v38, %v254_v40  ;;  %v7846_v51 = vcombine.low %v246_v38, %v254_v40  ;;  %v7848_v52 = vcombine.low %v247_v41, %v255_v25  ;;  %v351_v38 = vld [vmem:[%s12076_s1 + $0xa68] sm:$0xff] }
 0x222   :  { %6945 = vmatpush1.bf16.msra.mxu0 %v7734_v46  ;;  %7109 = vmatpush1.bf16.msra.mxu1 %v7736_v47  ;;  %v7849_v46 = vcombine.high %v247_v41, %v255_v25  ;;  %v262_v47 = vld [vmem:[%s12076_s1 + $0x7a0] sm:$0xff] }
 0x223   :  { %6946 = vmatprep.subr.bf16.mxu0 %v7751_v48  ;;  %7110 = vmatprep.subr.bf16.mxu1 %v7753_v49  ;;  %v270_v48 = vld [vmem:[%s12076_s1 + $0x7e0] sm:$0xff]  ;;  %v263_v49 = vld [vmem:[%s12076_s1 + $0x7a8] sm:$0xff] }
 0x224   :  { %v7863_v54 = vcombine.high %v262_v47, %v270_v48  ;;  %v7862_v62 = vcombine.low %v262_v47, %v270_v48  ;;  %v7864_v39 = vcombine.low %v263_v49, %v271_v50  ;;  %v367_v47 = vld [vmem:[%s12076_s1 + $0xae8] sm:$0xff] }
 0x226   :  { %6947 = vmatpush1.bf16.msra.mxu0 %v7750_v56  ;;  %7111 = vmatpush1.bf16.msra.mxu1 %v7752_v58  ;;  %v7865_v56 = vcombine.high %v263_v49, %v271_v50  ;;  %v278_v58 = vld [vmem:[%s12076_s1 + $0x820] sm:$0xff] }
 0x227   :  { %6948 = vmatprep.subr.bf16.mxu0 %v7767_v59  ;;  %7112 = vmatprep.subr.bf16.mxu1 %v7769_v60  ;;  %v286_v59 = vld [vmem:[%s12076_s1 + $0x860] sm:$0xff]  ;;  %v279_v60 = vld [vmem:[%s12076_s1 + $0x828] sm:$0xff] }
 0x228   :  { %v7879_v63 = vcombine.high %v278_v58, %v286_v59  ;;  %v7878_v5 = vcombine.low %v278_v58, %v286_v59  ;;  %v7880_v6 = vcombine.low %v279_v60, %v287_v61  ;;  %v383_v58 = vld [vmem:[%s12076_s1 + $0xb68] sm:$0xff] }
 0x22a   :  { %6949 = vmatpush1.bf16.msra.mxu0 %v7766_v0  ;;  %7113 = vmatpush1.bf16.msra.mxu1 %v7768_v1  ;;  %v7881_v0 = vcombine.high %v279_v60, %v287_v61  ;;  %v294_v1 = vld [vmem:[%s12076_s1 + $0x8a0] sm:$0xff] }
 0x22b   :  { %6950 = vmatprep.subr.bf16.mxu0 %v7783_v2  ;;  %7114 = vmatprep.subr.bf16.mxu1 %v7785_v3  ;;  %v302_v2 = vld [vmem:[%s12076_s1 + $0x8e0] sm:$0xff]  ;;  %v295_v3 = vld [vmem:[%s12076_s1 + $0x8a8] sm:$0xff] }
 0x22c   :  { %v7895_v7 = vcombine.high %v294_v1, %v302_v2  ;;  %v7894_v16 = vcombine.low %v294_v1, %v302_v2  ;;  %v7896_v17 = vcombine.low %v295_v3, %v303_v4  ;;  %v399_v1 = vld [vmem:[%s12076_s1 + $0xbe8] sm:$0xff] }
 0x22e   :  { %6951 = vmatpush1.bf16.msra.mxu0 %v7782_v8  ;;  %7115 = vmatpush1.bf16.msra.mxu1 %v7784_v9  ;;  %v7897_v8 = vcombine.high %v295_v3, %v303_v4  ;;  %v310_v9 = vld [vmem:[%s12076_s1 + $0x920] sm:$0xff] }
 0x22f   :  { %6952 = vmatprep.subr.bf16.mxu0 %v7799_v10  ;;  %7116 = vmatprep.subr.bf16.mxu1 %v7801_v13  ;;  %v318_v10 = vld [vmem:[%s12076_s1 + $0x960] sm:$0xff]  ;;  %v311_v13 = vld [vmem:[%s12076_s1 + $0x928] sm:$0xff] }
 0x230   :  { %v7911_v53 = vcombine.high %v310_v9, %v318_v10  ;;  %v7910_v28 = vcombine.low %v310_v9, %v318_v10  ;;  %v7912_v30 = vcombine.low %v311_v13, %v319_v14  ;;  %v415_v9 = vld [vmem:[%s12076_s1 + $0xc68] sm:$0xff] }
 0x232   :  { %6953 = vmatpush1.bf16.msra.mxu0 %v7798_v18  ;;  %7117 = vmatpush1.bf16.msra.mxu1 %v7800_v20  ;;  %v7913_v18 = vcombine.high %v311_v13, %v319_v14  ;;  %v326_v20 = vld [vmem:[%s12076_s1 + $0x9a0] sm:$0xff] }
 0x233   :  { %6954 = vmatprep.subr.bf16.mxu0 %v7815_v23  ;;  %7118 = vmatprep.subr.bf16.mxu1 %v7817_v24  ;;  %v334_v23 = vld [vmem:[%s12076_s1 + $0x9e0] sm:$0xff]  ;;  %v327_v24 = vld [vmem:[%s12076_s1 + $0x9a8] sm:$0xff] }
 0x234   :  { %v7927_v32 = vcombine.high %v326_v20, %v334_v23  ;;  %v7926_v40 = vcombine.low %v326_v20, %v334_v23  ;;  %v7928_v41 = vcombine.low %v327_v24, %v335_v26  ;;  %v431_v20 = vld [vmem:[%s12076_s1 + $0xce8] sm:$0xff] }
 0x236   :  { %6955 = vmatpush1.bf16.msra.mxu0 %v7814_v33  ;;  %7119 = vmatpush1.bf16.msra.mxu1 %v7816_v34  ;;  %v7929_v33 = vcombine.high %v327_v24, %v335_v26  ;;  %v342_v34 = vld [vmem:[%s12076_s1 + $0xa20] sm:$0xff] }
 0x237   :  { %6956 = vmatprep.subr.bf16.mxu0 %v7831_v35  ;;  %7120 = vmatprep.subr.bf16.mxu1 %v7833_v37  ;;  %v350_v35 = vld [vmem:[%s12076_s1 + $0xa60] sm:$0xff]  ;;  %v343_v37 = vld [vmem:[%s12076_s1 + $0xa28] sm:$0xff] }
 0x238   :  { %v7943_v25 = vcombine.high %v342_v34, %v350_v35  ;;  %v7942_v48 = vcombine.low %v342_v34, %v350_v35  ;;  %v7944_v49 = vcombine.low %v343_v37, %v351_v38  ;;  %v447_v34 = vld [vmem:[%s12076_s1 + $0xd68] sm:$0xff] }
 0x23a   :  { %6957 = vmatpush1.bf16.msra.mxu0 %v7830_v42  ;;  %7121 = vmatpush1.bf16.msra.mxu1 %v7832_v43  ;;  %v7945_v42 = vcombine.high %v343_v37, %v351_v38  ;;  %v358_v43 = vld [vmem:[%s12076_s1 + $0xaa0] sm:$0xff] }
 0x23b   :  { %6958 = vmatprep.subr.bf16.mxu0 %v7847_v44  ;;  %7122 = vmatprep.subr.bf16.mxu1 %v7849_v46  ;;  %v366_v44 = vld [vmem:[%s12076_s1 + $0xae0] sm:$0xff]  ;;  %v359_v46 = vld [vmem:[%s12076_s1 + $0xaa8] sm:$0xff] }
 0x23c   :  { %v7959_v50 = vcombine.high %v358_v43, %v366_v44  ;;  %v7958_v59 = vcombine.low %v358_v43, %v366_v44  ;;  %v7960_v60 = vcombine.low %v359_v46, %v367_v47  ;;  %v463_v43 = vld [vmem:[%s12076_s1 + $0xde8] sm:$0xff] }
 0x23e   :  { %6959 = vmatpush1.bf16.msra.mxu0 %v7846_v51  ;;  %7123 = vmatpush1.bf16.msra.mxu1 %v7848_v52  ;;  %v7961_v51 = vcombine.high %v359_v46, %v367_v47  ;;  %v374_v52 = vld [vmem:[%s12076_s1 + $0xb20] sm:$0xff] }
 0x23f   :  { %6960 = vmatprep.subr.bf16.mxu0 %v7863_v54  ;;  %7124 = vmatprep.subr.bf16.mxu1 %v7865_v56  ;;  %v382_v54 = vld [vmem:[%s12076_s1 + $0xb60] sm:$0xff]  ;;  %v375_v56 = vld [vmem:[%s12076_s1 + $0xb28] sm:$0xff] }
 0x240   :  { %v7975_v61 = vcombine.high %v374_v52, %v382_v54  ;;  %v7974_v2 = vcombine.low %v374_v52, %v382_v54  ;;  %v7976_v3 = vcombine.low %v375_v56, %v383_v58  ;;  %v479_v52 = vld [vmem:[%s12076_s1 + $0xe68] sm:$0xff] }
 0x242   :  { %6961 = vmatpush1.bf16.msra.mxu0 %v7862_v62  ;;  %7125 = vmatpush1.bf16.msra.mxu1 %v7864_v39  ;;  %v7977_v62 = vcombine.high %v375_v56, %v383_v58  ;;  %v390_v39 = vld [vmem:[%s12076_s1 + $0xba0] sm:$0xff] }
 0x243   :  { %6971 = vmatprep.subr.bf16.mxu0 %v7879_v63  ;;  %7135 = vmatprep.subr.bf16.mxu1 %v7881_v0  ;;  %v398_v63 = vld [vmem:[%s12076_s1 + $0xbe0] sm:$0xff]  ;;  %v391_v0 = vld [vmem:[%s12076_s1 + $0xba8] sm:$0xff] }
 0x244   :  { %v7991_v4 = vcombine.high %v390_v39, %v398_v63  ;;  %v7990_v10 = vcombine.low %v390_v39, %v398_v63  ;;  %v7992_v13 = vcombine.low %v391_v0, %v399_v1  ;;  %v495_v39 = vld [vmem:[%s12076_s1 + $0xee8] sm:$0xff] }
 0x245   :  { %6963 = vmatmul.mubr.bf16.vlgmr.msra.gmra.mrb[8].mxu0 %v9002_v12  ;;  %7127 = vmatmul.mubr.bf16.vlgmr.msra.gmra.mrb[8].mxu1 %v9002_v12 }
 0x246   :  { %6972 = vmatpush1.bf16.msra.mxu0 %v7878_v5  ;;  %7136 = vmatpush1.bf16.msra.mxu1 %v7880_v6  ;;  %v7993_v5 = vcombine.high %v391_v0, %v399_v1  ;;  %v406_v6 = vld [vmem:[%s12076_s1 + $0xc20] sm:$0xff] }
 0x247   :  { %6973 = vmatprep.subr.bf16.mxu0 %v7895_v7  ;;  %7137 = vmatprep.subr.bf16.mxu1 %v7897_v8  ;;  %v414_v7 = vld [vmem:[%s12076_s1 + $0xc60] sm:$0xff]  ;;  %v407_v8 = vld [vmem:[%s12076_s1 + $0xc28] sm:$0xff] }
 0x248   :  { %7003 = vmatprep.mubr.bf16.mxu0 %v9023_v21  ;;  %7167 = vmatprep.mubr.bf16.mxu1 %v9023_v21  ;;  %v8007_v14 = vcombine.high %v406_v6, %v414_v7  ;;  %v8006_v23 = vcombine.low %v406_v6, %v414_v7  ;;  %v8008_v24 = vcombine.low %v407_v8, %v415_v9  ;;  %v511_v6 = vld [vmem:[%s12076_s1 + $0xf68] sm:$0xff] }
 0x24a   :  { %6974 = vmatpush1.bf16.msra.mxu0 %v7894_v16  ;;  %7138 = vmatpush1.bf16.msra.mxu1 %v7896_v17  ;;  %v8009_v16 = vcombine.high %v407_v8, %v415_v9  ;;  %v422_v17 = vld [vmem:[%s12076_s1 + $0xca0] sm:$0xff] }
 0x24b   :  { %6975 = vmatprep.subr.bf16.mxu0 %v7911_v53  ;;  %7139 = vmatprep.subr.bf16.mxu1 %v7913_v18  ;;  %v430_v53 = vld [vmem:[%s12076_s1 + $0xce0] sm:$0xff]  ;;  %v423_v18 = vld [vmem:[%s12076_s1 + $0xca8] sm:$0xff] }
 0x24c   :  { %v8023_v26 = vcombine.high %v422_v17, %v430_v53  ;;  %v8022_v35 = vcombine.low %v422_v17, %v430_v53  ;;  %v8024_v37 = vcombine.low %v423_v18, %v431_v20  ;;  %v527_v17 = vld [vmem:[%s12076_s1 + $0xfe8] sm:$0xff] }
 0x24e   :  { %6976 = vmatpush1.bf16.msra.mxu0 %v7910_v28  ;;  %7140 = vmatpush1.bf16.msra.mxu1 %v7912_v30  ;;  %v8025_v28 = vcombine.high %v423_v18, %v431_v20  ;;  %v438_v30 = vld [vmem:[%s12076_s1 + $0xd20] sm:$0xff] }
 0x24f   :  { %6977 = vmatprep.subr.bf16.mxu0 %v7927_v32  ;;  %7141 = vmatprep.subr.bf16.mxu1 %v7929_v33  ;;  %v446_v32 = vld [vmem:[%s12076_s1 + $0xd60] sm:$0xff]  ;;  %v439_v33 = vld [vmem:[%s12076_s1 + $0xd28] sm:$0xff] }
 0x250   :  { %v8039_v38 = vcombine.high %v438_v30, %v446_v32  ;;  %v8038_v44 = vcombine.low %v438_v30, %v446_v32  ;;  %v8040_v46 = vcombine.low %v439_v33, %v447_v34  ;;  %v543_v30 = vld [vmem:[%s12076_s1 + $0x1068] sm:$0xff] }
 0x252   :  { %6978 = vmatpush1.bf16.msra.mxu0 %v7926_v40  ;;  %7142 = vmatpush1.bf16.msra.mxu1 %v7928_v41  ;;  %v8041_v40 = vcombine.high %v439_v33, %v447_v34  ;;  %v454_v41 = vld [vmem:[%s12076_s1 + $0xda0] sm:$0xff] }
 0x253   :  { %6979 = vmatprep.subr.bf16.mxu0 %v7943_v25  ;;  %7143 = vmatprep.subr.bf16.mxu1 %v7945_v42  ;;  %v462_v25 = vld [vmem:[%s12076_s1 + $0xde0] sm:$0xff]  ;;  %v455_v42 = vld [vmem:[%s12076_s1 + $0xda8] sm:$0xff] }
 0x254   :  { %v8055_v47 = vcombine.high %v454_v41, %v462_v25  ;;  %v8054_v54 = vcombine.low %v454_v41, %v462_v25  ;;  %v8056_v56 = vcombine.low %v455_v42, %v463_v43  ;;  %v559_v41 = vld [vmem:[%s12076_s1 + $0x10e8] sm:$0xff] }
 0x256   :  { %6980 = vmatpush1.bf16.msra.mxu0 %v7942_v48  ;;  %7144 = vmatpush1.bf16.msra.mxu1 %v7944_v49  ;;  %v8057_v48 = vcombine.high %v455_v42, %v463_v43  ;;  %v470_v49 = vld [vmem:[%s12076_s1 + $0xe20] sm:$0xff] }
 0x257   :  { %6981 = vmatprep.subr.bf16.mxu0 %v7959_v50  ;;  %7145 = vmatprep.subr.bf16.mxu1 %v7961_v51  ;;  %v478_v50 = vld [vmem:[%s12076_s1 + $0xe60] sm:$0xff]  ;;  %v471_v51 = vld [vmem:[%s12076_s1 + $0xe28] sm:$0xff] }
 0x258   :  { %v8071_v58 = vcombine.high %v470_v49, %v478_v50  ;;  %v8070_v63 = vcombine.low %v470_v49, %v478_v50  ;;  %v8072_v0 = vcombine.low %v471_v51, %v479_v52  ;;  %v575_v49 = vld [vmem:[%s12076_s1 + $0x1168] sm:$0xff] }
 0x25a   :  { %6982 = vmatpush1.bf16.msra.mxu0 %v7958_v59  ;;  %7146 = vmatpush1.bf16.msra.mxu1 %v7960_v60  ;;  %v8073_v59 = vcombine.high %v471_v51, %v479_v52  ;;  %v486_v60 = vld [vmem:[%s12076_s1 + $0xea0] sm:$0xff] }
 0x25b   :  { %6983 = vmatprep.subr.bf16.mxu0 %v7975_v61  ;;  %7147 = vmatprep.subr.bf16.mxu1 %v7977_v62  ;;  %v494_v61 = vld [vmem:[%s12076_s1 + $0xee0] sm:$0xff]  ;;  %v487_v62 = vld [vmem:[%s12076_s1 + $0xea8] sm:$0xff] }
 0x25c   :  { %v8087_v1 = vcombine.high %v486_v60, %v494_v61  ;;  %v8086_v7 = vcombine.low %v486_v60, %v494_v61  ;;  %v8088_v8 = vcombine.low %v487_v62, %v495_v39  ;;  %v591_v60 = vld [vmem:[%s12076_s1 + $0x11e8] sm:$0xff] }
 0x25e   :  { %6984 = vmatpush1.bf16.msra.mxu0 %v7974_v2  ;;  %7148 = vmatpush1.bf16.msra.mxu1 %v7976_v3  ;;  %v8089_v2 = vcombine.high %v487_v62, %v495_v39  ;;  %v502_v3 = vld [vmem:[%s12076_s1 + $0xf20] sm:$0xff] }
 0x25f   :  { %6985 = vmatprep.subr.bf16.mxu0 %v7991_v4  ;;  %7149 = vmatprep.subr.bf16.mxu1 %v7993_v5  ;;  %v510_v4 = vld [vmem:[%s12076_s1 + $0xf60] sm:$0xff]  ;;  %v503_v5 = vld [vmem:[%s12076_s1 + $0xf28] sm:$0xff] }
 0x260   :  { %v8103_v9 = vcombine.high %v502_v3, %v510_v4  ;;  %v8102_v53 = vcombine.low %v502_v3, %v510_v4  ;;  %v8104_v18 = vcombine.low %v503_v5, %v511_v6  ;;  %v607_v3 = vld [vmem:[%s12076_s1 + $0x1268] sm:$0xff] }
 0x262   :  { %6986 = vmatpush1.bf16.msra.mxu0 %v7990_v10  ;;  %7150 = vmatpush1.bf16.msra.mxu1 %v7992_v13  ;;  %v8105_v10 = vcombine.high %v503_v5, %v511_v6  ;;  %v518_v13 = vld [vmem:[%s12076_s1 + $0xfa0] sm:$0xff] }
 0x263   :  { %6987 = vmatprep.subr.bf16.mxu0 %v8007_v14  ;;  %7151 = vmatprep.subr.bf16.mxu1 %v8009_v16  ;;  %v526_v14 = vld [vmem:[%s12076_s1 + $0xfe0] sm:$0xff]  ;;  %v519_v16 = vld [vmem:[%s12076_s1 + $0xfa8] sm:$0xff] }
 0x264   :  { %v8119_v20 = vcombine.high %v518_v13, %v526_v14  ;;  %v8118_v32 = vcombine.low %v518_v13, %v526_v14  ;;  %v8120_v33 = vcombine.low %v519_v16, %v527_v17  ;;  %v623_v13 = vld [vmem:[%s12076_s1 + $0x12e8] sm:$0xff] }
 0x266   :  { %6988 = vmatpush1.bf16.msra.mxu0 %v8006_v23  ;;  %7152 = vmatpush1.bf16.msra.mxu1 %v8008_v24  ;;  %v8121_v23 = vcombine.high %v519_v16, %v527_v17  ;;  %v534_v24 = vld [vmem:[%s12076_s1 + $0x1020] sm:$0xff] }
 0x267   :  { %6989 = vmatprep.subr.bf16.mxu0 %v8023_v26  ;;  %7153 = vmatprep.subr.bf16.mxu1 %v8025_v28  ;;  %v542_v26 = vld [vmem:[%s12076_s1 + $0x1060] sm:$0xff]  ;;  %v535_v28 = vld [vmem:[%s12076_s1 + $0x1028] sm:$0xff] }
 0x268   :  { %v8135_v34 = vcombine.high %v534_v24, %v542_v26  ;;  %v8134_v25 = vcombine.low %v534_v24, %v542_v26  ;;  %v8136_v42 = vcombine.low %v535_v28, %v543_v30  ;;  %v639_v24 = vld [vmem:[%s12076_s1 + $0x1368] sm:$0xff] }
 0x26a   :  { %6990 = vmatpush1.bf16.msra.mxu0 %v8022_v35  ;;  %7154 = vmatpush1.bf16.msra.mxu1 %v8024_v37  ;;  %v8137_v35 = vcombine.high %v535_v28, %v543_v30  ;;  %v550_v37 = vld [vmem:[%s12076_s1 + $0x10a0] sm:$0xff] }
 0x26b   :  { %6991 = vmatprep.subr.bf16.mxu0 %v8039_v38  ;;  %7155 = vmatprep.subr.bf16.mxu1 %v8041_v40  ;;  %v558_v38 = vld [vmem:[%s12076_s1 + $0x10e0] sm:$0xff]  ;;  %v551_v40 = vld [vmem:[%s12076_s1 + $0x10a8] sm:$0xff] }
 0x26c   :  { %v8151_v43 = vcombine.high %v550_v37, %v558_v38  ;;  %v8150_v50 = vcombine.low %v550_v37, %v558_v38  ;;  %v8152_v51 = vcombine.low %v551_v40, %v559_v41  ;;  %v655_v37 = vld [vmem:[%s12076_s1 + $0x13e8] sm:$0xff] }
 0x26e   :  { %6992 = vmatpush1.bf16.msra.mxu0 %v8038_v44  ;;  %7156 = vmatpush1.bf16.msra.mxu1 %v8040_v46  ;;  %v8153_v44 = vcombine.high %v551_v40, %v559_v41  ;;  %v566_v46 = vld [vmem:[%s12076_s1 + $0x1120] sm:$0xff] }
 0x26f   :  { %6993 = vmatprep.subr.bf16.mxu0 %v8055_v47  ;;  %7157 = vmatprep.subr.bf16.mxu1 %v8057_v48  ;;  %v574_v47 = vld [vmem:[%s12076_s1 + $0x1160] sm:$0xff]  ;;  %v567_v48 = vld [vmem:[%s12076_s1 + $0x1128] sm:$0xff] }
 0x270   :  { %v8167_v52 = vcombine.high %v566_v46, %v574_v47  ;;  %v8166_v61 = vcombine.low %v566_v46, %v574_v47  ;;  %v8168_v62 = vcombine.low %v567_v48, %v575_v49  ;;  %v671_v46 = vld [vmem:[%s12076_s1 + $0x1468] sm:$0xff] }
 0x272   :  { %6994 = vmatpush1.bf16.msra.mxu0 %v8054_v54  ;;  %7158 = vmatpush1.bf16.msra.mxu1 %v8056_v56  ;;  %v8169_v54 = vcombine.high %v567_v48, %v575_v49  ;;  %v582_v56 = vld [vmem:[%s12076_s1 + $0x11a0] sm:$0xff] }
 0x273   :  { %6995 = vmatprep.subr.bf16.mxu0 %v8071_v58  ;;  %7159 = vmatprep.subr.bf16.mxu1 %v8073_v59  ;;  %v590_v58 = vld [vmem:[%s12076_s1 + $0x11e0] sm:$0xff]  ;;  %v583_v59 = vld [vmem:[%s12076_s1 + $0x11a8] sm:$0xff] }
 0x274   :  { %v8183_v39 = vcombine.high %v582_v56, %v590_v58  ;;  %v8182_v4 = vcombine.low %v582_v56, %v590_v58  ;;  %v8184_v5 = vcombine.low %v583_v59, %v591_v60  ;;  %v687_v56 = vld [vmem:[%s12076_s1 + $0x14e8] sm:$0xff] }
 0x276   :  { %6996 = vmatpush1.bf16.msra.mxu0 %v8070_v63  ;;  %7160 = vmatpush1.bf16.msra.mxu1 %v8072_v0  ;;  %v8185_v63 = vcombine.high %v583_v59, %v591_v60  ;;  %v598_v0 = vld [vmem:[%s12076_s1 + $0x1220] sm:$0xff] }
 0x277   :  { %6997 = vmatprep.subr.bf16.mxu0 %v8087_v1  ;;  %7161 = vmatprep.subr.bf16.mxu1 %v8089_v2  ;;  %v606_v1 = vld [vmem:[%s12076_s1 + $0x1260] sm:$0xff]  ;;  %v599_v2 = vld [vmem:[%s12076_s1 + $0x1228] sm:$0xff] }
 0x278   :  { %v8199_v6 = vcombine.high %v598_v0, %v606_v1  ;;  %v8198_v14 = vcombine.low %v598_v0, %v606_v1  ;;  %v8200_v16 = vcombine.low %v599_v2, %v607_v3  ;;  %v703_v0 = vld [vmem:[%s12076_s1 + $0x1568] sm:$0xff] }
 0x27a   :  { %6998 = vmatpush1.bf16.msra.mxu0 %v8086_v7  ;;  %7162 = vmatpush1.bf16.msra.mxu1 %v8088_v8  ;;  %v8201_v7 = vcombine.high %v599_v2, %v607_v3  ;;  %v614_v8 = vld [vmem:[%s12076_s1 + $0x12a0] sm:$0xff] }
 0x27b   :  { %6999 = vmatprep.subr.bf16.mxu0 %v8103_v9  ;;  %7163 = vmatprep.subr.bf16.mxu1 %v8105_v10  ;;  %v622_v9 = vld [vmem:[%s12076_s1 + $0x12e0] sm:$0xff]  ;;  %v615_v10 = vld [vmem:[%s12076_s1 + $0x12a8] sm:$0xff] }
 0x27c   :  { %v8215_v17 = vcombine.high %v614_v8, %v622_v9  ;;  %v8214_v26 = vcombine.low %v614_v8, %v622_v9  ;;  %v8216_v28 = vcombine.low %v615_v10, %v623_v13  ;;  %v719_v8 = vld [vmem:[%s12076_s1 + $0x15e8] sm:$0xff] }
 0x27e   :  { %7000 = vmatpush1.bf16.msra.mxu0 %v8102_v53  ;;  %7164 = vmatpush1.bf16.msra.mxu1 %v8104_v18  ;;  %v8217_v53 = vcombine.high %v615_v10, %v623_v13  ;;  %v630_v18 = vld [vmem:[%s12076_s1 + $0x1320] sm:$0xff] }
 0x27f   :  { %7001 = vmatprep.subr.bf16.mxu0 %v8119_v20  ;;  %7165 = vmatprep.subr.bf16.mxu1 %v8121_v23  ;;  %v638_v20 = vld [vmem:[%s12076_s1 + $0x1360] sm:$0xff]  ;;  %v631_v23 = vld [vmem:[%s12076_s1 + $0x1328] sm:$0xff] }
 0x280   :  { %v8231_v30 = vcombine.high %v630_v18, %v638_v20  ;;  %v8230_v38 = vcombine.low %v630_v18, %v638_v20  ;;  %v8232_v40 = vcombine.low %v631_v23, %v639_v24  ;;  %v735_v18 = vld [vmem:[%s12076_s1 + $0x1668] sm:$0xff] }
 0x282   :  { %7002 = vmatpush1.bf16.msra.mxu0 %v8118_v32  ;;  %7166 = vmatpush1.bf16.msra.mxu1 %v8120_v33  ;;  %v8233_v32 = vcombine.high %v631_v23, %v639_v24  ;;  %v646_v33 = vld [vmem:[%s12076_s1 + $0x13a0] sm:$0xff] }
 0x283   :  { %7012 = vmatprep.subr.bf16.mxu0 %v8135_v34  ;;  %7176 = vmatprep.subr.bf16.mxu1 %v8137_v35  ;;  %v654_v34 = vld [vmem:[%s12076_s1 + $0x13e0] sm:$0xff]  ;;  %v647_v35 = vld [vmem:[%s12076_s1 + $0x13a8] sm:$0xff] }
 0x284   :  { %v8247_v41 = vcombine.high %v646_v33, %v654_v34  ;;  %v8246_v47 = vcombine.low %v646_v33, %v654_v34  ;;  %v8248_v48 = vcombine.low %v647_v35, %v655_v37  ;;  %v751_v33 = vld [vmem:[%s12076_s1 + $0x16e8] sm:$0xff] }
 0x285   :  { %7004 = vmatmul.mubr.bf16.vlgmr.msra.gmra.mrb[8].mxu0 %v9211_v22  ;;  %7168 = vmatmul.mubr.bf16.vlgmr.msra.gmra.mrb[8].mxu1 %v9211_v22 }
 0x286   :  { %7013 = vmatpush1.bf16.msra.mxu0 %v8134_v25  ;;  %7177 = vmatpush1.bf16.msra.mxu1 %v8136_v42  ;;  %v8249_v25 = vcombine.high %v647_v35, %v655_v37  ;;  %v662_v42 = vld [vmem:[%s12076_s1 + $0x1420] sm:$0xff] }
 0x287   :  { %7014 = vmatprep.subr.bf16.mxu0 %v8151_v43  ;;  %7178 = vmatprep.subr.bf16.mxu1 %v8153_v44  ;;  %v670_v43 = vld [vmem:[%s12076_s1 + $0x1460] sm:$0xff]  ;;  %v663_v44 = vld [vmem:[%s12076_s1 + $0x1428] sm:$0xff] }
 0x288   :  { %7044 = vmatprep.mubr.bf16.mxu0 %v9232_v31  ;;  %7208 = vmatprep.mubr.bf16.mxu1 %v9232_v31  ;;  %v8263_v49 = vcombine.high %v662_v42, %v670_v43  ;;  %v8262_v58 = vcombine.low %v662_v42, %v670_v43  ;;  %v8264_v59 = vcombine.low %v663_v44, %v671_v46  ;;  %v767_v42 = vld [vmem:[%s12076_s1 + $0x1768] sm:$0xff] }
 0x28a   :  { %7015 = vmatpush1.bf16.msra.mxu0 %v8150_v50  ;;  %7179 = vmatpush1.bf16.msra.mxu1 %v8152_v51  ;;  %v8265_v50 = vcombine.high %v663_v44, %v671_v46  ;;  %v678_v51 = vld [vmem:[%s12076_s1 + $0x14a0] sm:$0xff] }
 0x28b   :  { %7016 = vmatprep.subr.bf16.mxu0 %v8167_v52  ;;  %7180 = vmatprep.subr.bf16.mxu1 %v8169_v54  ;;  %v686_v52 = vld [vmem:[%s12076_s1 + $0x14e0] sm:$0xff]  ;;  %v679_v54 = vld [vmem:[%s12076_s1 + $0x14a8] sm:$0xff] }
 0x28c   :  { %v8279_v60 = vcombine.high %v678_v51, %v686_v52  ;;  %v8278_v1 = vcombine.low %v678_v51, %v686_v52  ;;  %v8280_v2 = vcombine.low %v679_v54, %v687_v56  ;;  %v783_v51 = vld [vmem:[%s12076_s1 + $0x17e8] sm:$0xff] }
 0x28e   :  { %7017 = vmatpush1.bf16.msra.mxu0 %v8166_v61  ;;  %7181 = vmatpush1.bf16.msra.mxu1 %v8168_v62  ;;  %v8281_v61 = vcombine.high %v679_v54, %v687_v56  ;;  %v694_v62 = vld [vmem:[%s12076_s1 + $0x1520] sm:$0xff] }
 0x28f   :  { %7018 = vmatprep.subr.bf16.mxu0 %v8183_v39  ;;  %7182 = vmatprep.subr.bf16.mxu1 %v8185_v63  ;;  %v702_v39 = vld [vmem:[%s12076_s1 + $0x1560] sm:$0xff]  ;;  %v695_v63 = vld [vmem:[%s12076_s1 + $0x1528] sm:$0xff] }
 0x290   :  { %v8295_v3 = vcombine.high %v694_v62, %v702_v39  ;;  %v8294_v9 = vcombine.low %v694_v62, %v702_v39  ;;  %v8296_v10 = vcombine.low %v695_v63, %v703_v0  ;;  %v799_v62 = vld [vmem:[%s12076_s1 + $0x1868] sm:$0xff] }
 0x292   :  { %7019 = vmatpush1.bf16.msra.mxu0 %v8182_v4  ;;  %7183 = vmatpush1.bf16.msra.mxu1 %v8184_v5  ;;  %v8297_v4 = vcombine.high %v695_v63, %v703_v0  ;;  %v710_v5 = vld [vmem:[%s12076_s1 + $0x15a0] sm:$0xff] }
 0x293   :  { %7020 = vmatprep.subr.bf16.mxu0 %v8199_v6  ;;  %7184 = vmatprep.subr.bf16.mxu1 %v8201_v7  ;;  %v718_v6 = vld [vmem:[%s12076_s1 + $0x15e0] sm:$0xff]  ;;  %v711_v7 = vld [vmem:[%s12076_s1 + $0x15a8] sm:$0xff] }
 0x294   :  { %v8311_v13 = vcombine.high %v710_v5, %v718_v6  ;;  %v8310_v20 = vcombine.low %v710_v5, %v718_v6  ;;  %v8312_v23 = vcombine.low %v711_v7, %v719_v8  ;;  %v815_v5 = vld [vmem:[%s12076_s1 + $0x18e8] sm:$0xff] }
 0x296   :  { %7021 = vmatpush1.bf16.msra.mxu0 %v8198_v14  ;;  %7185 = vmatpush1.bf16.msra.mxu1 %v8200_v16  ;;  %v8313_v14 = vcombine.high %v711_v7, %v719_v8  ;;  %v726_v16 = vld [vmem:[%s12076_s1 + $0x1620] sm:$0xff] }
 0x297   :  { %7022 = vmatprep.subr.bf16.mxu0 %v8215_v17  ;;  %7186 = vmatprep.subr.bf16.mxu1 %v8217_v53  ;;  %v734_v17 = vld [vmem:[%s12076_s1 + $0x1660] sm:$0xff]  ;;  %v727_v53 = vld [vmem:[%s12076_s1 + $0x1628] sm:$0xff] }
 0x298   :  { %v8327_v24 = vcombine.high %v726_v16, %v734_v17  ;;  %v8326_v34 = vcombine.low %v726_v16, %v734_v17  ;;  %v8328_v35 = vcombine.low %v727_v53, %v735_v18  ;;  %v831_v16 = vld [vmem:[%s12076_s1 + $0x1968] sm:$0xff] }
 0x29a   :  { %7023 = vmatpush1.bf16.msra.mxu0 %v8214_v26  ;;  %7187 = vmatpush1.bf16.msra.mxu1 %v8216_v28  ;;  %v8329_v26 = vcombine.high %v727_v53, %v735_v18  ;;  %v742_v28 = vld [vmem:[%s12076_s1 + $0x16a0] sm:$0xff] }
 0x29b   :  { %7024 = vmatprep.subr.bf16.mxu0 %v8231_v30  ;;  %7188 = vmatprep.subr.bf16.mxu1 %v8233_v32  ;;  %v750_v30 = vld [vmem:[%s12076_s1 + $0x16e0] sm:$0xff]  ;;  %v743_v32 = vld [vmem:[%s12076_s1 + $0x16a8] sm:$0xff] }
 0x29c   :  { %v8343_v37 = vcombine.high %v742_v28, %v750_v30  ;;  %v8342_v43 = vcombine.low %v742_v28, %v750_v30  ;;  %v8344_v44 = vcombine.low %v743_v32, %v751_v33  ;;  %v847_v28 = vld [vmem:[%s12076_s1 + $0x19e8] sm:$0xff] }
 0x29e   :  { %7025 = vmatpush1.bf16.msra.mxu0 %v8230_v38  ;;  %7189 = vmatpush1.bf16.msra.mxu1 %v8232_v40  ;;  %v8345_v38 = vcombine.high %v743_v32, %v751_v33  ;;  %v758_v40 = vld [vmem:[%s12076_s1 + $0x1720] sm:$0xff] }
 0x29f   :  { %7026 = vmatprep.subr.bf16.mxu0 %v8247_v41  ;;  %7190 = vmatprep.subr.bf16.mxu1 %v8249_v25  ;;  %v766_v41 = vld [vmem:[%s12076_s1 + $0x1760] sm:$0xff]  ;;  %v759_v25 = vld [vmem:[%s12076_s1 + $0x1728] sm:$0xff] }
 0x2a0   :  { %v8359_v46 = vcombine.high %v758_v40, %v766_v41  ;;  %v8358_v52 = vcombine.low %v758_v40, %v766_v41  ;;  %v8360_v54 = vcombine.low %v759_v25, %v767_v42  ;;  %v863_v40 = vld [vmem:[%s12076_s1 + $0x1a68] sm:$0xff] }
 0x2a2   :  { %7027 = vmatpush1.bf16.msra.mxu0 %v8246_v47  ;;  %7191 = vmatpush1.bf16.msra.mxu1 %v8248_v48  ;;  %v8361_v47 = vcombine.high %v759_v25, %v767_v42  ;;  %v774_v48 = vld [vmem:[%s12076_s1 + $0x17a0] sm:$0xff] }
 0x2a3   :  { %7028 = vmatprep.subr.bf16.mxu0 %v8263_v49  ;;  %7192 = vmatprep.subr.bf16.mxu1 %v8265_v50  ;;  %v782_v49 = vld [vmem:[%s12076_s1 + $0x17e0] sm:$0xff]  ;;  %v775_v50 = vld [vmem:[%s12076_s1 + $0x17a8] sm:$0xff] }
 0x2a4   :  { %v8375_v56 = vcombine.high %v774_v48, %v782_v49  ;;  %v8374_v39 = vcombine.low %v774_v48, %v782_v49  ;;  %v8376_v63 = vcombine.low %v775_v50, %v783_v51  ;;  %v871_v48 = vld [vmem:[%s12076_s1 + $0x1aa8] sm:$0xff] }
 0x2a5   :  { %v879_v49 = vld [vmem:[%s12076_s1 + $0x1ae8] sm:$0xff] }
 0x2a6   :  { %7029 = vmatpush1.bf16.msra.mxu0 %v8262_v58  ;;  %7193 = vmatpush1.bf16.msra.mxu1 %v8264_v59  ;;  %v8377_v58 = vcombine.high %v775_v50, %v783_v51  ;;  %v790_v59 = vld [vmem:[%s12076_s1 + $0x1820] sm:$0xff]  ;;  %v1072_v51 = vsub.s32 6, %v10265_v11 }
 0x2a7   :  { %7030 = vmatprep.subr.bf16.mxu0 %v8279_v60  ;;  %7194 = vmatprep.subr.bf16.mxu1 %v8281_v61  ;;  %v798_v60 = vld [vmem:[%s12076_s1 + $0x1860] sm:$0xff]  ;;  %v791_v61 = vld [vmem:[%s12076_s1 + $0x1828] sm:$0xff] }
 0x2a8   :  { %v8391_v0 = vcombine.high %v790_v59, %v798_v60  ;;  %v8390_v6 = vcombine.low %v790_v59, %v798_v60  ;;  %v8392_v7 = vcombine.low %v791_v61, %v799_v62  ;;  %v8473_v59 = vcombine.high %v871_v48, %v879_v49  ;;  %v886_v60 = vld [vmem:[%s12076_s1 + $0x1b20] sm:$0xff] }
 0x2aa   :  { %7031 = vmatpush1.bf16.msra.mxu0 %v8278_v1  ;;  %7195 = vmatpush1.bf16.msra.mxu1 %v8280_v2  ;;  %v8393_v1 = vcombine.high %v791_v61, %v799_v62  ;;  %v806_v2 = vld [vmem:[%s12076_s1 + $0x18a0] sm:$0xff] }
 0x2ab   :  { %7032 = vmatprep.subr.bf16.mxu0 %v8295_v3  ;;  %7196 = vmatprep.subr.bf16.mxu1 %v8297_v4  ;;  %v814_v3 = vld [vmem:[%s12076_s1 + $0x18e0] sm:$0xff]  ;;  %v807_v4 = vld [vmem:[%s12076_s1 + $0x18a8] sm:$0xff] }
 0x2ac   :  { %v8407_v8 = vcombine.high %v806_v2, %v814_v3  ;;  %v8406_v17 = vcombine.low %v806_v2, %v814_v3  ;;  %v8408_v53 = vcombine.low %v807_v4, %v815_v5  ;;  %v894_v61 = vld [vmem:[%s12076_s1 + $0x1b60] sm:$0xff] }
 0x2ad   :  { %v8758_v62 = vld [vmem:[%s12078_s2] sm:$0xff] }
 0x2ae   :  { %7033 = vmatpush1.bf16.msra.mxu0 %v8294_v9  ;;  %7197 = vmatpush1.bf16.msra.mxu1 %v8296_v10  ;;  %v8409_v9 = vcombine.high %v807_v4, %v815_v5  ;;  %v822_v10 = vld [vmem:[%s12076_s1 + $0x1920] sm:$0xff]  ;;  %v8472_v5 = vcombine.low %v871_v48, %v879_v49 }
 0x2af   :  { %7034 = vmatprep.subr.bf16.mxu0 %v8311_v13  ;;  %7198 = vmatprep.subr.bf16.mxu1 %v8313_v14  ;;  %v830_v13 = vld [vmem:[%s12076_s1 + $0x1960] sm:$0xff]  ;;  %v823_v14 = vld [vmem:[%s12076_s1 + $0x1928] sm:$0xff] }
 0x2b0   :  { %v8423_v18 = vcombine.high %v822_v10, %v830_v13  ;;  %v8422_v30 = vcombine.low %v822_v10, %v830_v13  ;;  %v8424_v32 = vcombine.low %v823_v14, %v831_v16  ;;  %v910_v10 = vld [vmem:[%s12076_s1 + $0x1be0] sm:$0xff] }
 0x2b1   :  { %v934_v48 = vld [vmem:[%s12076_s1 + $0x1ca0] sm:$0xff] }
 0x2b2   :  { %7035 = vmatpush1.bf16.msra.mxu0 %v8310_v20  ;;  %7199 = vmatpush1.bf16.msra.mxu1 %v8312_v23  ;;  %v8425_v20 = vcombine.high %v823_v14, %v831_v16  ;;  %v838_v23 = vld [vmem:[%s12076_s1 + $0x19a0] sm:$0xff] }
 0x2b3   :  { %7036 = vmatprep.subr.bf16.mxu0 %v8327_v24  ;;  %7200 = vmatprep.subr.bf16.mxu1 %v8329_v26  ;;  %v846_v24 = vld [vmem:[%s12076_s1 + $0x19e0] sm:$0xff]  ;;  %v839_v26 = vld [vmem:[%s12076_s1 + $0x19a8] sm:$0xff] }
 0x2b4   :  { %v8439_v33 = vcombine.high %v838_v23, %v846_v24  ;;  %v8438_v41 = vcombine.low %v838_v23, %v846_v24  ;;  %v8440_v25 = vcombine.low %v839_v26, %v847_v28  ;;  %v942_v49 = vld [vmem:[%s12076_s1 + $0x1ce0] sm:$0xff] }
 0x2b6   :  { %7037 = vmatpush1.bf16.msra.mxu0 %v8326_v34  ;;  %7201 = vmatpush1.bf16.msra.mxu1 %v8328_v35  ;;  %v8441_v34 = vcombine.high %v839_v26, %v847_v28  ;;  %v854_v35 = vld [vmem:[%s12076_s1 + $0x1a20] sm:$0xff]  ;;  %v8486_v26 = vcombine.low %v886_v60, %v894_v61 }
 0x2b7   :  { %7038 = vmatprep.subr.bf16.mxu0 %v8343_v37  ;;  %7202 = vmatprep.subr.bf16.mxu1 %v8345_v38  ;;  %v862_v37 = vld [vmem:[%s12076_s1 + $0x1a60] sm:$0xff]  ;;  %v855_v38 = vld [vmem:[%s12076_s1 + $0x1a28] sm:$0xff] }
 0x2b8   :  { %v8455_v42 = vcombine.high %v854_v35, %v862_v37  ;;  %v8454_v50 = vcombine.low %v854_v35, %v862_v37 }
 0x2ba   :  { %7039 = vmatpush1.bf16.msra.mxu0 %v8342_v43  ;;  %7203 = vmatpush1.bf16.msra.mxu1 %v8344_v44  ;;  %v8457_v43 = vcombine.high %v855_v38, %v863_v40  ;;  %v870_v44 = vld [vmem:[%s12076_s1 + $0x1aa0] sm:$0xff] }
 0x2bb   :  { %7040 = vmatprep.subr.bf16.mxu0 %v8359_v46  ;;  %7204 = vmatprep.subr.bf16.mxu1 %v8361_v47  ;;  %v878_v46 = vld [vmem:[%s12076_s1 + $0x1ae0] sm:$0xff]  ;;  %v1064_v47 = vsub.s32 4, %v10265_v11 }
 0x2bc   :  { %v8470_v3 = vcombine.low %v870_v44, %v878_v46 }
 0x2be   :  { %7041 = vmatpush1.bf16.msra.mxu0 %v8358_v52  ;;  %7205 = vmatpush1.bf16.msra.mxu1 %v8360_v54  ;;  %v1068_v52 = vsub.s32 5, %v10265_v11  ;;  %v8456_v54 = vcombine.low %v855_v38, %v863_v40  ;;  %v918_v38 = vld [vmem:[%s12076_s1 + $0x1c20] sm:$0xff] }
 0x2bf   :  { %7042 = vmatprep.subr.bf16.mxu0 %v8375_v56  ;;  %7206 = vmatprep.subr.bf16.mxu1 %v8377_v58  ;;  %v1076_v56 = vsub.s32 7, %v10265_v11  ;;  %v8471_v58 = vcombine.high %v870_v44, %v878_v46  ;;  %v926_v40 = vld [vmem:[%s12076_s1 + $0x1c60] sm:$0xff] }
 0x2c0   :  { %v1069_v2 = vrot.slane %v8758_v62, %v1068_v52  ;;  %v8519_v44 = vcombine.high %v918_v38, %v926_v40 }
 0x2c1   :  { %v1077_v4 = vrot.slane %v8758_v62, %v1076_v56 }
 0x2c2   :  { %7043 = vmatpush1.bf16.msra.mxu0 %v8374_v39  ;;  %7207 = vmatpush1.bf16.msra.mxu1 %v8376_v63  ;;  %v1065_v39 = vrot.slane %v8758_v62, %v1064_v47  ;;  %v887_v63 = vld [vmem:[%s12076_s1 + $0x1b28] sm:$0xff] }
 0x2c3   :  { %7053 = vmatprep.subr.bf16.mxu0 %v8391_v0  ;;  %7217 = vmatprep.subr.bf16.mxu1 %v8393_v1  ;;  %v895_v0 = vld [vmem:[%s12076_s1 + $0x1b68] sm:$0xff]  ;;  %v1073_v1 = vrot.slane %v8758_v62, %v1072_v51  ;;  %v950_v62 = vld [vmem:[%s12076_s1 + $0x1d20] sm:$0xff] }
 0x2c5   :  { %7045 = vmatmul.mubr.bf16.vlgmr.msra.gmra.mrb[8].mxu0 %v9420_v36  ;;  %7209 = vmatmul.mubr.bf16.vlgmr.msra.gmra.mrb[8].mxu1 %v9420_v36 }
 0x2c6   :  { %7054 = vmatpush1.bf16.msra.mxu0 %v8390_v6  ;;  %7218 = vmatpush1.bf16.msra.mxu1 %v8392_v7  ;;  %v8487_v6 = vcombine.high %v886_v60, %v894_v61  ;;  %v8535_v60 = vcombine.high %v934_v48, %v942_v49 }
 0x2c7   :  { %7055 = vmatprep.subr.bf16.mxu0 %v8407_v8  ;;  %7219 = vmatprep.subr.bf16.mxu1 %v8409_v9  ;;  %v8489_v8 = vcombine.high %v887_v63, %v895_v0  ;;  %v902_v9 = vld [vmem:[%s12076_s1 + $0x1ba0] sm:$0xff] }
 0x2c8   :  { %7085 = vmatprep.mubr.bf16.mxu0 %v9441_v45  ;;  %7249 = vmatprep.mubr.bf16.mxu1 %v9441_v45 }
 0x2ca   :  { %7056 = vmatpush1.bf16.msra.mxu0 %v8406_v17  ;;  %7220 = vmatpush1.bf16.msra.mxu1 %v8408_v53  ;;  %v903_v17 = vld [vmem:[%s12076_s1 + $0x1ba8] sm:$0xff] }
 0x2cb   :  { %7057 = vmatprep.subr.bf16.mxu0 %v8423_v18  ;;  %7221 = vmatprep.subr.bf16.mxu1 %v8425_v20  ;;  %v911_v53 = vld [vmem:[%s12076_s1 + $0x1be8] sm:$0xff] }
 0x2cc   :  { %v8505_v37 = vcombine.high %v903_v17, %v911_v53 }
 0x2ce   :  { %7058 = vmatpush1.bf16.msra.mxu0 %v8422_v30  ;;  %7222 = vmatpush1.bf16.msra.mxu1 %v8424_v32 }
 0x2cf   :  { %7059 = vmatprep.subr.bf16.mxu0 %v8439_v33  ;;  %7223 = vmatprep.subr.bf16.mxu1 %v8441_v34  ;;  %v8488_v33 = vcombine.low %v887_v63, %v895_v0  ;;  %v8503_v34 = vcombine.high %v902_v9, %v910_v10  ;;  %v951_v63 = vld [vmem:[%s12076_s1 + $0x1d28] sm:$0xff] }
 0x2d0   :  { %v959_v0 = vld [vmem:[%s12076_s1 + $0x1d68] sm:$0xff] }
 0x2d2   :  { %7060 = vmatpush1.bf16.msra.mxu0 %v8438_v41  ;;  %7224 = vmatpush1.bf16.msra.mxu1 %v8440_v25  ;;  %v919_v41 = vld [vmem:[%s12076_s1 + $0x1c28] sm:$0xff] }
 0x2d3   :  { %7061 = vmatprep.subr.bf16.mxu0 %v8455_v42  ;;  %7225 = vmatprep.subr.bf16.mxu1 %v8457_v43  ;;  %v927_v25 = vld [vmem:[%s12076_s1 + $0x1c68] sm:$0xff]  ;;  %v8502_v42 = vcombine.low %v902_v9, %v910_v10  ;;  %v8504_v43 = vcombine.low %v903_v17, %v911_v53  ;;  %v8552_v10 = vcombine.low %v951_v63, %v959_v0  ;;  %v990_v17 = vld [vmem:[%s12076_s1 + $0x1e60] sm:$0xff] }
 0x2d4   :  { %v8521_v46 = vcombine.high %v919_v41, %v927_v25  ;;  %v983_v53 = vld [vmem:[%s12076_s1 + $0x1e28] sm:$0xff] }
 0x2d6   :  { %7062 = vmatpush1.bf16.msra.mxu0 %v8454_v50  ;;  %7226 = vmatpush1.bf16.msra.mxu1 %v8456_v54  ;;  %v935_v50 = vld [vmem:[%s12076_s1 + $0x1ca8] sm:$0xff] }
 0x2d7   :  { %7063 = vmatprep.subr.bf16.mxu0 %v8471_v58  ;;  %7227 = vmatprep.subr.bf16.mxu1 %v8473_v59  ;;  %v943_v54 = vld [vmem:[%s12076_s1 + $0x1ce8] sm:$0xff]  ;;  %v8518_v58 = vcombine.low %v918_v38, %v926_v40  ;;  %v8520_v59 = vcombine.low %v919_v41, %v927_v25  ;;  %v1014_v40 = vld [vmem:[%s12076_s1 + $0x1f20] sm:$0xff] }
 0x2d8   :  { %v6759_v7 = vpop.f32.mrb[4].mxu0  ;;  %v6923_v14 = vpop.f32.mrb[4].mxu1  ;;  %v8537_v61 = vcombine.high %v935_v50, %v943_v54  ;;  %v1022_v41 = vld [vmem:[%s12076_s1 + $0x1f60] sm:$0xff]  ;;  %v1015_v25 = vld [vmem:[%s12076_s1 + $0x1f28] sm:$0xff] }
 0x2d9   :  { %v8642_v13 = vadd.f32 %v6759_v7, %v1065_v39  ;;  %v6761_v16 = vpop.f32.mrb[5].mxu0  ;;  %v8644_v18 = vadd.f32 %v6923_v14, %v1073_v1  ;;  %v6925_v23 = vpop.f32.mrb[5].mxu1  ;;  %v958_v39 = vld [vmem:[%s12076_s1 + $0x1d60] sm:$0xff]  ;;  %v8534_v1 = vcombine.low %v934_v48, %v942_v49  ;;  %v967_v7 = vld [vmem:[%s12076_s1 + $0x1da8] sm:$0xff] }
 0x2da   :  { %v8643_v20 = vadd.f32 %v6761_v16, %v1069_v2  ;;  %v6763_v24 = vpop.f32.mrb[6].mxu0  ;;  %7064 = vmatpush1.bf16.msra.mxu0 %v8470_v3  ;;  %v8645_v28 = vadd.f32 %v6925_v23, %v1077_v4  ;;  %v6927_v30 = vpop.f32.mrb[6].mxu1  ;;  %7228 = vmatpush1.bf16.msra.mxu1 %v8472_v5  ;;  %v8536_v2 = vcombine.low %v935_v50, %v943_v54  ;;  %v966_v5 = vld [vmem:[%s12076_s1 + $0x1da0] sm:$0xff]  ;;  %v1031_v54 = vld [vmem:[%s12076_s1 + $0x1fa8] sm:$0xff] }
 0x2db   :  { %7590 = vst [vmem:[%s12079_s3 + $0x20] sm:$0xff] %v8642_v13  ;;  %v6764_v32 = vpop.f32.mrb[7].mxu0  ;;  %7065 = vmatprep.subr.bf16.mxu0 %v8487_v6  ;;  %7592 = vst [vmem:[%s12079_s3 + $0x30] sm:$0xff] %v8644_v18  ;;  %v6928_v35 = vpop.f32.mrb[7].mxu1  ;;  %7229 = vmatprep.subr.bf16.mxu1 %v8489_v8  ;;  %v8551_v3 = vcombine.high %v950_v62, %v958_v39  ;;  %v8553_v4 = vcombine.high %v951_v63, %v959_v0  ;;  %v974_v6 = vld [vmem:[%s12076_s1 + $0x1de0] sm:$0xff]  ;;  %v975_v8 = vld [vmem:[%s12076_s1 + $0x1de8] sm:$0xff] }
 0x2dc   :  { %7591 = vst [vmem:[%s12079_s3 + $0x28] sm:$0xff] %v8643_v20  ;;  %7593 = vst [vmem:[%s12079_s3 + $0x38] sm:$0xff] %v8645_v28  ;;  %v8550_v9 = vcombine.low %v950_v62, %v958_v39  ;;  %v8567_v13 = vcombine.high %v966_v5, %v974_v6  ;;  %v8569_v14 = vcombine.high %v967_v7, %v975_v8  ;;  %v982_v16 = vld [vmem:[%s12076_s1 + $0x1e20] sm:$0xff]  ;;  %v991_v18 = vld [vmem:[%s12076_s1 + $0x1e68] sm:$0xff] }
 0x2dd   :  { %v8566_v20 = vcombine.low %v966_v5, %v974_v6  ;;  %v8568_v23 = vcombine.low %v967_v7, %v975_v8  ;;  %v8583_v24 = vcombine.high %v982_v16, %v990_v17  ;;  %v998_v28 = vld [vmem:[%s12076_s1 + $0x1ea0] sm:$0xff]  ;;  %v999_v32 = vld [vmem:[%s12076_s1 + $0x1ea8] sm:$0xff]  ;;  %v8584_v35 = vcombine.low %v983_v53, %v991_v18  ;;  %v24_v39 = vld [vmem:[%s12076_s1 + $0x30] sm:$0xff] }
 0x2de   :  { %7066 = vmatpush1.bf16.msra.mxu0 %v8486_v26  ;;  %7230 = vmatpush1.bf16.msra.mxu1 %v8488_v33  ;;  %v8585_v26 = vcombine.high %v983_v53, %v991_v18  ;;  %v1006_v30 = vld [vmem:[%s12076_s1 + $0x1ee0] sm:$0xff]  ;;  %v1007_v33 = vld [vmem:[%s12076_s1 + $0x1ee8] sm:$0xff]  ;;  %v32_v63 = vld [vmem:[%s12076_s1 + $0x70] sm:$0xff] }
 0x2df   :  { %7067 = vmatprep.subr.bf16.mxu0 %v8503_v34  ;;  %7231 = vmatprep.subr.bf16.mxu1 %v8505_v37  ;;  %v8582_v34 = vcombine.low %v982_v16, %v990_v17  ;;  %v8599_v37 = vcombine.high %v998_v28, %v1006_v30  ;;  %v8601_v38 = vcombine.high %v999_v32, %v1007_v33  ;;  %v1030_v49 = vld [vmem:[%s12076_s1 + $0x1fa0] sm:$0xff]  ;;  %v25_v0 = vld [vmem:[%s12076_s1 + $0x38] sm:$0xff]  ;;  %v40_v6 = vld [vmem:[%s12076_s1 + $0xb0] sm:$0xff] }
 0x2e0   :  { %v1038_v50 = vld [vmem:[%s12076_s1 + $0x1fe0] sm:$0xff]  ;;  %v48_v7 = vld [vmem:[%s12076_s1 + $0xf0] sm:$0xff]  ;;  %v41_v8 = vld [vmem:[%s12076_s1 + $0xb8] sm:$0xff] }
 0x2e1   :  { %v56_v17 = vld [vmem:[%s12076_s1 + $0x130] sm:$0xff]  ;;  %v57_v18 = vld [vmem:[%s12076_s1 + $0x138] sm:$0xff] }
 0x2e2   :  { %7068 = vmatpush1.bf16.msra.mxu0 %v8502_v42  ;;  %7232 = vmatpush1.bf16.msra.mxu1 %v8504_v43  ;;  %v1023_v42 = vld [vmem:[%s12076_s1 + $0x1f68] sm:$0xff]  ;;  %v8598_v43 = vcombine.low %v998_v28, %v1006_v30  ;;  %v64_v53 = vld [vmem:[%s12076_s1 + $0x170] sm:$0xff] }
 0x2e3   :  { %7069 = vmatprep.subr.bf16.mxu0 %v8519_v44  ;;  %7233 = vmatprep.subr.bf16.mxu1 %v8521_v46  ;;  %v8600_v44 = vcombine.low %v999_v32, %v1007_v33  ;;  %v8615_v46 = vcombine.high %v1014_v40, %v1022_v41  ;;  %v8617_v48 = vcombine.high %v1015_v25, %v1023_v42  ;;  %v72_v30 = vld [vmem:[%s12076_s1 + $0x1b0] sm:$0xff]  ;;  %v73_v33 = vld [vmem:[%s12076_s1 + $0x1b8] sm:$0xff] }
 0x2e4   :  { %v80_v32 = vld [vmem:[%s12076_s1 + $0x1f0] sm:$0xff] }
 0x2e6   :  { %7070 = vmatpush1.bf16.msra.mxu0 %v8518_v58  ;;  %7234 = vmatpush1.bf16.msra.mxu1 %v8520_v59  ;;  %v1039_v58 = vld [vmem:[%s12076_s1 + $0x1fe8] sm:$0xff]  ;;  %v8614_v59 = vcombine.low %v1014_v40, %v1022_v41  ;;  %v88_v41 = vld [vmem:[%s12076_s1 + $0x230] sm:$0xff] }
 0x2e7   :  { %7071 = vmatprep.subr.bf16.mxu0 %v8535_v60  ;;  %7235 = vmatprep.subr.bf16.mxu1 %v8537_v61  ;;  %v8616_v60 = vcombine.low %v1015_v25, %v1023_v42  ;;  %v8631_v61 = vcombine.high %v1030_v49, %v1038_v50  ;;  %v8633_v62 = vcombine.high %v1031_v54, %v1039_v58  ;;  %v96_v25 = vld [vmem:[%s12076_s1 + $0x270] sm:$0xff]  ;;  %v97_v42 = vld [vmem:[%s12076_s1 + $0x278] sm:$0xff] }
 0x2ea   :  { %7072 = vmatpush1.bf16.msra.mxu0 %v8534_v1  ;;  %7236 = vmatpush1.bf16.msra.mxu1 %v8536_v2  ;;  %v33_v1 = vld [vmem:[%s12076_s1 + $0x78] sm:$0xff]  ;;  %v8630_v2 = vcombine.low %v1030_v49, %v1038_v50  ;;  %v104_v49 = vld [vmem:[%s12076_s1 + $0x2b0] sm:$0xff] }
 0x2eb   :  { %7073 = vmatprep.subr.bf16.mxu0 %v8551_v3  ;;  %7237 = vmatprep.subr.bf16.mxu1 %v8553_v4  ;;  %v8632_v3 = vcombine.low %v1031_v54, %v1039_v58  ;;  %v7627_v4 = vcombine.high %v24_v39, %v32_v63  ;;  %v7629_v5 = vcombine.high %v25_v0, %v33_v1  ;;  %v112_v50 = vld [vmem:[%s12076_s1 + $0x2f0] sm:$0xff]  ;;  %v105_v54 = vld [vmem:[%s12076_s1 + $0x2b8] sm:$0xff] }
 0x2ec   :  { %v113_v58 = vld [vmem:[%s12076_s1 + $0x2f8] sm:$0xff] }
 0x2ee   :  { %7074 = vmatpush1.bf16.msra.mxu0 %v8550_v9  ;;  %7238 = vmatpush1.bf16.msra.mxu1 %v8552_v10  ;;  %v49_v9 = vld [vmem:[%s12076_s1 + $0xf8] sm:$0xff]  ;;  %v7626_v10 = vcombine.low %v24_v39, %v32_v63  ;;  %v120_v39 = vld [vmem:[%s12076_s1 + $0x330] sm:$0xff] }
 0x2ef   :  { %7075 = vmatprep.subr.bf16.mxu0 %v8567_v13  ;;  %7239 = vmatprep.subr.bf16.mxu1 %v8569_v14  ;;  %v7628_v13 = vcombine.low %v25_v0, %v33_v1  ;;  %v7643_v14 = vcombine.high %v40_v6, %v48_v7  ;;  %v7645_v16 = vcombine.high %v41_v8, %v49_v9  ;;  %v128_v63 = vld [vmem:[%s12076_s1 + $0x370] sm:$0xff]  ;;  %v121_v0 = vld [vmem:[%s12076_s1 + $0x338] sm:$0xff] }
 0x2f0   :  { %v129_v1 = vld [vmem:[%s12076_s1 + $0x378] sm:$0xff] }
 0x2f2   :  { %7076 = vmatpush1.bf16.msra.mxu0 %v8566_v20  ;;  %7240 = vmatpush1.bf16.msra.mxu1 %v8568_v23  ;;  %v65_v20 = vld [vmem:[%s12076_s1 + $0x178] sm:$0xff]  ;;  %v7642_v23 = vcombine.low %v40_v6, %v48_v7  ;;  %v136_v6 = vld [vmem:[%s12076_s1 + $0x3b0] sm:$0xff] }
 0x2f3   :  { %7077 = vmatprep.subr.bf16.mxu0 %v8583_v24  ;;  %7241 = vmatprep.subr.bf16.mxu1 %v8585_v26  ;;  %v7644_v24 = vcombine.low %v41_v8, %v49_v9  ;;  %v7659_v26 = vcombine.high %v56_v17, %v64_v53  ;;  %v7661_v28 = vcombine.high %v57_v18, %v65_v20  ;;  %v144_v7 = vld [vmem:[%s12076_s1 + $0x3f0] sm:$0xff]  ;;  %v137_v8 = vld [vmem:[%s12076_s1 + $0x3b8] sm:$0xff] }
 0x2f4   :  { %v145_v9 = vld [vmem:[%s12076_s1 + $0x3f8] sm:$0xff] }
 0x2f6   :  { %7078 = vmatpush1.bf16.msra.mxu0 %v8582_v34  ;;  %7242 = vmatpush1.bf16.msra.mxu1 %v8584_v35  ;;  %v81_v34 = vld [vmem:[%s12076_s1 + $0x1f8] sm:$0xff]  ;;  %v7658_v35 = vcombine.low %v56_v17, %v64_v53  ;;  %v152_v17 = vld [vmem:[%s12076_s1 + $0x430] sm:$0xff] }
 0x2f7   :  { %7079 = vmatprep.subr.bf16.mxu0 %v8599_v37  ;;  %7243 = vmatprep.subr.bf16.mxu1 %v8601_v38  ;;  %v7660_v37 = vcombine.low %v57_v18, %v65_v20  ;;  %v7675_v38 = vcombine.high %v72_v30, %v80_v32  ;;  %v7677_v40 = vcombine.high %v73_v33, %v81_v34  ;;  %v160_v53 = vld [vmem:[%s12076_s1 + $0x470] sm:$0xff]  ;;  %v153_v18 = vld [vmem:[%s12076_s1 + $0x438] sm:$0xff] }
 0x2f8   :  { %v161_v20 = vld [vmem:[%s12076_s1 + $0x478] sm:$0xff] }
 0x2fa   :  { %7080 = vmatpush1.bf16.msra.mxu0 %v8598_v43  ;;  %7244 = vmatpush1.bf16.msra.mxu1 %v8600_v44  ;;  %v7674_v43 = vcombine.low %v72_v30, %v80_v32  ;;  %v7676_v44 = vcombine.low %v73_v33, %v81_v34  ;;  %v168_v30 = vld [vmem:[%s12076_s1 + $0x4b0] sm:$0xff]  ;;  %v169_v33 = vld [vmem:[%s12076_s1 + $0x4b8] sm:$0xff] }
 0x2fb   :  { %7081 = vmatprep.subr.bf16.mxu0 %v8615_v46  ;;  %7245 = vmatprep.subr.bf16.mxu1 %v8617_v48  ;;  %v7691_v46 = vcombine.high %v88_v41, %v96_v25  ;;  %v176_v32 = vld [vmem:[%s12076_s1 + $0x4f0] sm:$0xff]  ;;  %v177_v34 = vld [vmem:[%s12076_s1 + $0x4f8] sm:$0xff] }
 0x2fe   :  { %7082 = vmatpush1.bf16.msra.mxu0 %v8614_v59  ;;  %7246 = vmatpush1.bf16.msra.mxu1 %v8616_v60  ;;  %v7690_v59 = vcombine.low %v88_v41, %v96_v25  ;;  %v184_v41 = vld [vmem:[%s12076_s1 + $0x530] sm:$0xff] }
 0x2ff   :  { %7083 = vmatprep.subr.bf16.mxu0 %v8631_v61  ;;  %7247 = vmatprep.subr.bf16.mxu1 %v8633_v62  ;;  %v7707_v61 = vcombine.high %v104_v49, %v112_v50  ;;  %v7709_v62 = vcombine.high %v105_v54, %v113_v58  ;;  %v192_v25 = vld [vmem:[%s12076_s1 + $0x570] sm:$0xff] }
 0x302   :  { %7084 = vmatpush1.bf16.msra.mxu0 %v8630_v2  ;;  %7248 = vmatpush1.bf16.msra.mxu1 %v8632_v3  ;;  %v7706_v2 = vcombine.low %v104_v49, %v112_v50  ;;  %v7708_v3 = vcombine.low %v105_v54, %v113_v58  ;;  %v200_v49 = vld [vmem:[%s12076_s1 + $0x5b0] sm:$0xff]  ;;  %v201_v54 = vld [vmem:[%s12076_s1 + $0x5b8] sm:$0xff] }
 0x303   :  { %7258 = vmatprep.subr.bf16.mxu0 %v7627_v4  ;;  %7422 = vmatprep.subr.bf16.mxu1 %v7629_v5  ;;  %v7723_v4 = vcombine.high %v120_v39, %v128_v63  ;;  %v7725_v5 = vcombine.high %v121_v0, %v129_v1  ;;  %v208_v50 = vld [vmem:[%s12076_s1 + $0x5f0] sm:$0xff]  ;;  %v209_v58 = vld [vmem:[%s12076_s1 + $0x5f8] sm:$0xff] }
 0x305   :  { %7086 = vmatmul.mubr.bf16.vlgmr.msra.gmra.mrb[8].mxu0 %v9629_v55  ;;  %7250 = vmatmul.mubr.bf16.vlgmr.msra.gmra.mrb[8].mxu1 %v9629_v55 }
 0x306   :  { %7259 = vmatpush1.bf16.msra.mxu0 %v7626_v10  ;;  %7423 = vmatpush1.bf16.msra.mxu1 %v7628_v13  ;;  %v7722_v10 = vcombine.low %v120_v39, %v128_v63  ;;  %v7724_v13 = vcombine.low %v121_v0, %v129_v1  ;;  %v216_v39 = vld [vmem:[%s12076_s1 + $0x630] sm:$0xff]  ;;  %v217_v0 = vld [vmem:[%s12076_s1 + $0x638] sm:$0xff] }
 0x307   :  { %7260 = vmatprep.subr.bf16.mxu0 %v7643_v14  ;;  %7424 = vmatprep.subr.bf16.mxu1 %v7645_v16  ;;  %v7739_v14 = vcombine.high %v136_v6, %v144_v7  ;;  %v7741_v16 = vcombine.high %v137_v8, %v145_v9  ;;  %v224_v63 = vld [vmem:[%s12076_s1 + $0x670] sm:$0xff]  ;;  %v225_v1 = vld [vmem:[%s12076_s1 + $0x678] sm:$0xff] }
 0x308   :  { %7290 = vmatprep.mubr.bf16.mxu0 %v8876_v57  ;;  %7454 = vmatprep.mubr.bf16.mxu1 %v8876_v57  ;;  %v89_v57 = vld [vmem:[%s12076_s1 + $0x238] sm:$0xff] }
 0x309   :  { %v7693_v48 = vcombine.high %v89_v57, %v97_v42  ;;  %v7692_v60 = vcombine.low %v89_v57, %v97_v42  ;;  %v185_v57 = vld [vmem:[%s12076_s1 + $0x538] sm:$0xff] }
 0x30a   :  { %7261 = vmatpush1.bf16.msra.mxu0 %v7642_v23  ;;  %7425 = vmatpush1.bf16.msra.mxu1 %v7644_v24  ;;  %v7738_v23 = vcombine.low %v136_v6, %v144_v7  ;;  %v7740_v24 = vcombine.low %v137_v8, %v145_v9  ;;  %v193_v42 = vld [vmem:[%s12076_s1 + $0x578] sm:$0xff]  ;;  %v232_v6 = vld [vmem:[%s12076_s1 + $0x6b0] sm:$0xff] }
 0x30b   :  { %7262 = vmatprep.subr.bf16.mxu0 %v7659_v26  ;;  %7426 = vmatprep.subr.bf16.mxu1 %v7661_v28  ;;  %v7755_v26 = vcombine.high %v152_v17, %v160_v53  ;;  %v7757_v28 = vcombine.high %v153_v18, %v161_v20  ;;  %v240_v7 = vld [vmem:[%s12076_s1 + $0x6f0] sm:$0xff]  ;;  %v233_v8 = vld [vmem:[%s12076_s1 + $0x6b8] sm:$0xff] }
 0x30c   :  { %v241_v9 = vld [vmem:[%s12076_s1 + $0x6f8] sm:$0xff] }
 0x30e   :  { %7263 = vmatpush1.bf16.msra.mxu0 %v7658_v35  ;;  %7427 = vmatpush1.bf16.msra.mxu1 %v7660_v37  ;;  %v7754_v35 = vcombine.low %v152_v17, %v160_v53  ;;  %v7756_v37 = vcombine.low %v153_v18, %v161_v20  ;;  %v248_v17 = vld [vmem:[%s12076_s1 + $0x730] sm:$0xff]  ;;  %v249_v18 = vld [vmem:[%s12076_s1 + $0x738] sm:$0xff] }
 0x30f   :  { %7264 = vmatprep.subr.bf16.mxu0 %v7675_v38  ;;  %7428 = vmatprep.subr.bf16.mxu1 %v7677_v40  ;;  %v7771_v38 = vcombine.high %v168_v30, %v176_v32  ;;  %v7773_v40 = vcombine.high %v169_v33, %v177_v34  ;;  %v256_v53 = vld [vmem:[%s12076_s1 + $0x770] sm:$0xff]  ;;  %v257_v20 = vld [vmem:[%s12076_s1 + $0x778] sm:$0xff] }
 0x312   :  { %7265 = vmatpush1.bf16.msra.mxu0 %v7674_v43  ;;  %7429 = vmatpush1.bf16.msra.mxu1 %v7676_v44  ;;  %v7770_v43 = vcombine.low %v168_v30, %v176_v32  ;;  %v7772_v44 = vcombine.low %v169_v33, %v177_v34  ;;  %v264_v30 = vld [vmem:[%s12076_s1 + $0x7b0] sm:$0xff]  ;;  %v265_v33 = vld [vmem:[%s12076_s1 + $0x7b8] sm:$0xff] }
 0x313   :  { %7266 = vmatprep.subr.bf16.mxu0 %v7691_v46  ;;  %7430 = vmatprep.subr.bf16.mxu1 %v7693_v48  ;;  %v7787_v46 = vcombine.high %v184_v41, %v192_v25  ;;  %v7789_v48 = vcombine.high %v185_v57, %v193_v42  ;;  %v272_v32 = vld [vmem:[%s12076_s1 + $0x7f0] sm:$0xff]  ;;  %v273_v34 = vld [vmem:[%s12076_s1 + $0x7f8] sm:$0xff] }
 0x316   :  { %7267 = vmatpush1.bf16.msra.mxu0 %v7690_v59  ;;  %7431 = vmatpush1.bf16.msra.mxu1 %v7692_v60  ;;  %v7786_v59 = vcombine.low %v184_v41, %v192_v25  ;;  %v7788_v60 = vcombine.low %v185_v57, %v193_v42  ;;  %v280_v41 = vld [vmem:[%s12076_s1 + $0x830] sm:$0xff]  ;;  %v281_v57 = vld [vmem:[%s12076_s1 + $0x838] sm:$0xff] }
 0x317   :  { %7268 = vmatprep.subr.bf16.mxu0 %v7707_v61  ;;  %7432 = vmatprep.subr.bf16.mxu1 %v7709_v62  ;;  %v7803_v61 = vcombine.high %v200_v49, %v208_v50  ;;  %v7805_v62 = vcombine.high %v201_v54, %v209_v58  ;;  %v288_v25 = vld [vmem:[%s12076_s1 + $0x870] sm:$0xff]  ;;  %v289_v42 = vld [vmem:[%s12076_s1 + $0x878] sm:$0xff] }
 0x31a   :  { %7269 = vmatpush1.bf16.msra.mxu0 %v7706_v2  ;;  %7433 = vmatpush1.bf16.msra.mxu1 %v7708_v3  ;;  %v7802_v2 = vcombine.low %v200_v49, %v208_v50  ;;  %v7804_v3 = vcombine.low %v201_v54, %v209_v58  ;;  %v296_v49 = vld [vmem:[%s12076_s1 + $0x8b0] sm:$0xff]  ;;  %v297_v54 = vld [vmem:[%s12076_s1 + $0x8b8] sm:$0xff] }
 0x31b   :  { %7270 = vmatprep.subr.bf16.mxu0 %v7723_v4  ;;  %7434 = vmatprep.subr.bf16.mxu1 %v7725_v5  ;;  %v7819_v4 = vcombine.high %v216_v39, %v224_v63  ;;  %v7821_v5 = vcombine.high %v217_v0, %v225_v1  ;;  %v304_v50 = vld [vmem:[%s12076_s1 + $0x8f0] sm:$0xff]  ;;  %v305_v58 = vld [vmem:[%s12076_s1 + $0x8f8] sm:$0xff] }
 0x31e   :  { %7271 = vmatpush1.bf16.msra.mxu0 %v7722_v10  ;;  %7435 = vmatpush1.bf16.msra.mxu1 %v7724_v13  ;;  %v7818_v10 = vcombine.low %v216_v39, %v224_v63  ;;  %v7820_v13 = vcombine.low %v217_v0, %v225_v1  ;;  %v312_v39 = vld [vmem:[%s12076_s1 + $0x930] sm:$0xff]  ;;  %v313_v0 = vld [vmem:[%s12076_s1 + $0x938] sm:$0xff] }
 0x31f   :  { %7272 = vmatprep.subr.bf16.mxu0 %v7739_v14  ;;  %7436 = vmatprep.subr.bf16.mxu1 %v7741_v16  ;;  %v7835_v14 = vcombine.high %v232_v6, %v240_v7  ;;  %v7837_v16 = vcombine.high %v233_v8, %v241_v9  ;;  %v320_v63 = vld [vmem:[%s12076_s1 + $0x970] sm:$0xff]  ;;  %v321_v1 = vld [vmem:[%s12076_s1 + $0x978] sm:$0xff] }
 0x322   :  { %7273 = vmatpush1.bf16.msra.mxu0 %v7738_v23  ;;  %7437 = vmatpush1.bf16.msra.mxu1 %v7740_v24  ;;  %v7834_v23 = vcombine.low %v232_v6, %v240_v7  ;;  %v7836_v24 = vcombine.low %v233_v8, %v241_v9  ;;  %v328_v6 = vld [vmem:[%s12076_s1 + $0x9b0] sm:$0xff]  ;;  %v337_v8 = vld [vmem:[%s12076_s1 + $0x9f8] sm:$0xff]  ;;  %v7914_v9 = vcombine.low %v312_v39, %v320_v63 }
 0x323   :  { %7274 = vmatprep.subr.bf16.mxu0 %v7755_v26  ;;  %7438 = vmatprep.subr.bf16.mxu1 %v7757_v28  ;;  %v7851_v26 = vcombine.high %v248_v17, %v256_v53  ;;  %v7853_v28 = vcombine.high %v249_v18, %v257_v20  ;;  %v336_v7 = vld [vmem:[%s12076_s1 + $0x9f0] sm:$0xff] }
 0x326   :  { %7275 = vmatpush1.bf16.msra.mxu0 %v7754_v35  ;;  %7439 = vmatpush1.bf16.msra.mxu1 %v7756_v37  ;;  %v7850_v35 = vcombine.low %v248_v17, %v256_v53  ;;  %v7852_v37 = vcombine.low %v249_v18, %v257_v20  ;;  %v352_v17 = vld [vmem:[%s12076_s1 + $0xa70] sm:$0xff]  ;;  %v353_v53 = vld [vmem:[%s12076_s1 + $0xa78] sm:$0xff]  ;;  %v7930_v18 = vcombine.low %v328_v6, %v336_v7 }
 0x327   :  { %7276 = vmatprep.subr.bf16.mxu0 %v7771_v38  ;;  %7440 = vmatprep.subr.bf16.mxu1 %v7773_v40  ;;  %v7867_v38 = vcombine.high %v264_v30, %v272_v32  ;;  %v7869_v40 = vcombine.high %v265_v33, %v273_v34 }
 0x32a   :  { %7277 = vmatpush1.bf16.msra.mxu0 %v7770_v43  ;;  %7441 = vmatpush1.bf16.msra.mxu1 %v7772_v44  ;;  %v7866_v43 = vcombine.low %v264_v30, %v272_v32  ;;  %v7868_v44 = vcombine.low %v265_v33, %v273_v34  ;;  %v361_v30 = vld [vmem:[%s12076_s1 + $0xab8] sm:$0xff] }
 0x32b   :  { %7278 = vmatprep.subr.bf16.mxu0 %v7787_v46  ;;  %7442 = vmatprep.subr.bf16.mxu1 %v7789_v48  ;;  %v7883_v46 = vcombine.high %v280_v41, %v288_v25  ;;  %v7885_v48 = vcombine.high %v281_v57, %v289_v42  ;;  %v369_v32 = vld [vmem:[%s12076_s1 + $0xaf8] sm:$0xff] }
 0x32e   :  { %7279 = vmatpush1.bf16.msra.mxu0 %v7786_v59  ;;  %7443 = vmatpush1.bf16.msra.mxu1 %v7788_v60  ;;  %v7882_v59 = vcombine.low %v280_v41, %v288_v25  ;;  %v7884_v60 = vcombine.low %v281_v57, %v289_v42  ;;  %v377_v41 = vld [vmem:[%s12076_s1 + $0xb38] sm:$0xff]  ;;  %v7964_v42 = vcombine.low %v361_v30, %v369_v32 }
 0x32f   :  { %7280 = vmatprep.subr.bf16.mxu0 %v7803_v61  ;;  %7444 = vmatprep.subr.bf16.mxu1 %v7805_v62  ;;  %v7899_v61 = vcombine.high %v296_v49, %v304_v50  ;;  %v7901_v62 = vcombine.high %v297_v54, %v305_v58  ;;  %v385_v25 = vld [vmem:[%s12076_s1 + $0xb78] sm:$0xff] }
 0x332   :  { %7281 = vmatpush1.bf16.msra.mxu0 %v7802_v2  ;;  %7445 = vmatpush1.bf16.msra.mxu1 %v7804_v3  ;;  %v7898_v2 = vcombine.low %v296_v49, %v304_v50  ;;  %v7900_v3 = vcombine.low %v297_v54, %v305_v58  ;;  %v393_v49 = vld [vmem:[%s12076_s1 + $0xbb8] sm:$0xff]  ;;  %v7980_v58 = vcombine.low %v377_v41, %v385_v25 }
 0x333   :  { %7282 = vmatprep.subr.bf16.mxu0 %v7819_v4  ;;  %7446 = vmatprep.subr.bf16.mxu1 %v7821_v5  ;;  %v7915_v4 = vcombine.high %v312_v39, %v320_v63  ;;  %v7917_v5 = vcombine.high %v313_v0, %v321_v1  ;;  %v401_v50 = vld [vmem:[%s12076_s1 + $0xbf8] sm:$0xff] }
 0x334   :  { %v409_v39 = vld [vmem:[%s12076_s1 + $0xc38] sm:$0xff] }
 0x335   :  { %v417_v63 = vld [vmem:[%s12076_s1 + $0xc78] sm:$0xff] }
 0x336   :  { %7283 = vmatpush1.bf16.msra.mxu0 %v7818_v10  ;;  %7447 = vmatpush1.bf16.msra.mxu1 %v7820_v13  ;;  %v7916_v10 = vcombine.low %v313_v0, %v321_v1  ;;  %v7931_v13 = vcombine.high %v328_v6, %v336_v7  ;;  %v7996_v1 = vcombine.low %v393_v49, %v401_v50  ;;  %v425_v6 = vld [vmem:[%s12076_s1 + $0xcb8] sm:$0xff] }
 0x337   :  { %7284 = vmatprep.subr.bf16.mxu0 %v7835_v14  ;;  %7448 = vmatprep.subr.bf16.mxu1 %v7837_v16  ;;  %v344_v16 = vld [vmem:[%s12076_s1 + $0xa30] sm:$0xff]  ;;  %v433_v7 = vld [vmem:[%s12076_s1 + $0xcf8] sm:$0xff] }
 0x338   :  { %v7946_v33 = vcombine.low %v344_v16, %v352_v17 }
 0x33a   :  { %7285 = vmatpush1.bf16.msra.mxu0 %v7834_v23  ;;  %7449 = vmatpush1.bf16.msra.mxu1 %v7836_v24  ;;  %v7947_v23 = vcombine.high %v344_v16, %v352_v17  ;;  %v441_v16 = vld [vmem:[%s12076_s1 + $0xd38] sm:$0xff] }
 0x33b   :  { %7286 = vmatprep.subr.bf16.mxu0 %v7851_v26  ;;  %7450 = vmatprep.subr.bf16.mxu1 %v7853_v28  ;;  %v360_v26 = vld [vmem:[%s12076_s1 + $0xab0] sm:$0xff]  ;;  %v449_v17 = vld [vmem:[%s12076_s1 + $0xd78] sm:$0xff] }
 0x33c   :  { %v368_v28 = vld [vmem:[%s12076_s1 + $0xaf0] sm:$0xff] }
 0x33d   :  { %v7962_v57 = vcombine.low %v360_v26, %v368_v28 }
 0x33e   :  { %7287 = vmatpush1.bf16.msra.mxu0 %v7850_v35  ;;  %7451 = vmatpush1.bf16.msra.mxu1 %v7852_v37  ;;  %v7963_v35 = vcombine.high %v360_v26, %v368_v28  ;;  %v7965_v37 = vcombine.high %v361_v30, %v369_v32  ;;  %v457_v26 = vld [vmem:[%s12076_s1 + $0xdb8] sm:$0xff]  ;;  %v8044_v32 = vcombine.low %v441_v16, %v449_v17 }
 0x33f   :  { %7288 = vmatprep.subr.bf16.mxu0 %v7867_v38  ;;  %7452 = vmatprep.subr.bf16.mxu1 %v7869_v40  ;;  %v376_v38 = vld [vmem:[%s12076_s1 + $0xb30] sm:$0xff]  ;;  %v465_v28 = vld [vmem:[%s12076_s1 + $0xdf8] sm:$0xff] }
 0x340   :  { %v384_v40 = vld [vmem:[%s12076_s1 + $0xb70] sm:$0xff] }
 0x341   :  { %v7978_v54 = vcombine.low %v376_v38, %v384_v40 }
 0x342   :  { %7289 = vmatpush1.bf16.msra.mxu0 %v7866_v43  ;;  %7453 = vmatpush1.bf16.msra.mxu1 %v7868_v44  ;;  %v7979_v43 = vcombine.high %v376_v38, %v384_v40  ;;  %v7981_v44 = vcombine.high %v377_v41, %v385_v25  ;;  %v473_v38 = vld [vmem:[%s12076_s1 + $0xe38] sm:$0xff]  ;;  %v8060_v25 = vcombine.low %v457_v26, %v465_v28 }
 0x343   :  { %7299 = vmatprep.subr.bf16.mxu0 %v7883_v46  ;;  %7463 = vmatprep.subr.bf16.mxu1 %v7885_v48  ;;  %v392_v46 = vld [vmem:[%s12076_s1 + $0xbb0] sm:$0xff]  ;;  %v481_v40 = vld [vmem:[%s12076_s1 + $0xe78] sm:$0xff] }
 0x344   :  { %v400_v48 = vld [vmem:[%s12076_s1 + $0xbf0] sm:$0xff] }
 0x345   :  { %7291 = vmatmul.mubr.bf16.vlgmr.msra.gmra.mrb[12].mxu0 %v9002_v12  ;;  %7455 = vmatmul.mubr.bf16.vlgmr.msra.gmra.mrb[12].mxu1 %v9002_v12  ;;  %v329_v12 = vld [vmem:[%s12076_s1 + $0x9b8] sm:$0xff]  ;;  %v7994_v0 = vcombine.low %v392_v46, %v400_v48 }
 0x346   :  { %7300 = vmatpush1.bf16.msra.mxu0 %v7882_v59  ;;  %7464 = vmatpush1.bf16.msra.mxu1 %v7884_v60  ;;  %v7933_v14 = vcombine.high %v329_v12, %v337_v8  ;;  %v7932_v20 = vcombine.low %v329_v12, %v337_v8  ;;  %v7995_v59 = vcombine.high %v392_v46, %v400_v48  ;;  %v489_v46 = vld [vmem:[%s12076_s1 + $0xeb8] sm:$0xff] }
 0x347   :  { %7301 = vmatprep.subr.bf16.mxu0 %v7899_v61  ;;  %7465 = vmatprep.subr.bf16.mxu1 %v7901_v62  ;;  %v7997_v60 = vcombine.high %v393_v49, %v401_v50  ;;  %v408_v61 = vld [vmem:[%s12076_s1 + $0xc30] sm:$0xff]  ;;  %v8012_v8 = vcombine.low %v409_v39, %v417_v63  ;;  %v497_v48 = vld [vmem:[%s12076_s1 + $0xef8] sm:$0xff]  ;;  %v8076_v50 = vcombine.low %v473_v38, %v481_v40 }
 0x348   :  { %7331 = vmatprep.mubr.bf16.mxu0 %v9023_v21  ;;  %7495 = vmatprep.mubr.bf16.mxu1 %v9023_v21  ;;  %v345_v21 = vld [vmem:[%s12076_s1 + $0xa38] sm:$0xff]  ;;  %v416_v62 = vld [vmem:[%s12076_s1 + $0xc70] sm:$0xff] }
 0x349   :  { %v7949_v24 = vcombine.high %v345_v21, %v353_v53  ;;  %v7948_v34 = vcombine.low %v345_v21, %v353_v53  ;;  %v8010_v12 = vcombine.low %v408_v61, %v416_v62  ;;  %v8028_v53 = vcombine.low %v425_v6, %v433_v7 }
 0x34a   :  { %7302 = vmatpush1.bf16.msra.mxu0 %v7898_v2  ;;  %7466 = vmatpush1.bf16.msra.mxu1 %v7900_v3  ;;  %v8011_v2 = vcombine.high %v408_v61, %v416_v62  ;;  %v8013_v3 = vcombine.high %v409_v39, %v417_v63  ;;  %v505_v61 = vld [vmem:[%s12076_s1 + $0xf38] sm:$0xff]  ;;  %v8092_v63 = vcombine.low %v489_v46, %v497_v48 }
 0x34b   :  { %7303 = vmatprep.subr.bf16.mxu0 %v7915_v4  ;;  %7467 = vmatprep.subr.bf16.mxu1 %v7917_v5  ;;  %v424_v4 = vld [vmem:[%s12076_s1 + $0xcb0] sm:$0xff]  ;;  %v513_v62 = vld [vmem:[%s12076_s1 + $0xf78] sm:$0xff] }
 0x34c   :  { %v432_v5 = vld [vmem:[%s12076_s1 + $0xcf0] sm:$0xff] }
 0x34d   :  { %v8026_v21 = vcombine.low %v424_v4, %v432_v5 }
 0x34e   :  { %7304 = vmatpush1.bf16.msra.mxu0 %v7914_v9  ;;  %7468 = vmatpush1.bf16.msra.mxu1 %v7916_v10  ;;  %v8027_v9 = vcombine.high %v424_v4, %v432_v5  ;;  %v8029_v10 = vcombine.high %v425_v6, %v433_v7  ;;  %v521_v4 = vld [vmem:[%s12076_s1 + $0xfb8] sm:$0xff]  ;;  %v8108_v7 = vcombine.low %v505_v61, %v513_v62 }
 0x34f   :  { %7305 = vmatprep.subr.bf16.mxu0 %v7931_v13  ;;  %7469 = vmatprep.subr.bf16.mxu1 %v7933_v14  ;;  %v440_v13 = vld [vmem:[%s12076_s1 + $0xd30] sm:$0xff]  ;;  %v529_v5 = vld [vmem:[%s12076_s1 + $0xff8] sm:$0xff] }
 0x350   :  { %v448_v14 = vld [vmem:[%s12076_s1 + $0xd70] sm:$0xff] }
 0x351   :  { %v8042_v30 = vcombine.low %v440_v13, %v448_v14 }
 0x352   :  { %7306 = vmatpush1.bf16.msra.mxu0 %v7930_v18  ;;  %7470 = vmatpush1.bf16.msra.mxu1 %v7932_v20  ;;  %v8043_v18 = vcombine.high %v440_v13, %v448_v14  ;;  %v8045_v20 = vcombine.high %v441_v16, %v449_v17  ;;  %v537_v13 = vld [vmem:[%s12076_s1 + $0x1038] sm:$0xff]  ;;  %v8124_v17 = vcombine.low %v521_v4, %v529_v5 }
 0x353   :  { %7307 = vmatprep.subr.bf16.mxu0 %v7947_v23  ;;  %7471 = vmatprep.subr.bf16.mxu1 %v7949_v24  ;;  %v456_v23 = vld [vmem:[%s12076_s1 + $0xdb0] sm:$0xff]  ;;  %v545_v14 = vld [vmem:[%s12076_s1 + $0x1078] sm:$0xff] }
 0x354   :  { %v464_v24 = vld [vmem:[%s12076_s1 + $0xdf0] sm:$0xff] }
 0x355   :  { %v8058_v41 = vcombine.low %v456_v23, %v464_v24 }
 0x356   :  { %7308 = vmatpush1.bf16.msra.mxu0 %v7946_v33  ;;  %7472 = vmatpush1.bf16.msra.mxu1 %v7948_v34  ;;  %v8059_v33 = vcombine.high %v456_v23, %v464_v24  ;;  %v8061_v34 = vcombine.high %v457_v26, %v465_v28  ;;  %v553_v23 = vld [vmem:[%s12076_s1 + $0x10b8] sm:$0xff]  ;;  %v8140_v28 = vcombine.low %v537_v13, %v545_v14 }
 0x357   :  { %7309 = vmatprep.subr.bf16.mxu0 %v7963_v35  ;;  %7473 = vmatprep.subr.bf16.mxu1 %v7965_v37  ;;  %v472_v35 = vld [vmem:[%s12076_s1 + $0xe30] sm:$0xff]  ;;  %v561_v24 = vld [vmem:[%s12076_s1 + $0x10f8] sm:$0xff] }
 0x358   :  { %v480_v37 = vld [vmem:[%s12076_s1 + $0xe70] sm:$0xff] }
 0x359   :  { %v8074_v49 = vcombine.low %v472_v35, %v480_v37 }
 0x35a   :  { %7310 = vmatpush1.bf16.msra.mxu0 %v7962_v57  ;;  %7474 = vmatpush1.bf16.msra.mxu1 %v7964_v42  ;;  %v8075_v57 = vcombine.high %v472_v35, %v480_v37  ;;  %v8077_v42 = vcombine.high %v473_v38, %v481_v40  ;;  %v569_v35 = vld [vmem:[%s12076_s1 + $0x1138] sm:$0xff]  ;;  %v8156_v40 = vcombine.low %v553_v23, %v561_v24 }
 0x35b   :  { %7311 = vmatprep.subr.bf16.mxu0 %v7979_v43  ;;  %7475 = vmatprep.subr.bf16.mxu1 %v7981_v44  ;;  %v488_v43 = vld [vmem:[%s12076_s1 + $0xeb0] sm:$0xff]  ;;  %v577_v37 = vld [vmem:[%s12076_s1 + $0x1178] sm:$0xff] }
 0x35c   :  { %v496_v44 = vld [vmem:[%s12076_s1 + $0xef0] sm:$0xff] }
 0x35d   :  { %v8090_v39 = vcombine.low %v488_v43, %v496_v44 }
 0x35e   :  { %7312 = vmatpush1.bf16.msra.mxu0 %v7978_v54  ;;  %7476 = vmatpush1.bf16.msra.mxu1 %v7980_v58  ;;  %v8091_v54 = vcombine.high %v488_v43, %v496_v44  ;;  %v8093_v58 = vcombine.high %v489_v46, %v497_v48  ;;  %v593_v43 = vld [vmem:[%s12076_s1 + $0x11f8] sm:$0xff]  ;;  %v8172_v46 = vcombine.low %v569_v35, %v577_v37 }
 0x35f   :  { %7313 = vmatprep.subr.bf16.mxu0 %v7995_v59  ;;  %7477 = vmatprep.subr.bf16.mxu1 %v7997_v60  ;;  %v504_v59 = vld [vmem:[%s12076_s1 + $0xf30] sm:$0xff] }
 0x360   :  { %v512_v60 = vld [vmem:[%s12076_s1 + $0xf70] sm:$0xff] }
 0x361   :  { %v8106_v6 = vcombine.low %v504_v59, %v512_v60 }
 0x362   :  { %7314 = vmatpush1.bf16.msra.mxu0 %v7994_v0  ;;  %7478 = vmatpush1.bf16.msra.mxu1 %v7996_v1  ;;  %v8107_v0 = vcombine.high %v504_v59, %v512_v60  ;;  %v8109_v1 = vcombine.high %v505_v61, %v513_v62 }
 0x363   :  { %7315 = vmatprep.subr.bf16.mxu0 %v8011_v2  ;;  %7479 = vmatprep.subr.bf16.mxu1 %v8013_v3  ;;  %v520_v2 = vld [vmem:[%s12076_s1 + $0xfb0] sm:$0xff] }
 0x364   :  { %v528_v3 = vld [vmem:[%s12076_s1 + $0xff0] sm:$0xff] }
 0x365   :  { %v8122_v16 = vcombine.low %v520_v2, %v528_v3 }
 0x366   :  { %7316 = vmatpush1.bf16.msra.mxu0 %v8010_v12  ;;  %7480 = vmatpush1.bf16.msra.mxu1 %v8012_v8  ;;  %v8123_v12 = vcombine.high %v520_v2, %v528_v3  ;;  %v8125_v8 = vcombine.high %v521_v4, %v529_v5 }
 0x367   :  { %7317 = vmatprep.subr.bf16.mxu0 %v8027_v9  ;;  %7481 = vmatprep.subr.bf16.mxu1 %v8029_v10  ;;  %v536_v9 = vld [vmem:[%s12076_s1 + $0x1030] sm:$0xff] }
 0x368   :  { %v544_v10 = vld [vmem:[%s12076_s1 + $0x1070] sm:$0xff] }
 0x369   :  { %v8138_v26 = vcombine.low %v536_v9, %v544_v10 }
 0x36a   :  { %7318 = vmatpush1.bf16.msra.mxu0 %v8026_v21  ;;  %7482 = vmatpush1.bf16.msra.mxu1 %v8028_v53  ;;  %v8139_v21 = vcombine.high %v536_v9, %v544_v10  ;;  %v8141_v53 = vcombine.high %v537_v13, %v545_v14 }
 0x36b   :  { %7319 = vmatprep.subr.bf16.mxu0 %v8043_v18  ;;  %7483 = vmatprep.subr.bf16.mxu1 %v8045_v20  ;;  %v552_v18 = vld [vmem:[%s12076_s1 + $0x10b0] sm:$0xff] }
 0x36c   :  { %v560_v20 = vld [vmem:[%s12076_s1 + $0x10f0] sm:$0xff] }
 0x36d   :  { %v8154_v38 = vcombine.low %v552_v18, %v560_v20 }
 0x36e   :  { %7320 = vmatpush1.bf16.msra.mxu0 %v8042_v30  ;;  %7484 = vmatpush1.bf16.msra.mxu1 %v8044_v32  ;;  %v8155_v30 = vcombine.high %v552_v18, %v560_v20  ;;  %v8157_v32 = vcombine.high %v553_v23, %v561_v24 }
 0x36f   :  { %7321 = vmatprep.subr.bf16.mxu0 %v8059_v33  ;;  %7485 = vmatprep.subr.bf16.mxu1 %v8061_v34  ;;  %v568_v33 = vld [vmem:[%s12076_s1 + $0x1130] sm:$0xff] }
 0x370   :  { %v576_v34 = vld [vmem:[%s12076_s1 + $0x1170] sm:$0xff] }
 0x371   :  { %v8170_v44 = vcombine.low %v568_v33, %v576_v34 }
 0x372   :  { %7322 = vmatpush1.bf16.msra.mxu0 %v8058_v41  ;;  %7486 = vmatpush1.bf16.msra.mxu1 %v8060_v25  ;;  %v8171_v41 = vcombine.high %v568_v33, %v576_v34  ;;  %v8173_v25 = vcombine.high %v569_v35, %v577_v37 }
 0x373   :  { %7323 = vmatprep.subr.bf16.mxu0 %v8075_v57  ;;  %7487 = vmatprep.subr.bf16.mxu1 %v8077_v42  ;;  %v584_v57 = vld [vmem:[%s12076_s1 + $0x11b0] sm:$0xff] }
 0x374   :  { %v592_v42 = vld [vmem:[%s12076_s1 + $0x11f0] sm:$0xff] }
 0x375   :  { %v8187_v48 = vcombine.high %v584_v57, %v592_v42  ;;  %v8186_v59 = vcombine.low %v584_v57, %v592_v42 }
 0x376   :  { %7324 = vmatpush1.bf16.msra.mxu0 %v8074_v49  ;;  %7488 = vmatpush1.bf16.msra.mxu1 %v8076_v50  ;;  %v600_v50 = vld [vmem:[%s12076_s1 + $0x1230] sm:$0xff] }
 0x377   :  { %7325 = vmatprep.subr.bf16.mxu0 %v8091_v54  ;;  %7489 = vmatprep.subr.bf16.mxu1 %v8093_v58  ;;  %v608_v54 = vld [vmem:[%s12076_s1 + $0x1270] sm:$0xff]  ;;  %v609_v58 = vld [vmem:[%s12076_s1 + $0x1278] sm:$0xff] }
 0x378   :  { %v8203_v61 = vcombine.high %v600_v50, %v608_v54  ;;  %v8202_v2 = vcombine.low %v600_v50, %v608_v54 }
 0x37a   :  { %7326 = vmatpush1.bf16.msra.mxu0 %v8090_v39  ;;  %7490 = vmatpush1.bf16.msra.mxu1 %v8092_v63  ;;  %v616_v39 = vld [vmem:[%s12076_s1 + $0x12b0] sm:$0xff] }
 0x37b   :  { %7327 = vmatprep.subr.bf16.mxu0 %v8107_v0  ;;  %7491 = vmatprep.subr.bf16.mxu1 %v8109_v1  ;;  %v624_v63 = vld [vmem:[%s12076_s1 + $0x12f0] sm:$0xff]  ;;  %v617_v0 = vld [vmem:[%s12076_s1 + $0x12b8] sm:$0xff] }
 0x37c   :  { %v625_v1 = vld [vmem:[%s12076_s1 + $0x12f8] sm:$0xff]  ;;  %v8219_v4 = vcombine.high %v616_v39, %v624_v63  ;;  %v8218_v9 = vcombine.low %v616_v39, %v624_v63 }
 0x37d   :  { %v8221_v5 = vcombine.high %v617_v0, %v625_v1  ;;  %v8220_v10 = vcombine.low %v617_v0, %v625_v1 }
 0x37e   :  { %7328 = vmatpush1.bf16.msra.mxu0 %v8106_v6  ;;  %7492 = vmatpush1.bf16.msra.mxu1 %v8108_v7  ;;  %v632_v6 = vld [vmem:[%s12076_s1 + $0x1330] sm:$0xff] }
 0x37f   :  { %7329 = vmatprep.subr.bf16.mxu0 %v8123_v12  ;;  %7493 = vmatprep.subr.bf16.mxu1 %v8125_v8  ;;  %v640_v7 = vld [vmem:[%s12076_s1 + $0x1370] sm:$0xff]  ;;  %v633_v12 = vld [vmem:[%s12076_s1 + $0x1338] sm:$0xff] }
 0x380   :  { %v641_v8 = vld [vmem:[%s12076_s1 + $0x1378] sm:$0xff]  ;;  %v8235_v13 = vcombine.high %v632_v6, %v640_v7  ;;  %v8234_v18 = vcombine.low %v632_v6, %v640_v7 }
 0x381   :  { %v8237_v14 = vcombine.high %v633_v12, %v641_v8  ;;  %v8236_v20 = vcombine.low %v633_v12, %v641_v8 }
 0x382   :  { %7330 = vmatpush1.bf16.msra.mxu0 %v8122_v16  ;;  %7494 = vmatpush1.bf16.msra.mxu1 %v8124_v17  ;;  %v648_v16 = vld [vmem:[%s12076_s1 + $0x13b0] sm:$0xff] }
 0x383   :  { %7340 = vmatprep.subr.bf16.mxu0 %v8139_v21  ;;  %7504 = vmatprep.subr.bf16.mxu1 %v8141_v53  ;;  %v656_v17 = vld [vmem:[%s12076_s1 + $0x13f0] sm:$0xff]  ;;  %v649_v21 = vld [vmem:[%s12076_s1 + $0x13b8] sm:$0xff] }
 0x384   :  { %v657_v53 = vld [vmem:[%s12076_s1 + $0x13f8] sm:$0xff]  ;;  %v8251_v23 = vcombine.high %v648_v16, %v656_v17  ;;  %v8250_v33 = vcombine.low %v648_v16, %v656_v17 }
 0x385   :  { %7332 = vmatmul.mubr.bf16.vlgmr.msra.gmra.mrb[12].mxu0 %v9211_v22  ;;  %7496 = vmatmul.mubr.bf16.vlgmr.msra.gmra.mrb[12].mxu1 %v9211_v22  ;;  %v585_v22 = vld [vmem:[%s12076_s1 + $0x11b8] sm:$0xff]  ;;  %v8253_v24 = vcombine.high %v649_v21, %v657_v53  ;;  %v8252_v34 = vcombine.low %v649_v21, %v657_v53 }
 0x386   :  { %7341 = vmatpush1.bf16.msra.mxu0 %v8138_v26  ;;  %7505 = vmatpush1.bf16.msra.mxu1 %v8140_v28  ;;  %v8189_v49 = vcombine.high %v585_v22, %v593_v43  ;;  %v8188_v60 = vcombine.low %v585_v22, %v593_v43  ;;  %v664_v26 = vld [vmem:[%s12076_s1 + $0x1430] sm:$0xff] }
 0x387   :  { %7342 = vmatprep.subr.bf16.mxu0 %v8155_v30  ;;  %7506 = vmatprep.subr.bf16.mxu1 %v8157_v32  ;;  %v672_v28 = vld [vmem:[%s12076_s1 + $0x1470] sm:$0xff]  ;;  %v665_v30 = vld [vmem:[%s12076_s1 + $0x1438] sm:$0xff] }
 0x388   :  { %7372 = vmatprep.mubr.bf16.mxu0 %v9232_v31  ;;  %7536 = vmatprep.mubr.bf16.mxu1 %v9232_v31  ;;  %v601_v31 = vld [vmem:[%s12076_s1 + $0x1238] sm:$0xff]  ;;  %v8267_v35 = vcombine.high %v664_v26, %v672_v28  ;;  %v8266_v57 = vcombine.low %v664_v26, %v672_v28 }
 0x389   :  { %v8205_v62 = vcombine.high %v601_v31, %v609_v58  ;;  %v8204_v3 = vcombine.low %v601_v31, %v609_v58  ;;  %v673_v32 = vld [vmem:[%s12076_s1 + $0x1478] sm:$0xff] }
 0x38a   :  { %7343 = vmatpush1.bf16.msra.mxu0 %v8154_v38  ;;  %7507 = vmatpush1.bf16.msra.mxu1 %v8156_v40  ;;  %v8269_v37 = vcombine.high %v665_v30, %v673_v32  ;;  %v680_v38 = vld [vmem:[%s12076_s1 + $0x14b0] sm:$0xff]  ;;  %v8268_v42 = vcombine.low %v665_v30, %v673_v32 }
 0x38b   :  { %7344 = vmatprep.subr.bf16.mxu0 %v8171_v41  ;;  %7508 = vmatprep.subr.bf16.mxu1 %v8173_v25  ;;  %v688_v40 = vld [vmem:[%s12076_s1 + $0x14f0] sm:$0xff]  ;;  %v681_v41 = vld [vmem:[%s12076_s1 + $0x14b8] sm:$0xff] }
 0x38c   :  { %v689_v25 = vld [vmem:[%s12076_s1 + $0x14f8] sm:$0xff]  ;;  %v8283_v22 = vcombine.high %v680_v38, %v688_v40  ;;  %v8282_v50 = vcombine.low %v680_v38, %v688_v40 }
 0x38d   :  { %v8285_v43 = vcombine.high %v681_v41, %v689_v25  ;;  %v8284_v54 = vcombine.low %v681_v41, %v689_v25 }
 0x38e   :  { %7345 = vmatpush1.bf16.msra.mxu0 %v8170_v44  ;;  %7509 = vmatpush1.bf16.msra.mxu1 %v8172_v46  ;;  %v696_v44 = vld [vmem:[%s12076_s1 + $0x1530] sm:$0xff] }
 0x38f   :  { %7346 = vmatprep.subr.bf16.mxu0 %v8187_v48  ;;  %7510 = vmatprep.subr.bf16.mxu1 %v8189_v49  ;;  %v704_v46 = vld [vmem:[%s12076_s1 + $0x1570] sm:$0xff]  ;;  %v697_v48 = vld [vmem:[%s12076_s1 + $0x1538] sm:$0xff] }
 0x390   :  { %v705_v49 = vld [vmem:[%s12076_s1 + $0x1578] sm:$0xff]  ;;  %v8299_v31 = vcombine.high %v696_v44, %v704_v46  ;;  %v8298_v39 = vcombine.low %v696_v44, %v704_v46 }
 0x391   :  { %v8301_v58 = vcombine.high %v697_v48, %v705_v49  ;;  %v8300_v63 = vcombine.low %v697_v48, %v705_v49 }
 0x392   :  { %7347 = vmatpush1.bf16.msra.mxu0 %v8186_v59  ;;  %7511 = vmatpush1.bf16.msra.mxu1 %v8188_v60  ;;  %v712_v59 = vld [vmem:[%s12076_s1 + $0x15b0] sm:$0xff] }
 0x393   :  { %7348 = vmatprep.subr.bf16.mxu0 %v8203_v61  ;;  %7512 = vmatprep.subr.bf16.mxu1 %v8205_v62  ;;  %v720_v60 = vld [vmem:[%s12076_s1 + $0x15f0] sm:$0xff]  ;;  %v713_v61 = vld [vmem:[%s12076_s1 + $0x15b8] sm:$0xff] }
 0x394   :  { %v721_v62 = vld [vmem:[%s12076_s1 + $0x15f8] sm:$0xff]  ;;  %v8315_v0 = vcombine.high %v712_v59, %v720_v60  ;;  %v8314_v6 = vcombine.low %v712_v59, %v720_v60 }
 0x395   :  { %v8317_v1 = vcombine.high %v713_v61, %v721_v62  ;;  %v8316_v7 = vcombine.low %v713_v61, %v721_v62 }
 0x396   :  { %7349 = vmatpush1.bf16.msra.mxu0 %v8202_v2  ;;  %7513 = vmatpush1.bf16.msra.mxu1 %v8204_v3  ;;  %v728_v2 = vld [vmem:[%s12076_s1 + $0x1630] sm:$0xff] }
 0x397   :  { %7350 = vmatprep.subr.bf16.mxu0 %v8219_v4  ;;  %7514 = vmatprep.subr.bf16.mxu1 %v8221_v5  ;;  %v736_v3 = vld [vmem:[%s12076_s1 + $0x1670] sm:$0xff]  ;;  %v729_v4 = vld [vmem:[%s12076_s1 + $0x1638] sm:$0xff] }
 0x398   :  { %v737_v5 = vld [vmem:[%s12076_s1 + $0x1678] sm:$0xff]  ;;  %v8331_v12 = vcombine.high %v728_v2, %v736_v3  ;;  %v8330_v16 = vcombine.low %v728_v2, %v736_v3 }
 0x399   :  { %v8333_v8 = vcombine.high %v729_v4, %v737_v5  ;;  %v8332_v17 = vcombine.low %v729_v4, %v737_v5 }
 0x39a   :  { %7351 = vmatpush1.bf16.msra.mxu0 %v8218_v9  ;;  %7515 = vmatpush1.bf16.msra.mxu1 %v8220_v10  ;;  %v744_v9 = vld [vmem:[%s12076_s1 + $0x16b0] sm:$0xff] }
 0x39b   :  { %7352 = vmatprep.subr.bf16.mxu0 %v8235_v13  ;;  %7516 = vmatprep.subr.bf16.mxu1 %v8237_v14  ;;  %v752_v10 = vld [vmem:[%s12076_s1 + $0x16f0] sm:$0xff]  ;;  %v745_v13 = vld [vmem:[%s12076_s1 + $0x16b8] sm:$0xff] }
 0x39c   :  { %v753_v14 = vld [vmem:[%s12076_s1 + $0x16f8] sm:$0xff]  ;;  %v8347_v21 = vcombine.high %v744_v9, %v752_v10  ;;  %v8346_v26 = vcombine.low %v744_v9, %v752_v10 }
 0x39d   :  { %v8349_v53 = vcombine.high %v745_v13, %v753_v14  ;;  %v8348_v28 = vcombine.low %v745_v13, %v753_v14  ;;  %v856_v14 = vld [vmem:[%s12076_s1 + $0x1a30] sm:$0xff] }
 0x39e   :  { %7353 = vmatpush1.bf16.msra.mxu0 %v8234_v18  ;;  %7517 = vmatpush1.bf16.msra.mxu1 %v8236_v20  ;;  %v760_v18 = vld [vmem:[%s12076_s1 + $0x1730] sm:$0xff] }
 0x39f   :  { %7354 = vmatprep.subr.bf16.mxu0 %v8251_v23  ;;  %7518 = vmatprep.subr.bf16.mxu1 %v8253_v24  ;;  %v768_v20 = vld [vmem:[%s12076_s1 + $0x1770] sm:$0xff]  ;;  %v761_v23 = vld [vmem:[%s12076_s1 + $0x1738] sm:$0xff] }
 0x3a0   :  { %v769_v24 = vld [vmem:[%s12076_s1 + $0x1778] sm:$0xff]  ;;  %v8363_v30 = vcombine.high %v760_v18, %v768_v20  ;;  %v8362_v38 = vcombine.low %v760_v18, %v768_v20 }
 0x3a1   :  { %v8365_v32 = vcombine.high %v761_v23, %v769_v24  ;;  %v8364_v40 = vcombine.low %v761_v23, %v769_v24  ;;  %v872_v23 = vld [vmem:[%s12076_s1 + $0x1ab0] sm:$0xff] }
 0x3a2   :  { %7355 = vmatpush1.bf16.msra.mxu0 %v8250_v33  ;;  %7519 = vmatpush1.bf16.msra.mxu1 %v8252_v34  ;;  %v776_v33 = vld [vmem:[%s12076_s1 + $0x17b0] sm:$0xff] }
 0x3a3   :  { %7356 = vmatprep.subr.bf16.mxu0 %v8267_v35  ;;  %7520 = vmatprep.subr.bf16.mxu1 %v8269_v37  ;;  %v784_v34 = vld [vmem:[%s12076_s1 + $0x17f0] sm:$0xff]  ;;  %v777_v35 = vld [vmem:[%s12076_s1 + $0x17b8] sm:$0xff] }
 0x3a4   :  { %v785_v37 = vld [vmem:[%s12076_s1 + $0x17f8] sm:$0xff]  ;;  %v8379_v41 = vcombine.high %v776_v33, %v784_v34  ;;  %v8378_v44 = vcombine.low %v776_v33, %v784_v34  ;;  %v880_v24 = vld [vmem:[%s12076_s1 + $0x1af0] sm:$0xff] }
 0x3a5   :  { %v8381_v25 = vcombine.high %v777_v35, %v785_v37  ;;  %v8380_v46 = vcombine.low %v777_v35, %v785_v37  ;;  %v8475_v34 = vcombine.high %v872_v23, %v880_v24  ;;  %v888_v37 = vld [vmem:[%s12076_s1 + $0x1b30] sm:$0xff] }
 0x3a6   :  { %7357 = vmatpush1.bf16.msra.mxu0 %v8266_v57  ;;  %7521 = vmatpush1.bf16.msra.mxu1 %v8268_v42  ;;  %v792_v57 = vld [vmem:[%s12076_s1 + $0x1830] sm:$0xff] }
 0x3a7   :  { %7358 = vmatprep.subr.bf16.mxu0 %v8283_v22  ;;  %7522 = vmatprep.subr.bf16.mxu1 %v8285_v43  ;;  %v800_v42 = vld [vmem:[%s12076_s1 + $0x1870] sm:$0xff]  ;;  %v793_v22 = vld [vmem:[%s12076_s1 + $0x1838] sm:$0xff] }
 0x3a8   :  { %v801_v43 = vld [vmem:[%s12076_s1 + $0x1878] sm:$0xff]  ;;  %v8395_v48 = vcombine.high %v792_v57, %v800_v42  ;;  %v8394_v59 = vcombine.low %v792_v57, %v800_v42 }
 0x3a9   :  { %v8397_v49 = vcombine.high %v793_v22, %v801_v43  ;;  %v8396_v60 = vcombine.low %v793_v22, %v801_v43  ;;  %v8474_v22 = vcombine.low %v872_v23, %v880_v24  ;;  %v960_v23 = vld [vmem:[%s12076_s1 + $0x1d70] sm:$0xff]  ;;  %v953_v24 = vld [vmem:[%s12076_s1 + $0x1d38] sm:$0xff] }
 0x3aa   :  { %7359 = vmatpush1.bf16.msra.mxu0 %v8282_v50  ;;  %7523 = vmatpush1.bf16.msra.mxu1 %v8284_v54  ;;  %v808_v50 = vld [vmem:[%s12076_s1 + $0x18b0] sm:$0xff] }
 0x3ab   :  { %7360 = vmatprep.subr.bf16.mxu0 %v8299_v31  ;;  %7524 = vmatprep.subr.bf16.mxu1 %v8301_v58  ;;  %v816_v54 = vld [vmem:[%s12076_s1 + $0x18f0] sm:$0xff]  ;;  %v809_v31 = vld [vmem:[%s12076_s1 + $0x18b8] sm:$0xff] }
 0x3ac   :  { %v817_v58 = vld [vmem:[%s12076_s1 + $0x18f8] sm:$0xff]  ;;  %v8411_v61 = vcombine.high %v808_v50, %v816_v54  ;;  %v8410_v2 = vcombine.low %v808_v50, %v816_v54 }
 0x3ad   :  { %v8413_v62 = vcombine.high %v809_v31, %v817_v58  ;;  %v8412_v3 = vcombine.low %v809_v31, %v817_v58  ;;  %v913_v31 = vld [vmem:[%s12076_s1 + $0x1bf8] sm:$0xff] }
 0x3ae   :  { %7361 = vmatpush1.bf16.msra.mxu0 %v8298_v39  ;;  %7525 = vmatpush1.bf16.msra.mxu1 %v8300_v63  ;;  %v824_v39 = vld [vmem:[%s12076_s1 + $0x1930] sm:$0xff] }
 0x3af   :  { %7362 = vmatprep.subr.bf16.mxu0 %v8315_v0  ;;  %7526 = vmatprep.subr.bf16.mxu1 %v8317_v1  ;;  %v832_v63 = vld [vmem:[%s12076_s1 + $0x1970] sm:$0xff]  ;;  %v825_v0 = vld [vmem:[%s12076_s1 + $0x1938] sm:$0xff] }
 0x3b0   :  { %v833_v1 = vld [vmem:[%s12076_s1 + $0x1978] sm:$0xff]  ;;  %v8427_v4 = vcombine.high %v824_v39, %v832_v63 }
 0x3b1   :  { %v8429_v5 = vcombine.high %v825_v0, %v833_v1  ;;  %v8428_v9 = vcombine.low %v825_v0, %v833_v1 }
 0x3b2   :  { %7363 = vmatpush1.bf16.msra.mxu0 %v8314_v6  ;;  %7527 = vmatpush1.bf16.msra.mxu1 %v8316_v7  ;;  %v840_v6 = vld [vmem:[%s12076_s1 + $0x19b0] sm:$0xff] }
 0x3b3   :  { %7364 = vmatprep.subr.bf16.mxu0 %v8331_v12  ;;  %7528 = vmatprep.subr.bf16.mxu1 %v8333_v8  ;;  %v848_v7 = vld [vmem:[%s12076_s1 + $0x19f0] sm:$0xff]  ;;  %v849_v12 = vld [vmem:[%s12076_s1 + $0x19f8] sm:$0xff]  ;;  %v8426_v8 = vcombine.low %v824_v39, %v832_v63 }
 0x3b4   :  { %v8443_v10 = vcombine.high %v840_v6, %v848_v7 }
 0x3b6   :  { %7365 = vmatpush1.bf16.msra.mxu0 %v8330_v16  ;;  %7529 = vmatpush1.bf16.msra.mxu1 %v8332_v17  ;;  %v864_v16 = vld [vmem:[%s12076_s1 + $0x1a70] sm:$0xff]  ;;  %v865_v17 = vld [vmem:[%s12076_s1 + $0x1a78] sm:$0xff] }
 0x3b7   :  { %7366 = vmatprep.subr.bf16.mxu0 %v8347_v21  ;;  %7530 = vmatprep.subr.bf16.mxu1 %v8349_v53  ;;  %v8442_v21 = vcombine.low %v840_v6, %v848_v7  ;;  %v8459_v18 = vcombine.high %v856_v14, %v864_v16  ;;  %v928_v6 = vld [vmem:[%s12076_s1 + $0x1c70] sm:$0xff]  ;;  %v921_v7 = vld [vmem:[%s12076_s1 + $0x1c38] sm:$0xff] }
 0x3ba   :  { %7367 = vmatpush1.bf16.msra.mxu0 %v8346_v26  ;;  %7531 = vmatpush1.bf16.msra.mxu1 %v8348_v28  ;;  %v873_v26 = vld [vmem:[%s12076_s1 + $0x1ab8] sm:$0xff] }
 0x3bb   :  { %7368 = vmatprep.subr.bf16.mxu0 %v8363_v30  ;;  %7532 = vmatprep.subr.bf16.mxu1 %v8365_v32  ;;  %v881_v28 = vld [vmem:[%s12076_s1 + $0x1af8] sm:$0xff]  ;;  %v8458_v30 = vcombine.low %v856_v14, %v864_v16  ;;  %v11904_v32 = vld [vmem:[%s12078_s2 + $0x8] sm:$0xff]  ;;  %v944_v14 = vld [vmem:[%s12076_s1 + $0x1cf0] sm:$0xff] }
 0x3bc   :  { %v8477_v35 = vcombine.high %v873_v26, %v881_v28  ;;  %v1089_v57 = vrot.slane %v11904_v32, %v1056_v27  ;;  %v1085_v42 = vrot.slane %v11904_v32, %v1052_v15  ;;  %v8476_v43 = vcombine.low %v873_v26, %v881_v28  ;;  %v904_v27 = vld [vmem:[%s12076_s1 + $0x1bb0] sm:$0xff]  ;;  %v937_v16 = vld [vmem:[%s12076_s1 + $0x1cb8] sm:$0xff] }
 0x3bd   :  { %v912_v15 = vld [vmem:[%s12076_s1 + $0x1bf0] sm:$0xff]  ;;  %v961_v26 = vld [vmem:[%s12076_s1 + $0x1d78] sm:$0xff] }
 0x3be   :  { %7369 = vmatpush1.bf16.msra.mxu0 %v8362_v38  ;;  %7533 = vmatpush1.bf16.msra.mxu1 %v8364_v40  ;;  %v896_v38 = vld [vmem:[%s12076_s1 + $0x1b70] sm:$0xff]  ;;  %v1081_v40 = vrot.slane %v11904_v32, %v1048_v19  ;;  %v1093_v19 = vrot.slane %v11904_v32, %v1060_v29  ;;  %v905_v29 = vld [vmem:[%s12076_s1 + $0x1bb8] sm:$0xff] }
 0x3bf   :  { %7370 = vmatprep.subr.bf16.mxu0 %v8379_v41  ;;  %7534 = vmatprep.subr.bf16.mxu1 %v8381_v25  ;;  %v889_v41 = vld [vmem:[%s12076_s1 + $0x1b38] sm:$0xff] }
 0x3c0   :  { %v897_v25 = vld [vmem:[%s12076_s1 + $0x1b78] sm:$0xff] }
 0x3c1   :  { %v8492_v1 = vcombine.low %v889_v41, %v897_v25 }
 0x3c2   :  { %7371 = vmatpush1.bf16.msra.mxu0 %v8378_v44  ;;  %7535 = vmatpush1.bf16.msra.mxu1 %v8380_v46  ;;  %v8491_v44 = vcombine.high %v888_v37, %v896_v38 }
 0x3c3   :  { %7381 = vmatprep.subr.bf16.mxu0 %v8395_v48  ;;  %7545 = vmatprep.subr.bf16.mxu1 %v8397_v49  ;;  %v8493_v48 = vcombine.high %v889_v41, %v897_v25  ;;  %v8556_v25 = vcombine.low %v953_v24, %v961_v26 }
 0x3c5   :  { %7373 = vmatmul.mubr.bf16.vlgmr.msra.gmra.mrb[12].mxu0 %v9420_v36  ;;  %7537 = vmatmul.mubr.bf16.vlgmr.msra.gmra.mrb[12].mxu1 %v9420_v36  ;;  %v841_v36 = vld [vmem:[%s12076_s1 + $0x19b8] sm:$0xff] }
 0x3c6   :  { %7382 = vmatpush1.bf16.msra.mxu0 %v8394_v59  ;;  %7546 = vmatpush1.bf16.msra.mxu1 %v8396_v60  ;;  %v8445_v13 = vcombine.high %v841_v36, %v849_v12  ;;  %v8444_v53 = vcombine.low %v841_v36, %v849_v12  ;;  %v929_v36 = vld [vmem:[%s12076_s1 + $0x1c78] sm:$0xff]  ;;  %v8506_v12 = vcombine.low %v904_v27, %v912_v15 }
 0x3c7   :  { %7383 = vmatprep.subr.bf16.mxu0 %v8411_v61  ;;  %7547 = vmatprep.subr.bf16.mxu1 %v8413_v62  ;;  %v8490_v62 = vcombine.low %v888_v37, %v896_v38  ;;  %v976_v37 = vld [vmem:[%s12076_s1 + $0x1df0] sm:$0xff]  ;;  %v969_v38 = vld [vmem:[%s12076_s1 + $0x1db8] sm:$0xff] }
 0x3c8   :  { %7413 = vmatprep.mubr.bf16.mxu0 %v9441_v45  ;;  %7577 = vmatprep.mubr.bf16.mxu1 %v9441_v45  ;;  %v857_v45 = vld [vmem:[%s12076_s1 + $0x1a38] sm:$0xff] }
 0x3c9   :  { %v8461_v20 = vcombine.high %v857_v45, %v865_v17  ;;  %v8460_v33 = vcombine.low %v857_v45, %v865_v17  ;;  %v945_v45 = vld [vmem:[%s12076_s1 + $0x1cf8] sm:$0xff] }
 0x3ca   :  { %7384 = vmatpush1.bf16.msra.mxu0 %v8410_v2  ;;  %7548 = vmatpush1.bf16.msra.mxu1 %v8412_v3  ;;  %v8507_v2 = vcombine.high %v904_v27, %v912_v15 }
 0x3cb   :  { %7385 = vmatprep.subr.bf16.mxu0 %v8427_v4  ;;  %7549 = vmatprep.subr.bf16.mxu1 %v8429_v5  ;;  %v8509_v4 = vcombine.high %v905_v29, %v913_v31  ;;  %v920_v5 = vld [vmem:[%s12076_s1 + $0x1c30] sm:$0xff] }
 0x3cc   :  { %v8522_v17 = vcombine.low %v920_v5, %v928_v6 }
 0x3ce   :  { %7386 = vmatpush1.bf16.msra.mxu0 %v8426_v8  ;;  %7550 = vmatpush1.bf16.msra.mxu1 %v8428_v9  ;;  %v8508_v8 = vcombine.low %v905_v29, %v913_v31  ;;  %v8523_v9 = vcombine.high %v920_v5, %v928_v6  ;;  %v1009_v29 = vld [vmem:[%s12076_s1 + $0x1ef8] sm:$0xff]  ;;  %v1040_v5 = vld [vmem:[%s12076_s1 + $0x1ff0] sm:$0xff] }
 0x3cf   :  { %7387 = vmatprep.subr.bf16.mxu0 %v8443_v10  ;;  %7551 = vmatprep.subr.bf16.mxu1 %v8445_v13  ;;  %v8525_v10 = vcombine.high %v921_v7, %v929_v36  ;;  %v936_v13 = vld [vmem:[%s12076_s1 + $0x1cb0] sm:$0xff]  ;;  %v1033_v6 = vld [vmem:[%s12076_s1 + $0x1fb8] sm:$0xff] }
 0x3d0   :  { %v8538_v28 = vcombine.low %v936_v13, %v944_v14 }
 0x3d2   :  { %7388 = vmatpush1.bf16.msra.mxu0 %v8442_v21  ;;  %7552 = vmatpush1.bf16.msra.mxu1 %v8444_v53  ;;  %v8524_v21 = vcombine.low %v921_v7, %v929_v36  ;;  %v8539_v53 = vcombine.high %v936_v13, %v944_v14  ;;  %v1041_v7 = vld [vmem:[%s12076_s1 + $0x1ff8] sm:$0xff]  ;;  %v1097_v14 = vrot.slane %v11904_v32, %v1064_v47 }
 0x3d3   :  { %7389 = vmatprep.subr.bf16.mxu0 %v8459_v18  ;;  %7553 = vmatprep.subr.bf16.mxu1 %v8461_v20  ;;  %v8541_v18 = vcombine.high %v937_v16, %v945_v45  ;;  %v952_v20 = vld [vmem:[%s12076_s1 + $0x1d30] sm:$0xff]  ;;  %v8636_v13 = vcombine.low %v1033_v6, %v1041_v7 }
 0x3d4   :  { %v8554_v41 = vcombine.low %v952_v20, %v960_v23 }
 0x3d6   :  { %7390 = vmatpush1.bf16.msra.mxu0 %v8458_v30  ;;  %7554 = vmatpush1.bf16.msra.mxu1 %v8460_v33  ;;  %v8540_v30 = vcombine.low %v937_v16, %v945_v45  ;;  %v8555_v33 = vcombine.high %v952_v20, %v960_v23  ;;  %v1105_v16 = vrot.slane %v11904_v32, %v1072_v51 }
 0x3d7   :  { %7391 = vmatprep.subr.bf16.mxu0 %v8475_v34  ;;  %7555 = vmatprep.subr.bf16.mxu1 %v8477_v35  ;;  %v8557_v34 = vcombine.high %v953_v24, %v961_v26  ;;  %v968_v35 = vld [vmem:[%s12076_s1 + $0x1db0] sm:$0xff]  ;;  %v1101_v45 = vrot.slane %v11904_v32, %v1068_v52 }
 0x3d8   :  { %v7087_v46 = vpop.f32.mrb[8].mxu0  ;;  %v7251_v50 = vpop.f32.mrb[8].mxu1 }
 0x3d9   :  { %v8646_v49 = vadd.f32 %v7087_v46, %v1081_v40  ;;  %v7089_v54 = vpop.f32.mrb[9].mxu0  ;;  %v8648_v58 = vadd.f32 %v7251_v50, %v1089_v57  ;;  %v7253_v60 = vpop.f32.mrb[9].mxu1  ;;  %v977_v40 = vld [vmem:[%s12076_s1 + $0x1df8] sm:$0xff]  ;;  %v8571_v57 = vcombine.high %v968_v35, %v976_v37  ;;  %v8570_v46 = vcombine.low %v968_v35, %v976_v37  ;;  %v1008_v50 = vld [vmem:[%s12076_s1 + $0x1ef0] sm:$0xff] }
 0x3da   :  { %v8647_v59 = vadd.f32 %v7089_v54, %v1085_v42  ;;  %v7091_v61 = vpop.f32.mrb[10].mxu0  ;;  %7392 = vmatpush1.bf16.msra.mxu0 %v8474_v22  ;;  %v8649_v39 = vadd.f32 %v7253_v60, %v1093_v19  ;;  %v7255_v63 = vpop.f32.mrb[10].mxu1  ;;  %7556 = vmatpush1.bf16.msra.mxu1 %v8476_v43  ;;  %v8573_v42 = vcombine.high %v969_v38, %v977_v40  ;;  %v984_v22 = vld [vmem:[%s12076_s1 + $0x1e30] sm:$0xff]  ;;  %v985_v43 = vld [vmem:[%s12076_s1 + $0x1e38] sm:$0xff] }
 0x3db   :  { %7594 = vst [vmem:[%s12079_s3 + $0x40] sm:$0xff] %v8646_v49  ;;  %v7092_v0 = vpop.f32.mrb[11].mxu0  ;;  %7393 = vmatprep.subr.bf16.mxu0 %v8491_v44  ;;  %7596 = vst [vmem:[%s12079_s3 + $0x50] sm:$0xff] %v8648_v58  ;;  %v7256_v3 = vpop.f32.mrb[11].mxu1  ;;  %7557 = vmatprep.subr.bf16.mxu1 %v8493_v48  ;;  %v992_v19 = vld [vmem:[%s12076_s1 + $0x1e70] sm:$0xff]  ;;  %v993_v44 = vld [vmem:[%s12076_s1 + $0x1e78] sm:$0xff]  ;;  %v8572_v48 = vcombine.low %v969_v38, %v977_v40 }
 0x3dc   :  { %7595 = vst [vmem:[%s12079_s3 + $0x48] sm:$0xff] %v8647_v59  ;;  %7597 = vst [vmem:[%s12079_s3 + $0x58] sm:$0xff] %v8649_v39  ;;  %v8587_v27 = vcombine.high %v984_v22, %v992_v19  ;;  %v8589_v15 = vcombine.high %v985_v43, %v993_v44  ;;  %v1000_v49 = vld [vmem:[%s12076_s1 + $0x1eb0] sm:$0xff]  ;;  %v1001_v54 = vld [vmem:[%s12076_s1 + $0x1eb8] sm:$0xff]  ;;  %v8586_v31 = vcombine.low %v984_v22, %v992_v19 }
 0x3dd   :  { %v8588_v58 = vcombine.low %v985_v43, %v993_v44  ;;  %v8603_v59 = vcombine.high %v1000_v49, %v1008_v50  ;;  %v8605_v60 = vcombine.high %v1001_v54, %v1009_v29  ;;  %v1016_v61 = vld [vmem:[%s12076_s1 + $0x1f30] sm:$0xff]  ;;  %v1017_v39 = vld [vmem:[%s12076_s1 + $0x1f38] sm:$0xff]  ;;  %v8602_v0 = vcombine.low %v1000_v49, %v1008_v50 }
 0x3de   :  { %7394 = vmatpush1.bf16.msra.mxu0 %v8490_v62  ;;  %7558 = vmatpush1.bf16.msra.mxu1 %v8492_v1  ;;  %v1024_v62 = vld [vmem:[%s12076_s1 + $0x1f70] sm:$0xff]  ;;  %v1025_v63 = vld [vmem:[%s12076_s1 + $0x1f78] sm:$0xff]  ;;  %v8604_v1 = vcombine.low %v1001_v54, %v1009_v29 }
 0x3df   :  { %7395 = vmatprep.subr.bf16.mxu0 %v8507_v2  ;;  %7559 = vmatprep.subr.bf16.mxu1 %v8509_v4  ;;  %v8619_v2 = vcombine.high %v1016_v61, %v1024_v62  ;;  %v8621_v3 = vcombine.high %v1017_v39, %v1025_v63  ;;  %v1032_v4 = vld [vmem:[%s12076_s1 + $0x1fb0] sm:$0xff]  ;;  %v8618_v36 = vcombine.low %v1016_v61, %v1024_v62 }
 0x3e2   :  { %7396 = vmatpush1.bf16.msra.mxu0 %v8506_v12  ;;  %7560 = vmatpush1.bf16.msra.mxu1 %v8508_v8  ;;  %v8620_v12 = vcombine.low %v1017_v39, %v1025_v63  ;;  %v8635_v8 = vcombine.high %v1032_v4, %v1040_v5 }
 0x3e3   :  { %7397 = vmatprep.subr.bf16.mxu0 %v8523_v9  ;;  %7561 = vmatprep.subr.bf16.mxu1 %v8525_v10  ;;  %v8637_v9 = vcombine.high %v1033_v6, %v1041_v7  ;;  %v8634_v10 = vcombine.low %v1032_v4, %v1040_v5 }
 0x3e6   :  { %7398 = vmatpush1.bf16.msra.mxu0 %v8522_v17  ;;  %7562 = vmatpush1.bf16.msra.mxu1 %v8524_v21  ;;  %v1109_v17 = vrot.slane %v11904_v32, %v1076_v56 }
 0x3e7   :  { %7399 = vmatprep.subr.bf16.mxu0 %v8539_v53  ;;  %7563 = vmatprep.subr.bf16.mxu1 %v8541_v18 }
 0x3ea   :  { %7400 = vmatpush1.bf16.msra.mxu0 %v8538_v28  ;;  %7564 = vmatpush1.bf16.msra.mxu1 %v8540_v30 }
 0x3eb   :  { %7401 = vmatprep.subr.bf16.mxu0 %v8555_v33  ;;  %7565 = vmatprep.subr.bf16.mxu1 %v8557_v34 }
 0x3ee   :  { %7402 = vmatpush1.bf16.msra.mxu0 %v8554_v41  ;;  %7566 = vmatpush1.bf16.msra.mxu1 %v8556_v25 }
 0x3ef   :  { %7403 = vmatprep.subr.bf16.mxu0 %v8571_v57  ;;  %7567 = vmatprep.subr.bf16.mxu1 %v8573_v42 }
 0x3f2   :  { %7404 = vmatpush1.bf16.msra.mxu0 %v8570_v46  ;;  %7568 = vmatpush1.bf16.msra.mxu1 %v8572_v48 }
 0x3f3   :  { %7405 = vmatprep.subr.bf16.mxu0 %v8587_v27  ;;  %7569 = vmatprep.subr.bf16.mxu1 %v8589_v15 }
 0x3f6   :  { %7406 = vmatpush1.bf16.msra.mxu0 %v8586_v31  ;;  %7570 = vmatpush1.bf16.msra.mxu1 %v8588_v58 }
 0x3f7   :  { %7407 = vmatprep.subr.bf16.mxu0 %v8603_v59  ;;  %7571 = vmatprep.subr.bf16.mxu1 %v8605_v60 }
 0x3fa   :  { %7408 = vmatpush1.bf16.msra.mxu0 %v8602_v0  ;;  %7572 = vmatpush1.bf16.msra.mxu1 %v8604_v1 }
 0x3fb   :  { %7409 = vmatprep.subr.bf16.mxu0 %v8619_v2  ;;  %7573 = vmatprep.subr.bf16.mxu1 %v8621_v3 }
 0x3fe   :  { %7410 = vmatpush1.bf16.msra.mxu0 %v8618_v36  ;;  %7574 = vmatpush1.bf16.msra.mxu1 %v8620_v12 }
 0x3ff   :  { %7411 = vmatprep.subr.bf16.mxu0 %v8635_v8  ;;  %7575 = vmatprep.subr.bf16.mxu1 %v8637_v9 }
 0x402   :  { %7412 = vmatpush1.bf16.msra.mxu0 %v8634_v10  ;;  %7576 = vmatpush1.bf16.msra.mxu1 %v8636_v13 }
 0x405   :  { %7414 = vmatmul.mubr.bf16.vlgmr.msra.gmra.mrb[12].mxu0 %v9629_v55  ;;  %7578 = vmatmul.mubr.bf16.vlgmr.msra.gmra.mrb[12].mxu1 %v9629_v55 }
 0x4d8   :  { %v7415_v21 = vpop.f32.mrb[12].mxu0  ;;  %v7579_v18 = vpop.f32.mrb[12].mxu1 }
 0x4d9   :  { %v8650_v53 = vadd.f32 %v7415_v21, %v1097_v14  ;;  %v7417_v55 = vpop.f32.mrb[13].mxu0  ;;  %v8652_v20 = vadd.f32 %v7579_v18, %v1105_v16  ;;  %v7581_v24 = vpop.f32.mrb[13].mxu1 }
 0x4da   :  { %v8651_v23 = vadd.f32 %v7417_v55, %v1101_v45  ;;  %v7419_v47 = vpop.f32.mrb[14].mxu0  ;;  %v8653_v51 = vadd.f32 %v7581_v24, %v1109_v17  ;;  %v7583_v26 = vpop.f32.mrb[14].mxu1 }
 0x4db   :  { %7598 = vst [vmem:[%s12079_s3 + $0x60] sm:$0xff] %v8650_v53  ;;  %v7420_v28 = vpop.f32.mrb[15].mxu0  ;;  %7600 = vst [vmem:[%s12079_s3 + $0x70] sm:$0xff] %v8652_v20  ;;  %v7584_v11 = vpop.f32.mrb[15].mxu1 }
 0x4dc   :  { %7599 = vst [vmem:[%s12079_s3 + $0x68] sm:$0xff] %v8651_v23  ;;  %7601 = vst [vmem:[%s12079_s3 + $0x78] sm:$0xff] %v8653_v51 }

</bundles_post_ra>
